<compile_context>
chip_gen: v7x
topology: tpu7x:2x2x1
jax: 0.10.0
libtpu: 0.0.40
codegen_flags: <defaults>
</compile_context>

<pallas_src>
import jax
import jax.numpy as jnp
import numpy as np
from jax.experimental import pallas as pl
from jax.experimental.pallas import tpu as pltpu


# ----------------------------- Pallas kernel -------------------------------

def decoder_kernel(gi_ref,                                           # streamed [TT, 3, B, H]
                   h0_ref, enc_ref, mask_bias_ref, fra_ref,          # residents
                   w_hh_r_ref, w_hh_z_ref, w_hh_n_ref, b_hh_n_ref,   # resident GRU weights
                   w_cat_c_ref, w_cat_h_ref, b_cat_ref,              # resident fusion weights
                   w_out_ref, b_out_ref,                             # resident output proj
                   out_ref,                                          # [B, TT, V]
                   h_carry, h_all):                                  # scratch: [B,H], [B,TT,H]
    tt_tile = gi_ref.shape[0]
    b_dim, h_dim = h0_ref.shape
    v_dim = w_out_ref.shape[1]

    @pl.when(pl.program_id(0) == 0)
    def _init():
        h_carry[...] = h0_ref[...]

    # Hoisted resident loads used inside the serial loop.
    w_hh_r = w_hh_r_ref[...]
    w_hh_z = w_hh_z_ref[...]
    w_hh_n = w_hh_n_ref[...]
    b_hh_n = b_hh_n_ref[...]
    fra = fra_ref[...]                                    # [B, 1] int32 target lengths
    t_base = pl.program_id(0) * tt_tile

    # ---- serial recurrence: ONLY the GRU cell stays per-step (tiny live state) ----
    # TODO(synk): single fused h @ W_hh[H,3H] push when H is a multiple of 128.
    h = h_carry[...]
    for tt in range(tt_tile):                             # static unroll; body is small now
        g = gi_ref[tt]                                    # [3, B, H] (one VMEM load)
        gh_r = jnp.dot(h, w_hh_r, preferred_element_type=jnp.float32)
        gh_z = jnp.dot(h, w_hh_z, preferred_element_type=jnp.float32)
        gh_n = jnp.dot(h, w_hh_n, preferred_element_type=jnp.float32) + b_hh_n
        r = jax.nn.sigmoid(g[0] + gh_r)
        z = jax.nn.sigmoid(g[1] + gh_z)
        n = jnp.tanh(g[2] + r * gh_n)
        h_new = (1.0 - z) * n + z * h                     # [B, H]
        h_all[:, tt, :] = h_new                           # ungated hidden feeds attention/out
        # Activity gate from resident lengths (no streamed [TT,B,1] block, no where()).
        a = ((t_base + tt) < fra).astype(jnp.float32)     # [B, 1]
        h = h + a * (h_new - h)                           # inactive rows keep old hidden
    h_carry[...] = h

    # ---- batched epilogue over the whole tile (fills MXU rows, one dense store) ----
    enc = enc_ref[...]                                    # [B, S, H]
    mask_bias = mask_bias_ref[...]                        # [B, 1, S]  (-1e30 at PAD)
    hs = h_all[...]                                       # [B, TT, H]

    s = jnp.einsum('bth,bsh->bts', hs, enc,
                   preferred_element_type=jnp.float32)    # [B, TT, S]
    s = s + mask_bias
    m = jnp.max(s, axis=-1, keepdims=True)
    e = jnp.exp(s - m)
    alphas = e / jnp.sum(e, axis=-1, keepdims=True)       # exact normalization
    ctx = jnp.einsum('bts,bsh->bth', alphas, enc,
                     preferred_element_type=jnp.float32)  # [B, TT, H]

    h2 = hs.reshape(b_dim * tt_tile, h_dim)
    c2 = ctx.reshape(b_dim * tt_tile, h_dim)
    hfo = jnp.tanh(
        jnp.dot(c2, w_cat_c_ref[...], preferred_element_type=jnp.float32)
        + jnp.dot(h2, w_cat_h_ref[...], preferred_element_type=jnp.float32)
        + b_cat_ref[...])                                 # [B*TT, H]

    logits = jnp.dot(hfo, w_out_ref[...],
                     preferred_element_type=jnp.float32) + b_out_ref[...]   # [B*TT, V]
    lm = jnp.max(logits, axis=-1, keepdims=True)
    sh = logits - lm
    lse = jnp.log(jnp.sum(jnp.exp(sh), axis=-1, keepdims=True))
    out_ref[...] = (sh - lse).reshape(b_dim, tt_tile, v_dim)   # one dense [B,TT,V] store


# ------------------------------ JAX wrapper ---------------------------------

def _chip_vmem_bytes():
    try:
        return int(pltpu.get_tpu_info().vmem_capacity_bytes)
    except Exception:
        return 64 << 20       # conservative floor (v7x per-TensorCore VMEM)


def luong_decoder_forward(params, all_encoder_hidden_states, initial_decoder_hidden_state,
                          encoder_output_mask, target_input, fra_length, *, time_tile=8):
    """Returns log-probs [B, T, V]; mirrors DecoderWithLuongAttention.forward."""
    B, S, H = all_encoder_hidden_states.shape
    T = target_input.shape[1]
    V = params["emb"].shape[0]
    TT = min(time_tile, T)
    assert T % TT == 0, "TODO(synk): ragged T needs a masked tail tile"
    # TODO(synk): torch skips a timestep entirely when no batch element is active; here every
    # step emits a logit row, which matches torch only when max(fra_length) == T.

    w_ih, b_ih = params["w_ih"], params["b_ih"]        # [H, 3H], [1, 3H]   (gate order r,z,n)
    w_hh, b_hh = params["w_hh"], params["b_hh"]        # [H, 3H], [1, 3H]

    # Hoisted input-gate projections (no dependence on the recurrent state), time-major.
    # b_hh for the r/z gates is folded here (they sit outside the r* term in the GRU formula).
    emb_t = params["emb"][target_input.T]                                    # [T, B, H]
    gi_r = emb_t @ w_ih[:, :H]       + b_ih[:, :H]       + b_hh[:, :H]
    gi_z = emb_t @ w_ih[:, H:2 * H]  + b_ih[:, H:2 * H]  + b_hh[:, H:2 * H]
    gi_n = emb_t @ w_ih[:, 2 * H:]   + b_ih[:, 2 * H:]
    gi = jnp.stack([gi_r, gi_z, gi_n], axis=1)            # [T, 3, B, H]  — ONE fused stream

    # Per-gate hidden-to-hidden weights (no lane-axis slicing inside the kernel at H < 128).
    w_hh_r, w_hh_z, w_hh_n = w_hh[:, :H], w_hh[:, H:2 * H], w_hh[:, 2 * H:]
    b_hh_n = b_hh[:, 2 * H:]

    # Additive encoder PAD bias.  Deliberate divergence from the -inf reference: a
    # hypothetical fully-masked encoder row yields a uniform (finite) attention distribution
    # instead of NaN.
    mask_bias = ((1.0 - encoder_output_mask.astype(jnp.float32)) * (-1e30))[:, None, :]
    fra = fra_length.astype(jnp.int32).reshape(B, 1)                         # [B, 1]
    h0 = initial_decoder_hidden_state[0]                                     # [B, H]

    grid = (T // TT,)

    # VMEM budget clamped to the real chip capacity (v7x: 64 MiB).
    resident_bytes = 4 * (B * H + B * S * H + B * S + B + 5 * H * H + 2 * H + H * V + V)
    streamed_bytes = 4 * (3 * TT * B * H)
    out_bytes = 4 * (B * TT * V)
    scratch_bytes = 4 * (B * H + B * TT * H)
    vmem_need = 2 * (streamed_bytes + out_bytes) + 2 * resident_bytes + scratch_bytes
    vmem_limit = int(min(0.9 * _chip_vmem_bytes(), max(4 * vmem_need, 16 << 20)))

    cost = pl.CostEstimate(
        flops=int(2 * T * B * (3 * H * H + 2 * S * H + 2 * H * H + H * V)),
        transcendentals=int(T * B * (4 * H + S + V + 2)),
        bytes_accessed=int(4 * (3 * T * B * H + B + B * S * H + B * S + B * H
                                + 5 * H * H + 2 * H + H * V + V + B * T * V)))

    def _run(single_buffer_residents):
        if single_buffer_residents:
            def resident(shape):
                nd = len(shape)
                return pl.BlockSpec(shape, lambda i, nd=nd: (0,) * nd,
                                    pipeline_mode=pl.Buffered(1))
        else:
            def resident(shape):
                nd = len(shape)
                return pl.BlockSpec(shape, lambda i, nd=nd: (0,) * nd)

        out = pl.pallas_call(
            decoder_kernel,
            out_shape=jax.ShapeDtypeStruct((B, T, V), jnp.float32),
            grid=grid,
            in_specs=[
                pl.BlockSpec((TT, 3, B, H), lambda i: (i, 0, 0, 0)),   # fused gi stream
                resident((B, H)),            # h0
                resident((B, S, H)),         # encoder hidden states
                resident((B, 1, S)),         # additive PAD bias
                resident((B, 1)),            # fra_length (int32)
                resident((H, H)),            # w_hh_r
                resident((H, H)),            # w_hh_z
                resident((H, H)),            # w_hh_n
                resident((1, H)),            # b_hh_n
                resident((H, H)),            # w_cat_c
                resident((H, H)),            # w_cat_h
                resident((1, H)),            # b_cat
                resident((H, V)),            # w_out
                resident((1, V)),            # b_out
            ],
            out_specs=pl.BlockSpec((B, TT, V), lambda i: (0, i, 0)),   # direct [B,T,V] layout
            scratch_shapes=[pltpu.VMEM((B, H), jnp.float32),           # carried hidden state
                            pltpu.VMEM((B, TT, H), jnp.float32)],      # per-tile hiddens
            compiler_params=pltpu.CompilerParams(
                dimension_semantics=("arbitrary",),                    # sequential recurrence
                vmem_limit_bytes=vmem_limit),
            cost_estimate=cost,
        )(gi, h0, all_encoder_hidden_states, mask_bias, fra,
          w_hh_r, w_hh_z, w_hh_n, b_hh_n,
          params["w_cat_c"], params["w_cat_h"], params["b_cat"],
          params["w_out"], params["b_out"])
        return jax.block_until_ready(out)

    try:
        return _run(True)
    except Exception:
        # TODO(synk): pipeline_mode=pl.Buffered(1) unsupported on this jax version; residents
        # fall back to default double-buffering (same semantics, larger VMEM footprint).
        return _run(False)


# ------------------------- pure-JAX reference (check) ------------------------

def reference_forward(params, enc, h0_1bh, enc_mask, target_input, fra_length):
    B, S, H = enc.shape
    T = target_input.shape[1]
    emb = params["emb"][target_input]                 # [B, T, H]
    h = h0_1bh[0]                                     # [B, H]
    outs = []
    for t in range(T):
        active = (t < fra_length).astype(jnp.float32)[:, None]     # [B, 1]
        h_old = h
        x_t = emb[:, t, :]
        gi = x_t @ params["w_ih"] + params["b_ih"]
        gh = h_old @ params["w_hh"] + params["b_hh"]
        r = jax.nn.sigmoid(gi[:, :H] + gh[:, :H])
        z = jax.nn.sigmoid(gi[:, H:2 * H] + gh[:, H:2 * H])
        n = jnp.tanh(gi[:, 2 * H:] + r * gh[:, 2 * H:])
        h_new = (1.0 - z) * n + z * h_old
        scores = jnp.sum(enc * h_new[:, None, :], axis=-1)
        scores = jnp.where(enc_mask, scores, -jnp.inf)
        alphas = jax.nn.softmax(scores, axis=-1)
        context = jnp.sum(alphas[:, :, None] * enc, axis=1)
        hfo = jnp.tanh(context @ params["w_cat_c"] + h_new @ params["w_cat_h"] + params["b_cat"])
        logits = hfo @ params["w_out"] + params["b_out"]
        outs.append(jax.nn.log_softmax(logits, axis=-1))
        h = h_new * active + h_old * (1.0 - active)
    return jnp.stack(outs, axis=1)


# ---------------------------------- main -------------------------------------

if __name__ == "__main__":
    B, S, T, H, V = 2, 8, 8, 32, 16

    key = jax.random.PRNGKey(0)
    ks = jax.random.split(key, 12)

    params = {
        "emb":     0.1 * jax.random.normal(ks[0], (V, H), jnp.float32),
        "w_ih":    0.1 * jax.random.normal(ks[1], (H, 3 * H), jnp.float32),
        "b_ih":    0.1 * jax.random.normal(ks[2], (1, 3 * H), jnp.float32),
        "w_hh":    0.1 * jax.random.normal(ks[3], (H, 3 * H), jnp.float32),
        "b_hh":    0.1 * jax.random.normal(ks[4], (1, 3 * H), jnp.float32),
        "w_cat_c": 0.1 * jax.random.normal(ks[5], (H, H), jnp.float32),
        "w_cat_h": 0.1 * jax.random.normal(ks[6], (H, H), jnp.float32),
        "b_cat":   0.1 * jax.random.normal(ks[7], (1, H), jnp.float32),
        "w_out":   0.1 * jax.random.normal(ks[8], (H, V), jnp.float32),
        "b_out":   0.1 * jax.random.normal(ks[9], (1, V), jnp.float32),
    }

    all_encoder_hidden_states = jax.random.normal(ks[10], (B, S, H), jnp.float32)
    initial_decoder_hidden_state = jax.random.normal(ks[11], (1, B, H), jnp.float32)
    encoder_output_mask = jnp.array(
        [[True] * S, [True] * (S - 2) + [False] * 2], dtype=bool)           # [B, S]
    target_input = jax.random.randint(jax.random.PRNGKey(1), (B, T), 0, V)  # [B, T]
    fra_length = jnp.array([T, T - 3], dtype=jnp.int32)
    assert int(jnp.max(fra_length)) == T  # see TODO in wrapper (torch skips all-inactive steps)

    log_probs = luong_decoder_forward(
        params, all_encoder_hidden_states, initial_decoder_hidden_state,
        encoder_output_mask, target_input, fra_length)
    log_probs = jax.block_until_ready(log_probs)

    ref = reference_forward(
        params, all_encoder_hidden_states, initial_decoder_hidden_state,
        encoder_output_mask, target_input, fra_length)

    # Softmax/log-softmax now use exact division; remaining slack covers MXU f32-pass
    # precision differences between the Pallas dots and the XLA reference.
    np.testing.assert_allclose(np.asarray(log_probs), np.asarray(ref), atol=2e-3, rtol=2e-3)
    assert log_probs.shape == (B, T, V)
    print("KERNEL_OK")
</pallas_src>

<mosaic_0001>
module attributes {stable_mosaic.version = 11 : i64} {
  func.func @decoder_kernel(%arg0: i32, %arg1: memref<8x3x2x32xf32, #tpu.memory_space<vmem>>, %arg2: memref<2x32xf32, #tpu.memory_space<vmem>>, %arg3: memref<2x8x32xf32, #tpu.memory_space<vmem>>, %arg4: memref<2x1x8xf32, #tpu.memory_space<vmem>>, %arg5: memref<2x1xi32, #tpu.memory_space<vmem>>, %arg6: memref<32x32xf32, #tpu.memory_space<vmem>>, %arg7: memref<32x32xf32, #tpu.memory_space<vmem>>, %arg8: memref<32x32xf32, #tpu.memory_space<vmem>>, %arg9: memref<1x32xf32, #tpu.memory_space<vmem>>, %arg10: memref<32x32xf32, #tpu.memory_space<vmem>>, %arg11: memref<32x32xf32, #tpu.memory_space<vmem>>, %arg12: memref<1x32xf32, #tpu.memory_space<vmem>>, %arg13: memref<32x16xf32, #tpu.memory_space<vmem>>, %arg14: memref<1x16xf32, #tpu.memory_space<vmem>>, %arg15: memref<2x8x16xf32, #tpu.memory_space<vmem>>, %arg16: memref<2x32xf32, #tpu.memory_space<vmem>>, %arg17: memref<2x8x32xf32, #tpu.memory_space<vmem>>) attributes {dimension_semantics = [#tpu.dimension_semantics<arbitrary>], iteration_bounds = array<i64: 1>, scalar_prefetch = 0 : i64, scratch_operands = 2 : i64, tpu.core_type = #tpu.core_type<tc>, window_params = [{transform_indices = @transform_0, window_bounds = array<i64: 8, 3, 2, 32>}, {pipeline_mode = #tpu.pipeline_mode<synchronous>, transform_indices = @transform_1, window_bounds = array<i64: 2, 32>}, {pipeline_mode = #tpu.pipeline_mode<synchronous>, transform_indices = @transform_2, window_bounds = array<i64: 2, 8, 32>}, {pipeline_mode = #tpu.pipeline_mode<synchronous>, transform_indices = @transform_3, window_bounds = array<i64: 2, 1, 8>}, {pipeline_mode = #tpu.pipeline_mode<synchronous>, transform_indices = @transform_4, window_bounds = array<i64: 2, 1>}, {pipeline_mode = #tpu.pipeline_mode<synchronous>, transform_indices = @transform_5, window_bounds = array<i64: 32, 32>}, {pipeline_mode = #tpu.pipeline_mode<synchronous>, transform_indices = @transform_6, window_bounds = array<i64: 32, 32>}, {pipeline_mode = #tpu.pipeline_mode<synchronous>, transform_indices = @transform_7, window_bounds = array<i64: 32, 32>}, {pipeline_mode = #tpu.pipeline_mode<synchronous>, transform_indices = @transform_8, window_bounds = array<i64: 1, 32>}, {pipeline_mode = #tpu.pipeline_mode<synchronous>, transform_indices = @transform_9, window_bounds = array<i64: 32, 32>}, {pipeline_mode = #tpu.pipeline_mode<synchronous>, transform_indices = @transform_10, window_bounds = array<i64: 32, 32>}, {pipeline_mode = #tpu.pipeline_mode<synchronous>, transform_indices = @transform_11, window_bounds = array<i64: 1, 32>}, {pipeline_mode = #tpu.pipeline_mode<synchronous>, transform_indices = @transform_12, window_bounds = array<i64: 32, 16>}, {pipeline_mode = #tpu.pipeline_mode<synchronous>, transform_indices = @transform_13, window_bounds = array<i64: 1, 16>}, {transform_indices = @transform_14, window_bounds = array<i64: 2, 8, 16>}]} {
    %c0_i32 = arith.constant 0 : i32
    %0 = arith.cmpi eq, %arg0, %c0_i32 : i32
    %1 = arith.extui %0 : i1 to i32
    %c0_i32_0 = arith.constant 0 : i32
    %2 = arith.cmpi ne, %1, %c0_i32_0 : i32
    scf.if %2 {
      %c0_142 = arith.constant 0 : index
      %c0_143 = arith.constant 0 : index
      %415 = vector.load %arg2[%c0_142, %c0_143] : memref<2x32xf32, #tpu.memory_space<vmem>>, vector<2x32xf32>
      %c0_144 = arith.constant 0 : index
      %c0_145 = arith.constant 0 : index
      %416 = vector.load %arg16[%c0_144, %c0_145] : memref<2x32xf32, #tpu.memory_space<vmem>>, vector<2x32xf32>
      tpu.vector_store %arg16[%c0_144, %c0_145], %415 {strides = array<i32>} : memref<2x32xf32, #tpu.memory_space<vmem>>, vector<2x32xf32>,
    } else {
    }
    %c0 = arith.constant 0 : index
    %c0_1 = arith.constant 0 : index
    %3 = vector.load %arg6[%c0, %c0_1] : memref<32x32xf32, #tpu.memory_space<vmem>>, vector<32x32xf32>
    %c0_2 = arith.constant 0 : index
    %c0_3 = arith.constant 0 : index
    %4 = vector.load %arg7[%c0_2, %c0_3] : memref<32x32xf32, #tpu.memory_space<vmem>>, vector<32x32xf32>
    %c0_4 = arith.constant 0 : index
    %c0_5 = arith.constant 0 : index
    %5 = vector.load %arg8[%c0_4, %c0_5] : memref<32x32xf32, #tpu.memory_space<vmem>>, vector<32x32xf32>
    %c0_6 = arith.constant 0 : index
    %c0_7 = arith.constant 0 : index
    %6 = vector.load %arg9[%c0_6, %c0_7] : memref<1x32xf32, #tpu.memory_space<vmem>>, vector<1x32xf32>
    %c0_8 = arith.constant 0 : index
    %c0_9 = arith.constant 0 : index
    %7 = vector.load %arg5[%c0_8, %c0_9] : memref<2x1xi32, #tpu.memory_space<vmem>>, vector<2x1xi32>
    %c8_i32 = arith.constant 8 : i32
    %8 = arith.muli %arg0, %c8_i32 : i32
    %c0_10 = arith.constant 0 : index
    %c0_11 = arith.constant 0 : index
    %9 = vector.load %arg16[%c0_10, %c0_11] : memref<2x32xf32, #tpu.memory_space<vmem>>, vector<2x32xf32>
    %c0_12 = arith.constant 0 : index
    %c0_13 = arith.constant 0 : index
    %c0_14 = arith.constant 0 : index
    %c0_15 = arith.constant 0 : index
    %10 = vector.load %arg1[%c0_12, %c0_13, %c0_14, %c0_15] : memref<8x3x2x32xf32, #tpu.memory_space<vmem>>, vector<1x3x2x32xf32>
    %11 = vector.shape_cast %10 : vector<1x3x2x32xf32> to vector<3x2x32xf32>
    %cst = arith.constant dense<0.000000e+00> : vector<2x32xf32>
    %12 = tpu.matmul %9, %3, %cst {dimension_numbers = #tpu.dot_dimension_numbers<[1], [0], [0], [1], [0, 0, 1, 1], [], []>} : vector<2x32xf32>, vector<32x32xf32>, vector<2x32xf32> -> vector<2x32xf32>
    %cst_16 = arith.constant dense<0.000000e+00> : vector<2x32xf32>
    %13 = tpu.matmul %9, %4, %cst_16 {dimension_numbers = #tpu.dot_dimension_numbers<[1], [0], [0], [1], [0, 0, 1, 1], [], []>} : vector<2x32xf32>, vector<32x32xf32>, vector<2x32xf32> -> vector<2x32xf32>
    %cst_17 = arith.constant dense<0.000000e+00> : vector<2x32xf32>
    %14 = tpu.matmul %9, %5, %cst_17 {dimension_numbers = #tpu.dot_dimension_numbers<[1], [0], [0], [1], [0, 0, 1, 1], [], []>} : vector<2x32xf32>, vector<32x32xf32>, vector<2x32xf32> -> vector<2x32xf32>
    %15 = vector.broadcast %6 : vector<1x32xf32> to vector<2x32xf32>
    %16 = arith.addf %14, %15 : vector<2x32xf32>
    %17 = vector.extract_strided_slice %11 {offsets = [0, 0, 0], sizes = [1, 2, 32], strides = [1, 1, 1]} : vector<3x2x32xf32> to vector<1x2x32xf32>
    %18 = vector.shape_cast %17 : vector<1x2x32xf32> to vector<2x32xf32>
    %19 = arith.addf %18, %12 : vector<2x32xf32>
    %20 = arith.negf %19 : vector<2x32xf32>
    %21 = math.exp %20 : vector<2x32xf32>
    %cst_18 = arith.constant 1.000000e+00 : f32
    %22 = vector.broadcast %cst_18 : f32 to vector<2x32xf32>
    %23 = arith.addf %22, %21 : vector<2x32xf32>
    %24 = arith.divf %22, %23 : vector<2x32xf32>
    %25 = vector.extract_strided_slice %11 {offsets = [1, 0, 0], sizes = [1, 2, 32], strides = [1, 1, 1]} : vector<3x2x32xf32> to vector<1x2x32xf32>
    %26 = vector.shape_cast %25 : vector<1x2x32xf32> to vector<2x32xf32>
    %27 = arith.addf %26, %13 : vector<2x32xf32>
    %28 = arith.negf %27 : vector<2x32xf32>
    %29 = math.exp %28 : vector<2x32xf32>
    %cst_19 = arith.constant 1.000000e+00 : f32
    %30 = vector.broadcast %cst_19 : f32 to vector<2x32xf32>
    %31 = arith.addf %30, %29 : vector<2x32xf32>
    %32 = arith.divf %30, %31 : vector<2x32xf32>
    %33 = vector.extract_strided_slice %11 {offsets = [2, 0, 0], sizes = [1, 2, 32], strides = [1, 1, 1]} : vector<3x2x32xf32> to vector<1x2x32xf32>
    %34 = vector.shape_cast %33 : vector<1x2x32xf32> to vector<2x32xf32>
    %35 = arith.mulf %24, %16 : vector<2x32xf32>
    %36 = arith.addf %34, %35 : vector<2x32xf32>
    %37 = math.tanh %36 : vector<2x32xf32>
    %cst_20 = arith.constant 1.000000e+00 : f32
    %38 = vector.broadcast %cst_20 : f32 to vector<2x32xf32>
    %39 = arith.subf %38, %32 : vector<2x32xf32>
    %40 = arith.mulf %39, %37 : vector<2x32xf32>
    %41 = arith.mulf %32, %9 : vector<2x32xf32>
    %42 = arith.addf %40, %41 : vector<2x32xf32>
    %c0_21 = arith.constant 0 : index
    %c0_22 = arith.constant 0 : index
    %c0_23 = arith.constant 0 : index
    %43 = vector.load %arg17[%c0_21, %c0_22, %c0_23] : memref<2x8x32xf32, #tpu.memory_space<vmem>>, vector<2x1x32xf32>
    %44 = vector.shape_cast %43 : vector<2x1x32xf32> to vector<2x32xf32>
    %45 = vector.shape_cast %42 : vector<2x32xf32> to vector<2x1x32xf32>
    tpu.vector_store %arg17[%c0_21, %c0_22, %c0_23], %45 {strides = array<i32>} : memref<2x8x32xf32, #tpu.memory_space<vmem>>, vector<2x1x32xf32>,
    %c0_i32_24 = arith.constant 0 : i32
    %46 = arith.addi %8, %c0_i32_24 : i32
    %47 = vector.broadcast %46 : i32 to vector<2x1xi32>
    %48 = arith.cmpi slt, %47, %7 : vector<2x1xi32>
    %49 = arith.extui %48 : vector<2x1xi1> to vector<2x1xi32>
    %50 = arith.sitofp %49 : vector<2x1xi32> to vector<2x1xf32>
    %51 = arith.subf %42, %9 : vector<2x32xf32>
    %52 = vector.broadcast %50 : vector<2x1xf32> to vector<2x32xf32>
    %53 = arith.mulf %52, %51 : vector<2x32xf32>
    %54 = arith.addf %9, %53 : vector<2x32xf32>
    %c1 = arith.constant 1 : index
    %c0_25 = arith.constant 0 : index
    %c0_26 = arith.constant 0 : index
    %c0_27 = arith.constant 0 : index
    %55 = vector.load %arg1[%c1, %c0_25, %c0_26, %c0_27] : memref<8x3x2x32xf32, #tpu.memory_space<vmem>>, vector<1x3x2x32xf32>
    %56 = vector.shape_cast %55 : vector<1x3x2x32xf32> to vector<3x2x32xf32>
    %cst_28 = arith.constant dense<0.000000e+00> : vector<2x32xf32>
    %57 = tpu.matmul %54, %3, %cst_28 {dimension_numbers = #tpu.dot_dimension_numbers<[1], [0], [0], [1], [0, 0, 1, 1], [], []>} : vector<2x32xf32>, vector<32x32xf32>, vector<2x32xf32> -> vector<2x32xf32>
    %cst_29 = arith.constant dense<0.000000e+00> : vector<2x32xf32>
    %58 = tpu.matmul %54, %4, %cst_29 {dimension_numbers = #tpu.dot_dimension_numbers<[1], [0], [0], [1], [0, 0, 1, 1], [], []>} : vector<2x32xf32>, vector<32x32xf32>, vector<2x32xf32> -> vector<2x32xf32>
    %cst_30 = arith.constant dense<0.000000e+00> : vector<2x32xf32>
    %59 = tpu.matmul %54, %5, %cst_30 {dimension_numbers = #tpu.dot_dimension_numbers<[1], [0], [0], [1], [0, 0, 1, 1], [], []>} : vector<2x32xf32>, vector<32x32xf32>, vector<2x32xf32> -> vector<2x32xf32>
    %60 = vector.broadcast %6 : vector<1x32xf32> to vector<2x32xf32>
    %61 = arith.addf %59, %60 : vector<2x32xf32>
    %62 = vector.extract_strided_slice %56 {offsets = [0, 0, 0], sizes = [1, 2, 32], strides = [1, 1, 1]} : vector<3x2x32xf32> to vector<1x2x32xf32>
    %63 = vector.shape_cast %62 : vector<1x2x32xf32> to vector<2x32xf32>
    %64 = arith.addf %63, %57 : vector<2x32xf32>
    %65 = arith.negf %64 : vector<2x32xf32>
    %66 = math.exp %65 : vector<2x32xf32>
    %cst_31 = arith.constant 1.000000e+00 : f32
    %67 = vector.broadcast %cst_31 : f32 to vector<2x32xf32>
    %68 = arith.addf %67, %66 : vector<2x32xf32>
    %69 = arith.divf %67, %68 : vector<2x32xf32>
    %70 = vector.extract_strided_slice %56 {offsets = [1, 0, 0], sizes = [1, 2, 32], strides = [1, 1, 1]} : vector<3x2x32xf32> to vector<1x2x32xf32>
    %71 = vector.shape_cast %70 : vector<1x2x32xf32> to vector<2x32xf32>
    %72 = arith.addf %71, %58 : vector<2x32xf32>
    %73 = arith.negf %72 : vector<2x32xf32>
    %74 = math.exp %73 : vector<2x32xf32>
    %cst_32 = arith.constant 1.000000e+00 : f32
    %75 = vector.broadcast %cst_32 : f32 to vector<2x32xf32>
    %76 = arith.addf %75, %74 : vector<2x32xf32>
    %77 = arith.divf %75, %76 : vector<2x32xf32>
    %78 = vector.extract_strided_slice %56 {offsets = [2, 0, 0], sizes = [1, 2, 32], strides = [1, 1, 1]} : vector<3x2x32xf32> to vector<1x2x32xf32>
    %79 = vector.shape_cast %78 : vector<1x2x32xf32> to vector<2x32xf32>
    %80 = arith.mulf %69, %61 : vector<2x32xf32>
    %81 = arith.addf %79, %80 : vector<2x32xf32>
    %82 = math.tanh %81 : vector<2x32xf32>
    %cst_33 = arith.constant 1.000000e+00 : f32
    %83 = vector.broadcast %cst_33 : f32 to vector<2x32xf32>
    %84 = arith.subf %83, %77 : vector<2x32xf32>
    %85 = arith.mulf %84, %82 : vector<2x32xf32>
    %86 = arith.mulf %77, %54 : vector<2x32xf32>
    %87 = arith.addf %85, %86 : vector<2x32xf32>
    %c0_34 = arith.constant 0 : index
    %c1_35 = arith.constant 1 : index
    %c0_36 = arith.constant 0 : index
    %88 = vector.load %arg17[%c0_34, %c1_35, %c0_36] : memref<2x8x32xf32, #tpu.memory_space<vmem>>, vector<2x1x32xf32>
    %89 = vector.shape_cast %88 : vector<2x1x32xf32> to vector<2x32xf32>
    %90 = vector.shape_cast %87 : vector<2x32xf32> to vector<2x1x32xf32>
    tpu.vector_store %arg17[%c0_34, %c1_35, %c0_36], %90 {strides = array<i32>} : memref<2x8x32xf32, #tpu.memory_space<vmem>>, vector<2x1x32xf32>,
    %c1_i32 = arith.constant 1 : i32
    %91 = arith.addi %8, %c1_i32 : i32
    %92 = vector.broadcast %91 : i32 to vector<2x1xi32>
    %93 = arith.cmpi slt, %92, %7 : vector<2x1xi32>
    %94 = arith.extui %93 : vector<2x1xi1> to vector<2x1xi32>
    %95 = arith.sitofp %94 : vector<2x1xi32> to vector<2x1xf32>
    %96 = arith.subf %87, %54 : vector<2x32xf32>
    %97 = vector.broadcast %95 : vector<2x1xf32> to vector<2x32xf32>
    %98 = arith.mulf %97, %96 : vector<2x32xf32>
    %99 = arith.addf %54, %98 : vector<2x32xf32>
    %c2 = arith.constant 2 : index
    %c0_37 = arith.constant 0 : index
    %c0_38 = arith.constant 0 : index
    %c0_39 = arith.constant 0 : index
    %100 = vector.load %arg1[%c2, %c0_37, %c0_38, %c0_39] : memref<8x3x2x32xf32, #tpu.memory_space<vmem>>, vector<1x3x2x32xf32>
    %101 = vector.shape_cast %100 : vector<1x3x2x32xf32> to vector<3x2x32xf32>
    %cst_40 = arith.constant dense<0.000000e+00> : vector<2x32xf32>
    %102 = tpu.matmul %99, %3, %cst_40 {dimension_numbers = #tpu.dot_dimension_numbers<[1], [0], [0], [1], [0, 0, 1, 1], [], []>} : vector<2x32xf32>, vector<32x32xf32>, vector<2x32xf32> -> vector<2x32xf32>
    %cst_41 = arith.constant dense<0.000000e+00> : vector<2x32xf32>
    %103 = tpu.matmul %99, %4, %cst_41 {dimension_numbers = #tpu.dot_dimension_numbers<[1], [0], [0], [1], [0, 0, 1, 1], [], []>} : vector<2x32xf32>, vector<32x32xf32>, vector<2x32xf32> -> vector<2x32xf32>
    %cst_42 = arith.constant dense<0.000000e+00> : vector<2x32xf32>
    %104 = tpu.matmul %99, %5, %cst_42 {dimension_numbers = #tpu.dot_dimension_numbers<[1], [0], [0], [1], [0, 0, 1, 1], [], []>} : vector<2x32xf32>, vector<32x32xf32>, vector<2x32xf32> -> vector<2x32xf32>
    %105 = vector.broadcast %6 : vector<1x32xf32> to vector<2x32xf32>
    %106 = arith.addf %104, %105 : vector<2x32xf32>
    %107 = vector.extract_strided_slice %101 {offsets = [0, 0, 0], sizes = [1, 2, 32], strides = [1, 1, 1]} : vector<3x2x32xf32> to vector<1x2x32xf32>
    %108 = vector.shape_cast %107 : vector<1x2x32xf32> to vector<2x32xf32>
    %109 = arith.addf %108, %102 : vector<2x32xf32>
    %110 = arith.negf %109 : vector<2x32xf32>
    %111 = math.exp %110 : vector<2x32xf32>
    %cst_43 = arith.constant 1.000000e+00 : f32
    %112 = vector.broadcast %cst_43 : f32 to vector<2x32xf32>
    %113 = arith.addf %112, %111 : vector<2x32xf32>
    %114 = arith.divf %112, %113 : vector<2x32xf32>
    %115 = vector.extract_strided_slice %101 {offsets = [1, 0, 0], sizes = [1, 2, 32], strides = [1, 1, 1]} : vector<3x2x32xf32> to vector<1x2x32xf32>
    %116 = vector.shape_cast %115 : vector<1x2x32xf32> to vector<2x32xf32>
    %117 = arith.addf %116, %103 : vector<2x32xf32>
    %118 = arith.negf %117 : vector<2x32xf32>
    %119 = math.exp %118 : vector<2x32xf32>
    %cst_44 = arith.constant 1.000000e+00 : f32
    %120 = vector.broadcast %cst_44 : f32 to vector<2x32xf32>
    %121 = arith.addf %120, %119 : vector<2x32xf32>
    %122 = arith.divf %120, %121 : vector<2x32xf32>
    %123 = vector.extract_strided_slice %101 {offsets = [2, 0, 0], sizes = [1, 2, 32], strides = [1, 1, 1]} : vector<3x2x32xf32> to vector<1x2x32xf32>
    %124 = vector.shape_cast %123 : vector<1x2x32xf32> to vector<2x32xf32>
    %125 = arith.mulf %114, %106 : vector<2x32xf32>
    %126 = arith.addf %124, %125 : vector<2x32xf32>
    %127 = math.tanh %126 : vector<2x32xf32>
    %cst_45 = arith.constant 1.000000e+00 : f32
    %128 = vector.broadcast %cst_45 : f32 to vector<2x32xf32>
    %129 = arith.subf %128, %122 : vector<2x32xf32>
    %130 = arith.mulf %129, %127 : vector<2x32xf32>
    %131 = arith.mulf %122, %99 : vector<2x32xf32>
    %132 = arith.addf %130, %131 : vector<2x32xf32>
    %c0_46 = arith.constant 0 : index
    %c2_47 = arith.constant 2 : index
    %c0_48 = arith.constant 0 : index
    %133 = vector.load %arg17[%c0_46, %c2_47, %c0_48] : memref<2x8x32xf32, #tpu.memory_space<vmem>>, vector<2x1x32xf32>
    %134 = vector.shape_cast %133 : vector<2x1x32xf32> to vector<2x32xf32>
    %135 = vector.shape_cast %132 : vector<2x32xf32> to vector<2x1x32xf32>
    tpu.vector_store %arg17[%c0_46, %c2_47, %c0_48], %135 {strides = array<i32>} : memref<2x8x32xf32, #tpu.memory_space<vmem>>, vector<2x1x32xf32>,
    %c2_i32 = arith.constant 2 : i32
    %136 = arith.addi %8, %c2_i32 : i32
    %137 = vector.broadcast %136 : i32 to vector<2x1xi32>
    %138 = arith.cmpi slt, %137, %7 : vector<2x1xi32>
    %139 = arith.extui %138 : vector<2x1xi1> to vector<2x1xi32>
    %140 = arith.sitofp %139 : vector<2x1xi32> to vector<2x1xf32>
    %141 = arith.subf %132, %99 : vector<2x32xf32>
    %142 = vector.broadcast %140 : vector<2x1xf32> to vector<2x32xf32>
    %143 = arith.mulf %142, %141 : vector<2x32xf32>
    %144 = arith.addf %99, %143 : vector<2x32xf32>
    %c3 = arith.constant 3 : index
    %c0_49 = arith.constant 0 : index
    %c0_50 = arith.constant 0 : index
    %c0_51 = arith.constant 0 : index
    %145 = vector.load %arg1[%c3, %c0_49, %c0_50, %c0_51] : memref<8x3x2x32xf32, #tpu.memory_space<vmem>>, vector<1x3x2x32xf32>
    %146 = vector.shape_cast %145 : vector<1x3x2x32xf32> to vector<3x2x32xf32>
    %cst_52 = arith.constant dense<0.000000e+00> : vector<2x32xf32>
    %147 = tpu.matmul %144, %3, %cst_52 {dimension_numbers = #tpu.dot_dimension_numbers<[1], [0], [0], [1], [0, 0, 1, 1], [], []>} : vector<2x32xf32>, vector<32x32xf32>, vector<2x32xf32> -> vector<2x32xf32>
    %cst_53 = arith.constant dense<0.000000e+00> : vector<2x32xf32>
    %148 = tpu.matmul %144, %4, %cst_53 {dimension_numbers = #tpu.dot_dimension_numbers<[1], [0], [0], [1], [0, 0, 1, 1], [], []>} : vector<2x32xf32>, vector<32x32xf32>, vector<2x32xf32> -> vector<2x32xf32>
    %cst_54 = arith.constant dense<0.000000e+00> : vector<2x32xf32>
    %149 = tpu.matmul %144, %5, %cst_54 {dimension_numbers = #tpu.dot_dimension_numbers<[1], [0], [0], [1], [0, 0, 1, 1], [], []>} : vector<2x32xf32>, vector<32x32xf32>, vector<2x32xf32> -> vector<2x32xf32>
    %150 = vector.broadcast %6 : vector<1x32xf32> to vector<2x32xf32>
    %151 = arith.addf %149, %150 : vector<2x32xf32>
    %152 = vector.extract_strided_slice %146 {offsets = [0, 0, 0], sizes = [1, 2, 32], strides = [1, 1, 1]} : vector<3x2x32xf32> to vector<1x2x32xf32>
    %153 = vector.shape_cast %152 : vector<1x2x32xf32> to vector<2x32xf32>
    %154 = arith.addf %153, %147 : vector<2x32xf32>
    %155 = arith.negf %154 : vector<2x32xf32>
    %156 = math.exp %155 : vector<2x32xf32>
    %cst_55 = arith.constant 1.000000e+00 : f32
    %157 = vector.broadcast %cst_55 : f32 to vector<2x32xf32>
    %158 = arith.addf %157, %156 : vector<2x32xf32>
    %159 = arith.divf %157, %158 : vector<2x32xf32>
    %160 = vector.extract_strided_slice %146 {offsets = [1, 0, 0], sizes = [1, 2, 32], strides = [1, 1, 1]} : vector<3x2x32xf32> to vector<1x2x32xf32>
    %161 = vector.shape_cast %160 : vector<1x2x32xf32> to vector<2x32xf32>
    %162 = arith.addf %161, %148 : vector<2x32xf32>
    %163 = arith.negf %162 : vector<2x32xf32>
    %164 = math.exp %163 : vector<2x32xf32>
    %cst_56 = arith.constant 1.000000e+00 : f32
    %165 = vector.broadcast %cst_56 : f32 to vector<2x32xf32>
    %166 = arith.addf %165, %164 : vector<2x32xf32>
    %167 = arith.divf %165, %166 : vector<2x32xf32>
    %168 = vector.extract_strided_slice %146 {offsets = [2, 0, 0], sizes = [1, 2, 32], strides = [1, 1, 1]} : vector<3x2x32xf32> to vector<1x2x32xf32>
    %169 = vector.shape_cast %168 : vector<1x2x32xf32> to vector<2x32xf32>
    %170 = arith.mulf %159, %151 : vector<2x32xf32>
    %171 = arith.addf %169, %170 : vector<2x32xf32>
    %172 = math.tanh %171 : vector<2x32xf32>
    %cst_57 = arith.constant 1.000000e+00 : f32
    %173 = vector.broadcast %cst_57 : f32 to vector<2x32xf32>
    %174 = arith.subf %173, %167 : vector<2x32xf32>
    %175 = arith.mulf %174, %172 : vector<2x32xf32>
    %176 = arith.mulf %167, %144 : vector<2x32xf32>
    %177 = arith.addf %175, %176 : vector<2x32xf32>
    %c0_58 = arith.constant 0 : index
    %c3_59 = arith.constant 3 : index
    %c0_60 = arith.constant 0 : index
    %178 = vector.load %arg17[%c0_58, %c3_59, %c0_60] : memref<2x8x32xf32, #tpu.memory_space<vmem>>, vector<2x1x32xf32>
    %179 = vector.shape_cast %178 : vector<2x1x32xf32> to vector<2x32xf32>
    %180 = vector.shape_cast %177 : vector<2x32xf32> to vector<2x1x32xf32>
    tpu.vector_store %arg17[%c0_58, %c3_59, %c0_60], %180 {strides = array<i32>} : memref<2x8x32xf32, #tpu.memory_space<vmem>>, vector<2x1x32xf32>,
    %c3_i32 = arith.constant 3 : i32
    %181 = arith.addi %8, %c3_i32 : i32
    %182 = vector.broadcast %181 : i32 to vector<2x1xi32>
    %183 = arith.cmpi slt, %182, %7 : vector<2x1xi32>
    %184 = arith.extui %183 : vector<2x1xi1> to vector<2x1xi32>
    %185 = arith.sitofp %184 : vector<2x1xi32> to vector<2x1xf32>
    %186 = arith.subf %177, %144 : vector<2x32xf32>
    %187 = vector.broadcast %185 : vector<2x1xf32> to vector<2x32xf32>
    %188 = arith.mulf %187, %186 : vector<2x32xf32>
    %189 = arith.addf %144, %188 : vector<2x32xf32>
    %c4 = arith.constant 4 : index
    %c0_61 = arith.constant 0 : index
    %c0_62 = arith.constant 0 : index
    %c0_63 = arith.constant 0 : index
    %190 = vector.load %arg1[%c4, %c0_61, %c0_62, %c0_63] : memref<8x3x2x32xf32, #tpu.memory_space<vmem>>, vector<1x3x2x32xf32>
    %191 = vector.shape_cast %190 : vector<1x3x2x32xf32> to vector<3x2x32xf32>
    %cst_64 = arith.constant dense<0.000000e+00> : vector<2x32xf32>
    %192 = tpu.matmul %189, %3, %cst_64 {dimension_numbers = #tpu.dot_dimension_numbers<[1], [0], [0], [1], [0, 0, 1, 1], [], []>} : vector<2x32xf32>, vector<32x32xf32>, vector<2x32xf32> -> vector<2x32xf32>
    %cst_65 = arith.constant dense<0.000000e+00> : vector<2x32xf32>
    %193 = tpu.matmul %189, %4, %cst_65 {dimension_numbers = #tpu.dot_dimension_numbers<[1], [0], [0], [1], [0, 0, 1, 1], [], []>} : vector<2x32xf32>, vector<32x32xf32>, vector<2x32xf32> -> vector<2x32xf32>
    %cst_66 = arith.constant dense<0.000000e+00> : vector<2x32xf32>
    %194 = tpu.matmul %189, %5, %cst_66 {dimension_numbers = #tpu.dot_dimension_numbers<[1], [0], [0], [1], [0, 0, 1, 1], [], []>} : vector<2x32xf32>, vector<32x32xf32>, vector<2x32xf32> -> vector<2x32xf32>
    %195 = vector.broadcast %6 : vector<1x32xf32> to vector<2x32xf32>
    %196 = arith.addf %194, %195 : vector<2x32xf32>
    %197 = vector.extract_strided_slice %191 {offsets = [0, 0, 0], sizes = [1, 2, 32], strides = [1, 1, 1]} : vector<3x2x32xf32> to vector<1x2x32xf32>
    %198 = vector.shape_cast %197 : vector<1x2x32xf32> to vector<2x32xf32>
    %199 = arith.addf %198, %192 : vector<2x32xf32>
    %200 = arith.negf %199 : vector<2x32xf32>
    %201 = math.exp %200 : vector<2x32xf32>
    %cst_67 = arith.constant 1.000000e+00 : f32
    %202 = vector.broadcast %cst_67 : f32 to vector<2x32xf32>
    %203 = arith.addf %202, %201 : vector<2x32xf32>
    %204 = arith.divf %202, %203 : vector<2x32xf32>
    %205 = vector.extract_strided_slice %191 {offsets = [1, 0, 0], sizes = [1, 2, 32], strides = [1, 1, 1]} : vector<3x2x32xf32> to vector<1x2x32xf32>
    %206 = vector.shape_cast %205 : vector<1x2x32xf32> to vector<2x32xf32>
    %207 = arith.addf %206, %193 : vector<2x32xf32>
    %208 = arith.negf %207 : vector<2x32xf32>
    %209 = math.exp %208 : vector<2x32xf32>
    %cst_68 = arith.constant 1.000000e+00 : f32
    %210 = vector.broadcast %cst_68 : f32 to vector<2x32xf32>
    %211 = arith.addf %210, %209 : vector<2x32xf32>
    %212 = arith.divf %210, %211 : vector<2x32xf32>
    %213 = vector.extract_strided_slice %191 {offsets = [2, 0, 0], sizes = [1, 2, 32], strides = [1, 1, 1]} : vector<3x2x32xf32> to vector<1x2x32xf32>
    %214 = vector.shape_cast %213 : vector<1x2x32xf32> to vector<2x32xf32>
    %215 = arith.mulf %204, %196 : vector<2x32xf32>
    %216 = arith.addf %214, %215 : vector<2x32xf32>
    %217 = math.tanh %216 : vector<2x32xf32>
    %cst_69 = arith.constant 1.000000e+00 : f32
    %218 = vector.broadcast %cst_69 : f32 to vector<2x32xf32>
    %219 = arith.subf %218, %212 : vector<2x32xf32>
    %220 = arith.mulf %219, %217 : vector<2x32xf32>
    %221 = arith.mulf %212, %189 : vector<2x32xf32>
    %222 = arith.addf %220, %221 : vector<2x32xf32>
    %c0_70 = arith.constant 0 : index
    %c4_71 = arith.constant 4 : index
    %c0_72 = arith.constant 0 : index
    %223 = vector.load %arg17[%c0_70, %c4_71, %c0_72] : memref<2x8x32xf32, #tpu.memory_space<vmem>>, vector<2x1x32xf32>
    %224 = vector.shape_cast %223 : vector<2x1x32xf32> to vector<2x32xf32>
    %225 = vector.shape_cast %222 : vector<2x32xf32> to vector<2x1x32xf32>
    tpu.vector_store %arg17[%c0_70, %c4_71, %c0_72], %225 {strides = array<i32>} : memref<2x8x32xf32, #tpu.memory_space<vmem>>, vector<2x1x32xf32>,
    %c4_i32 = arith.constant 4 : i32
    %226 = arith.addi %8, %c4_i32 : i32
    %227 = vector.broadcast %226 : i32 to vector<2x1xi32>
    %228 = arith.cmpi slt, %227, %7 : vector<2x1xi32>
    %229 = arith.extui %228 : vector<2x1xi1> to vector<2x1xi32>
    %230 = arith.sitofp %229 : vector<2x1xi32> to vector<2x1xf32>
    %231 = arith.subf %222, %189 : vector<2x32xf32>
    %232 = vector.broadcast %230 : vector<2x1xf32> to vector<2x32xf32>
    %233 = arith.mulf %232, %231 : vector<2x32xf32>
    %234 = arith.addf %189, %233 : vector<2x32xf32>
    %c5 = arith.constant 5 : index
    %c0_73 = arith.constant 0 : index
    %c0_74 = arith.constant 0 : index
    %c0_75 = arith.constant 0 : index
    %235 = vector.load %arg1[%c5, %c0_73, %c0_74, %c0_75] : memref<8x3x2x32xf32, #tpu.memory_space<vmem>>, vector<1x3x2x32xf32>
    %236 = vector.shape_cast %235 : vector<1x3x2x32xf32> to vector<3x2x32xf32>
    %cst_76 = arith.constant dense<0.000000e+00> : vector<2x32xf32>
    %237 = tpu.matmul %234, %3, %cst_76 {dimension_numbers = #tpu.dot_dimension_numbers<[1], [0], [0], [1], [0, 0, 1, 1], [], []>} : vector<2x32xf32>, vector<32x32xf32>, vector<2x32xf32> -> vector<2x32xf32>
    %cst_77 = arith.constant dense<0.000000e+00> : vector<2x32xf32>
    %238 = tpu.matmul %234, %4, %cst_77 {dimension_numbers = #tpu.dot_dimension_numbers<[1], [0], [0], [1], [0, 0, 1, 1], [], []>} : vector<2x32xf32>, vector<32x32xf32>, vector<2x32xf32> -> vector<2x32xf32>
    %cst_78 = arith.constant dense<0.000000e+00> : vector<2x32xf32>
    %239 = tpu.matmul %234, %5, %cst_78 {dimension_numbers = #tpu.dot_dimension_numbers<[1], [0], [0], [1], [0, 0, 1, 1], [], []>} : vector<2x32xf32>, vector<32x32xf32>, vector<2x32xf32> -> vector<2x32xf32>
    %240 = vector.broadcast %6 : vector<1x32xf32> to vector<2x32xf32>
    %241 = arith.addf %239, %240 : vector<2x32xf32>
    %242 = vector.extract_strided_slice %236 {offsets = [0, 0, 0], sizes = [1, 2, 32], strides = [1, 1, 1]} : vector<3x2x32xf32> to vector<1x2x32xf32>
    %243 = vector.shape_cast %242 : vector<1x2x32xf32> to vector<2x32xf32>
    %244 = arith.addf %243, %237 : vector<2x32xf32>
    %245 = arith.negf %244 : vector<2x32xf32>
    %246 = math.exp %245 : vector<2x32xf32>
    %cst_79 = arith.constant 1.000000e+00 : f32
    %247 = vector.broadcast %cst_79 : f32 to vector<2x32xf32>
    %248 = arith.addf %247, %246 : vector<2x32xf32>
    %249 = arith.divf %247, %248 : vector<2x32xf32>
    %250 = vector.extract_strided_slice %236 {offsets = [1, 0, 0], sizes = [1, 2, 32], strides = [1, 1, 1]} : vector<3x2x32xf32> to vector<1x2x32xf32>
    %251 = vector.shape_cast %250 : vector<1x2x32xf32> to vector<2x32xf32>
    %252 = arith.addf %251, %238 : vector<2x32xf32>
    %253 = arith.negf %252 : vector<2x32xf32>
    %254 = math.exp %253 : vector<2x32xf32>
    %cst_80 = arith.constant 1.000000e+00 : f32
    %255 = vector.broadcast %cst_80 : f32 to vector<2x32xf32>
    %256 = arith.addf %255, %254 : vector<2x32xf32>
    %257 = arith.divf %255, %256 : vector<2x32xf32>
    %258 = vector.extract_strided_slice %236 {offsets = [2, 0, 0], sizes = [1, 2, 32], strides = [1, 1, 1]} : vector<3x2x32xf32> to vector<1x2x32xf32>
    %259 = vector.shape_cast %258 : vector<1x2x32xf32> to vector<2x32xf32>
    %260 = arith.mulf %249, %241 : vector<2x32xf32>
    %261 = arith.addf %259, %260 : vector<2x32xf32>
    %262 = math.tanh %261 : vector<2x32xf32>
    %cst_81 = arith.constant 1.000000e+00 : f32
    %263 = vector.broadcast %cst_81 : f32 to vector<2x32xf32>
    %264 = arith.subf %263, %257 : vector<2x32xf32>
    %265 = arith.mulf %264, %262 : vector<2x32xf32>
    %266 = arith.mulf %257, %234 : vector<2x32xf32>
    %267 = arith.addf %265, %266 : vector<2x32xf32>
    %c0_82 = arith.constant 0 : index
    %c5_83 = arith.constant 5 : index
    %c0_84 = arith.constant 0 : index
    %268 = vector.load %arg17[%c0_82, %c5_83, %c0_84] : memref<2x8x32xf32, #tpu.memory_space<vmem>>, vector<2x1x32xf32>
    %269 = vector.shape_cast %268 : vector<2x1x32xf32> to vector<2x32xf32>
    %270 = vector.shape_cast %267 : vector<2x32xf32> to vector<2x1x32xf32>
    tpu.vector_store %arg17[%c0_82, %c5_83, %c0_84], %270 {strides = array<i32>} : memref<2x8x32xf32, #tpu.memory_space<vmem>>, vector<2x1x32xf32>,
    %c5_i32 = arith.constant 5 : i32
    %271 = arith.addi %8, %c5_i32 : i32
    %272 = vector.broadcast %271 : i32 to vector<2x1xi32>
    %273 = arith.cmpi slt, %272, %7 : vector<2x1xi32>
    %274 = arith.extui %273 : vector<2x1xi1> to vector<2x1xi32>
    %275 = arith.sitofp %274 : vector<2x1xi32> to vector<2x1xf32>
    %276 = arith.subf %267, %234 : vector<2x32xf32>
    %277 = vector.broadcast %275 : vector<2x1xf32> to vector<2x32xf32>
    %278 = arith.mulf %277, %276 : vector<2x32xf32>
    %279 = arith.addf %234, %278 : vector<2x32xf32>
    %c6 = arith.constant 6 : index
    %c0_85 = arith.constant 0 : index
    %c0_86 = arith.constant 0 : index
    %c0_87 = arith.constant 0 : index
    %280 = vector.load %arg1[%c6, %c0_85, %c0_86, %c0_87] : memref<8x3x2x32xf32, #tpu.memory_space<vmem>>, vector<1x3x2x32xf32>
    %281 = vector.shape_cast %280 : vector<1x3x2x32xf32> to vector<3x2x32xf32>
    %cst_88 = arith.constant dense<0.000000e+00> : vector<2x32xf32>
    %282 = tpu.matmul %279, %3, %cst_88 {dimension_numbers = #tpu.dot_dimension_numbers<[1], [0], [0], [1], [0, 0, 1, 1], [], []>} : vector<2x32xf32>, vector<32x32xf32>, vector<2x32xf32> -> vector<2x32xf32>
    %cst_89 = arith.constant dense<0.000000e+00> : vector<2x32xf32>
    %283 = tpu.matmul %279, %4, %cst_89 {dimension_numbers = #tpu.dot_dimension_numbers<[1], [0], [0], [1], [0, 0, 1, 1], [], []>} : vector<2x32xf32>, vector<32x32xf32>, vector<2x32xf32> -> vector<2x32xf32>
    %cst_90 = arith.constant dense<0.000000e+00> : vector<2x32xf32>
    %284 = tpu.matmul %279, %5, %cst_90 {dimension_numbers = #tpu.dot_dimension_numbers<[1], [0], [0], [1], [0, 0, 1, 1], [], []>} : vector<2x32xf32>, vector<32x32xf32>, vector<2x32xf32> -> vector<2x32xf32>
    %285 = vector.broadcast %6 : vector<1x32xf32> to vector<2x32xf32>
    %286 = arith.addf %284, %285 : vector<2x32xf32>
    %287 = vector.extract_strided_slice %281 {offsets = [0, 0, 0], sizes = [1, 2, 32], strides = [1, 1, 1]} : vector<3x2x32xf32> to vector<1x2x32xf32>
    %288 = vector.shape_cast %287 : vector<1x2x32xf32> to vector<2x32xf32>
    %289 = arith.addf %288, %282 : vector<2x32xf32>
    %290 = arith.negf %289 : vector<2x32xf32>
    %291 = math.exp %290 : vector<2x32xf32>
    %cst_91 = arith.constant 1.000000e+00 : f32
    %292 = vector.broadcast %cst_91 : f32 to vector<2x32xf32>
    %293 = arith.addf %292, %291 : vector<2x32xf32>
    %294 = arith.divf %292, %293 : vector<2x32xf32>
    %295 = vector.extract_strided_slice %281 {offsets = [1, 0, 0], sizes = [1, 2, 32], strides = [1, 1, 1]} : vector<3x2x32xf32> to vector<1x2x32xf32>
    %296 = vector.shape_cast %295 : vector<1x2x32xf32> to vector<2x32xf32>
    %297 = arith.addf %296, %283 : vector<2x32xf32>
    %298 = arith.negf %297 : vector<2x32xf32>
    %299 = math.exp %298 : vector<2x32xf32>
    %cst_92 = arith.constant 1.000000e+00 : f32
    %300 = vector.broadcast %cst_92 : f32 to vector<2x32xf32>
    %301 = arith.addf %300, %299 : vector<2x32xf32>
    %302 = arith.divf %300, %301 : vector<2x32xf32>
    %303 = vector.extract_strided_slice %281 {offsets = [2, 0, 0], sizes = [1, 2, 32], strides = [1, 1, 1]} : vector<3x2x32xf32> to vector<1x2x32xf32>
    %304 = vector.shape_cast %303 : vector<1x2x32xf32> to vector<2x32xf32>
    %305 = arith.mulf %294, %286 : vector<2x32xf32>
    %306 = arith.addf %304, %305 : vector<2x32xf32>
    %307 = math.tanh %306 : vector<2x32xf32>
    %cst_93 = arith.constant 1.000000e+00 : f32
    %308 = vector.broadcast %cst_93 : f32 to vector<2x32xf32>
    %309 = arith.subf %308, %302 : vector<2x32xf32>
    %310 = arith.mulf %309, %307 : vector<2x32xf32>
    %311 = arith.mulf %302, %279 : vector<2x32xf32>
    %312 = arith.addf %310, %311 : vector<2x32xf32>
    %c0_94 = arith.constant 0 : index
    %c6_95 = arith.constant 6 : index
    %c0_96 = arith.constant 0 : index
    %313 = vector.load %arg17[%c0_94, %c6_95, %c0_96] : memref<2x8x32xf32, #tpu.memory_space<vmem>>, vector<2x1x32xf32>
    %314 = vector.shape_cast %313 : vector<2x1x32xf32> to vector<2x32xf32>
    %315 = vector.shape_cast %312 : vector<2x32xf32> to vector<2x1x32xf32>
    tpu.vector_store %arg17[%c0_94, %c6_95, %c0_96], %315 {strides = array<i32>} : memref<2x8x32xf32, #tpu.memory_space<vmem>>, vector<2x1x32xf32>,
    %c6_i32 = arith.constant 6 : i32
    %316 = arith.addi %8, %c6_i32 : i32
    %317 = vector.broadcast %316 : i32 to vector<2x1xi32>
    %318 = arith.cmpi slt, %317, %7 : vector<2x1xi32>
    %319 = arith.extui %318 : vector<2x1xi1> to vector<2x1xi32>
    %320 = arith.sitofp %319 : vector<2x1xi32> to vector<2x1xf32>
    %321 = arith.subf %312, %279 : vector<2x32xf32>
    %322 = vector.broadcast %320 : vector<2x1xf32> to vector<2x32xf32>
    %323 = arith.mulf %322, %321 : vector<2x32xf32>
    %324 = arith.addf %279, %323 : vector<2x32xf32>
    %c7 = arith.constant 7 : index
    %c0_97 = arith.constant 0 : index
    %c0_98 = arith.constant 0 : index
    %c0_99 = arith.constant 0 : index
    %325 = vector.load %arg1[%c7, %c0_97, %c0_98, %c0_99] : memref<8x3x2x32xf32, #tpu.memory_space<vmem>>, vector<1x3x2x32xf32>
    %326 = vector.shape_cast %325 : vector<1x3x2x32xf32> to vector<3x2x32xf32>
    %cst_100 = arith.constant dense<0.000000e+00> : vector<2x32xf32>
    %327 = tpu.matmul %324, %3, %cst_100 {dimension_numbers = #tpu.dot_dimension_numbers<[1], [0], [0], [1], [0, 0, 1, 1], [], []>} : vector<2x32xf32>, vector<32x32xf32>, vector<2x32xf32> -> vector<2x32xf32>
    %cst_101 = arith.constant dense<0.000000e+00> : vector<2x32xf32>
    %328 = tpu.matmul %324, %4, %cst_101 {dimension_numbers = #tpu.dot_dimension_numbers<[1], [0], [0], [1], [0, 0, 1, 1], [], []>} : vector<2x32xf32>, vector<32x32xf32>, vector<2x32xf32> -> vector<2x32xf32>
    %cst_102 = arith.constant dense<0.000000e+00> : vector<2x32xf32>
    %329 = tpu.matmul %324, %5, %cst_102 {dimension_numbers = #tpu.dot_dimension_numbers<[1], [0], [0], [1], [0, 0, 1, 1], [], []>} : vector<2x32xf32>, vector<32x32xf32>, vector<2x32xf32> -> vector<2x32xf32>
    %330 = vector.broadcast %6 : vector<1x32xf32> to vector<2x32xf32>
    %331 = arith.addf %329, %330 : vector<2x32xf32>
    %332 = vector.extract_strided_slice %326 {offsets = [0, 0, 0], sizes = [1, 2, 32], strides = [1, 1, 1]} : vector<3x2x32xf32> to vector<1x2x32xf32>
    %333 = vector.shape_cast %332 : vector<1x2x32xf32> to vector<2x32xf32>
    %334 = arith.addf %333, %327 : vector<2x32xf32>
    %335 = arith.negf %334 : vector<2x32xf32>
    %336 = math.exp %335 : vector<2x32xf32>
    %cst_103 = arith.constant 1.000000e+00 : f32
    %337 = vector.broadcast %cst_103 : f32 to vector<2x32xf32>
    %338 = arith.addf %337, %336 : vector<2x32xf32>
    %339 = arith.divf %337, %338 : vector<2x32xf32>
    %340 = vector.extract_strided_slice %326 {offsets = [1, 0, 0], sizes = [1, 2, 32], strides = [1, 1, 1]} : vector<3x2x32xf32> to vector<1x2x32xf32>
    %341 = vector.shape_cast %340 : vector<1x2x32xf32> to vector<2x32xf32>
    %342 = arith.addf %341, %328 : vector<2x32xf32>
    %343 = arith.negf %342 : vector<2x32xf32>
    %344 = math.exp %343 : vector<2x32xf32>
    %cst_104 = arith.constant 1.000000e+00 : f32
    %345 = vector.broadcast %cst_104 : f32 to vector<2x32xf32>
    %346 = arith.addf %345, %344 : vector<2x32xf32>
    %347 = arith.divf %345, %346 : vector<2x32xf32>
    %348 = vector.extract_strided_slice %326 {offsets = [2, 0, 0], sizes = [1, 2, 32], strides = [1, 1, 1]} : vector<3x2x32xf32> to vector<1x2x32xf32>
    %349 = vector.shape_cast %348 : vector<1x2x32xf32> to vector<2x32xf32>
    %350 = arith.mulf %339, %331 : vector<2x32xf32>
    %351 = arith.addf %349, %350 : vector<2x32xf32>
    %352 = math.tanh %351 : vector<2x32xf32>
    %cst_105 = arith.constant 1.000000e+00 : f32
    %353 = vector.broadcast %cst_105 : f32 to vector<2x32xf32>
    %354 = arith.subf %353, %347 : vector<2x32xf32>
    %355 = arith.mulf %354, %352 : vector<2x32xf32>
    %356 = arith.mulf %347, %324 : vector<2x32xf32>
    %357 = arith.addf %355, %356 : vector<2x32xf32>
    %c0_106 = arith.constant 0 : index
    %c7_107 = arith.constant 7 : index
    %c0_108 = arith.constant 0 : index
    %358 = vector.load %arg17[%c0_106, %c7_107, %c0_108] : memref<2x8x32xf32, #tpu.memory_space<vmem>>, vector<2x1x32xf32>
    %359 = vector.shape_cast %358 : vector<2x1x32xf32> to vector<2x32xf32>
    %360 = vector.shape_cast %357 : vector<2x32xf32> to vector<2x1x32xf32>
    tpu.vector_store %arg17[%c0_106, %c7_107, %c0_108], %360 {strides = array<i32>} : memref<2x8x32xf32, #tpu.memory_space<vmem>>, vector<2x1x32xf32>,
    %c7_i32 = arith.constant 7 : i32
    %361 = arith.addi %8, %c7_i32 : i32
    %362 = vector.broadcast %361 : i32 to vector<2x1xi32>
    %363 = arith.cmpi slt, %362, %7 : vector<2x1xi32>
    %364 = arith.extui %363 : vector<2x1xi1> to vector<2x1xi32>
    %365 = arith.sitofp %364 : vector<2x1xi32> to vector<2x1xf32>
    %366 = arith.subf %357, %324 : vector<2x32xf32>
    %367 = vector.broadcast %365 : vector<2x1xf32> to vector<2x32xf32>
    %368 = arith.mulf %367, %366 : vector<2x32xf32>
    %369 = arith.addf %324, %368 : vector<2x32xf32>
    %c0_109 = arith.constant 0 : index
    %c0_110 = arith.constant 0 : index
    %370 = vector.load %arg16[%c0_109, %c0_110] : memref<2x32xf32, #tpu.memory_space<vmem>>, vector<2x32xf32>
    tpu.vector_store %arg16[%c0_109, %c0_110], %369 {strides = array<i32>} : memref<2x32xf32, #tpu.memory_space<vmem>>, vector<2x32xf32>,
    %c0_111 = arith.constant 0 : index
    %c0_112 = arith.constant 0 : index
    %c0_113 = arith.constant 0 : index
    %371 = vector.load %arg3[%c0_111, %c0_112, %c0_113] : memref<2x8x32xf32, #tpu.memory_space<vmem>>, vector<2x8x32xf32>
    %c0_114 = arith.constant 0 : index
    %c0_115 = arith.constant 0 : index
    %c0_116 = arith.constant 0 : index
    %372 = vector.load %arg4[%c0_114, %c0_115, %c0_116] : memref<2x1x8xf32, #tpu.memory_space<vmem>>, vector<2x1x8xf32>
    %c0_117 = arith.constant 0 : index
    %c0_118 = arith.constant 0 : index
    %c0_119 = arith.constant 0 : index
    %373 = vector.load %arg17[%c0_117, %c0_118, %c0_119] : memref<2x8x32xf32, #tpu.memory_space<vmem>>, vector<2x8x32xf32>
    "tpu.trace_start"() <{level = 10 : i32, message = "bth,bsh->bts"}> : () -> ()
    %cst_120 = arith.constant dense<0.000000e+00> : vector<2x8x8xf32>
    %374 = tpu.matmul %373, %371, %cst_120 {dimension_numbers = #tpu.dot_dimension_numbers<[2], [2], [1], [1], [0, 0, 0, 1, 1, 1], [0], [0]>} : vector<2x8x32xf32>, vector<2x8x32xf32>, vector<2x8x8xf32> -> vector<2x8x8xf32>
    "tpu.trace_stop"() : () -> ()
    %375 = vector.broadcast %372 : vector<2x1x8xf32> to vector<2x8x8xf32>
    %376 = arith.addf %374, %375 : vector<2x8x8xf32>
    %cst_121 = arith.constant dense<0xFF800000> : vector<2x8xf32>
    %377 = vector.multi_reduction <maximumf>, %376, %cst_121 [2] : vector<2x8x8xf32> to vector<2x8xf32>
    %378 = vector.shape_cast %377 : vector<2x8xf32> to vector<2x8x1xf32>
    %379 = vector.broadcast %378 : vector<2x8x1xf32> to vector<2x8x8xf32>
    %380 = arith.subf %376, %379 : vector<2x8x8xf32>
    %381 = math.exp %380 : vector<2x8x8xf32>
    %cst_122 = arith.constant dense<0.000000e+00> : vector<2x8xf32>
    %382 = vector.multi_reduction <add>, %381, %cst_122 [2] : vector<2x8x8xf32> to vector<2x8xf32>
    %383 = vector.shape_cast %382 : vector<2x8xf32> to vector<2x8x1xf32>
    %384 = vector.broadcast %383 : vector<2x8x1xf32> to vector<2x8x8xf32>
    %385 = arith.divf %381, %384 : vector<2x8x8xf32>
    "tpu.trace_start"() <{level = 10 : i32, message = "bts,bsh->bth"}> : () -> ()
    %cst_123 = arith.constant dense<0.000000e+00> : vector<2x8x32xf32>
    %386 = tpu.matmul %385, %371, %cst_123 {dimension_numbers = #tpu.dot_dimension_numbers<[2], [1], [1], [2], [0, 0, 0, 1, 1, 2], [0], [0]>} : vector<2x8x8xf32>, vector<2x8x32xf32>, vector<2x8x32xf32> -> vector<2x8x32xf32>
    "tpu.trace_stop"() : () -> ()
    %387 = vector.shape_cast %373 : vector<2x8x32xf32> to vector<16x32xf32>
    %388 = vector.shape_cast %386 : vector<2x8x32xf32> to vector<16x32xf32>
    %c0_124 = arith.constant 0 : index
    %c0_125 = arith.constant 0 : index
    %389 = vector.load %arg10[%c0_124, %c0_125] : memref<32x32xf32, #tpu.memory_space<vmem>>, vector<32x32xf32>
    %cst_126 = arith.constant dense<0.000000e+00> : vector<16x32xf32>
    %390 = tpu.matmul %388, %389, %cst_126 {dimension_numbers = #tpu.dot_dimension_numbers<[1], [0], [0], [1], [0, 0, 1, 1], [], []>} : vector<16x32xf32>, vector<32x32xf32>, vector<16x32xf32> -> vector<16x32xf32>
    %c0_127 = arith.constant 0 : index
    %c0_128 = arith.constant 0 : index
    %391 = vector.load %arg11[%c0_127, %c0_128] : memref<32x32xf32, #tpu.memory_space<vmem>>, vector<32x32xf32>
    %cst_129 = arith.constant dense<0.000000e+00> : vector<16x32xf32>
    %392 = tpu.matmul %387, %391, %cst_129 {dimension_numbers = #tpu.dot_dimension_numbers<[1], [0], [0], [1], [0, 0, 1, 1], [], []>} : vector<16x32xf32>, vector<32x32xf32>, vector<16x32xf32> -> vector<16x32xf32>
    %393 = arith.addf %390, %392 : vector<16x32xf32>
    %c0_130 = arith.constant 0 : index
    %c0_131 = arith.constant 0 : index
    %394 = vector.load %arg12[%c0_130, %c0_131] : memref<1x32xf32, #tpu.memory_space<vmem>>, vector<1x32xf32>
    %395 = vector.broadcast %394 : vector<1x32xf32> to vector<16x32xf32>
    %396 = arith.addf %393, %395 : vector<16x32xf32>
    %397 = math.tanh %396 : vector<16x32xf32>
    %c0_132 = arith.constant 0 : index
    %c0_133 = arith.constant 0 : index
    %398 = vector.load %arg13[%c0_132, %c0_133] : memref<32x16xf32, #tpu.memory_space<vmem>>, vector<32x16xf32>
    %cst_134 = arith.constant dense<0.000000e+00> : vector<16x16xf32>
    %399 = tpu.matmul %397, %398, %cst_134 {dimension_numbers = #tpu.dot_dimension_numbers<[1], [0], [0], [1], [0, 0, 1, 1], [], []>} : vector<16x32xf32>, vector<32x16xf32>, vector<16x16xf32> -> vector<16x16xf32>
    %c0_135 = arith.constant 0 : index
    %c0_136 = arith.constant 0 : index
    %400 = vector.load %arg14[%c0_135, %c0_136] : memref<1x16xf32, #tpu.memory_space<vmem>>, vector<1x16xf32>
    %401 = vector.broadcast %400 : vector<1x16xf32> to vector<16x16xf32>
    %402 = arith.addf %399, %401 : vector<16x16xf32>
    %cst_137 = arith.constant dense<0xFF800000> : vector<16xf32>
    %403 = vector.multi_reduction <maximumf>, %402, %cst_137 [1] : vector<16x16xf32> to vector<16xf32>
    %404 = vector.shape_cast %403 : vector<16xf32> to vector<16x1xf32>
    %405 = vector.broadcast %404 : vector<16x1xf32> to vector<16x16xf32>
    %406 = arith.subf %402, %405 : vector<16x16xf32>
    %407 = math.exp %406 : vector<16x16xf32>
    %cst_138 = arith.constant dense<0.000000e+00> : vector<16xf32>
    %408 = vector.multi_reduction <add>, %407, %cst_138 [1] : vector<16x16xf32> to vector<16xf32>
    %409 = vector.shape_cast %408 : vector<16xf32> to vector<16x1xf32>
    %410 = math.log %409 : vector<16x1xf32>
    %411 = vector.broadcast %410 : vector<16x1xf32> to vector<16x16xf32>
    %412 = arith.subf %406, %411 : vector<16x16xf32>
    %413 = vector.shape_cast %412 : vector<16x16xf32> to vector<2x8x16xf32>
    %c0_139 = arith.constant 0 : index
    %c0_140 = arith.constant 0 : index
    %c0_141 = arith.constant 0 : index
    %414 = vector.load %arg15[%c0_139, %c0_140, %c0_141] : memref<2x8x16xf32, #tpu.memory_space<vmem>>, vector<2x8x16xf32>
    tpu.vector_store %arg15[%c0_139, %c0_140, %c0_141], %413 {strides = array<i32>} : memref<2x8x16xf32, #tpu.memory_space<vmem>>, vector<2x8x16xf32>,
    return
  }
  func.func @transform_0(%arg0: i32) -> (i32, i32, i32, i32) {
    %c0_i32 = arith.constant 0 : i32
    %c0_i32_0 = arith.constant 0 : i32
    %c0_i32_1 = arith.constant 0 : i32
    %c0_i32_2 = arith.constant 0 : i32
    return %arg0, %c0_i32, %c0_i32_0, %c0_i32_1 : i32, i32, i32, i32
  }
  func.func @transform_1(%arg0: i32) -> (i32, i32) {
    %c0_i32 = arith.constant 0 : i32
    %c0_i32_0 = arith.constant 0 : i32
    %c0_i32_1 = arith.constant 0 : i32
    return %c0_i32, %c0_i32_0 : i32, i32
  }
  func.func @transform_2(%arg0: i32) -> (i32, i32, i32) {
    %c0_i32 = arith.constant 0 : i32
    %c0_i32_0 = arith.constant 0 : i32
    %c0_i32_1 = arith.constant 0 : i32
    %c0_i32_2 = arith.constant 0 : i32
    return %c0_i32, %c0_i32_0, %c0_i32_1 : i32, i32, i32
  }
  func.func @transform_3(%arg0: i32) -> (i32, i32, i32) {
    %c0_i32 = arith.constant 0 : i32
    %c0_i32_0 = arith.constant 0 : i32
    %c0_i32_1 = arith.constant 0 : i32
    %c0_i32_2 = arith.constant 0 : i32
    return %c0_i32, %c0_i32_0, %c0_i32_1 : i32, i32, i32
  }
  func.func @transform_4(%arg0: i32) -> (i32, i32) {
    %c0_i32 = arith.constant 0 : i32
    %c0_i32_0 = arith.constant 0 : i32
    %c0_i32_1 = arith.constant 0 : i32
    return %c0_i32, %c0_i32_0 : i32, i32
  }
  func.func @transform_5(%arg0: i32) -> (i32, i32) {
    %c0_i32 = arith.constant 0 : i32
    %c0_i32_0 = arith.constant 0 : i32
    %c0_i32_1 = arith.constant 0 : i32
    return %c0_i32, %c0_i32_0 : i32, i32
  }
  func.func @transform_6(%arg0: i32) -> (i32, i32) {
    %c0_i32 = arith.constant 0 : i32
    %c0_i32_0 = arith.constant 0 : i32
    %c0_i32_1 = arith.constant 0 : i32
    return %c0_i32, %c0_i32_0 : i32, i32
  }
  func.func @transform_7(%arg0: i32) -> (i32, i32) {
    %c0_i32 = arith.constant 0 : i32
    %c0_i32_0 = arith.constant 0 : i32
    %c0_i32_1 = arith.constant 0 : i32
    return %c0_i32, %c0_i32_0 : i32, i32
  }
  func.func @transform_8(%arg0: i32) -> (i32, i32) {
    %c0_i32 = arith.constant 0 : i32
    %c0_i32_0 = arith.constant 0 : i32
    %c0_i32_1 = arith.constant 0 : i32
    return %c0_i32, %c0_i32_0 : i32, i32
  }
  func.func @transform_9(%arg0: i32) -> (i32, i32) {
    %c0_i32 = arith.constant 0 : i32
    %c0_i32_0 = arith.constant 0 : i32
    %c0_i32_1 = arith.constant 0 : i32
    return %c0_i32, %c0_i32_0 : i32, i32
  }
  func.func @transform_10(%arg0: i32) -> (i32, i32) {
    %c0_i32 = arith.constant 0 : i32
    %c0_i32_0 = arith.constant 0 : i32
    %c0_i32_1 = arith.constant 0 : i32
    return %c0_i32, %c0_i32_0 : i32, i32
  }
  func.func @transform_11(%arg0: i32) -> (i32, i32) {
    %c0_i32 = arith.constant 0 : i32
    %c0_i32_0 = arith.constant 0 : i32
    %c0_i32_1 = arith.constant 0 : i32
    return %c0_i32, %c0_i32_0 : i32, i32
  }
  func.func @transform_12(%arg0: i32) -> (i32, i32) {
    %c0_i32 = arith.constant 0 : i32
    %c0_i32_0 = arith.constant 0 : i32
    %c0_i32_1 = arith.constant 0 : i32
    return %c0_i32, %c0_i32_0 : i32, i32
  }
  func.func @transform_13(%arg0: i32) -> (i32, i32) {
    %c0_i32 = arith.constant 0 : i32
    %c0_i32_0 = arith.constant 0 : i32
    %c0_i32_1 = arith.constant 0 : i32
    return %c0_i32, %c0_i32_0 : i32, i32
  }
  func.func @transform_14(%arg0: i32) -> (i32, i32, i32) {
    %c0_i32 = arith.constant 0 : i32
    %c0_i32_0 = arith.constant 0 : i32
    %c0_i32_1 = arith.constant 0 : i32
    return %c0_i32, %arg0, %c0_i32_0 : i32, i32, i32
  }
}

module attributes {stable_mosaic.version = 11 : i64} {
  func.func @decoder_kernel(%arg0: i32, %arg1: memref<8x3x2x32xf32, #tpu.memory_space<vmem>>, %arg2: memref<2x32xf32, #tpu.memory_space<vmem>>, %arg3: memref<2x8x32xf32, #tpu.memory_space<vmem>>, %arg4: memref<2x1x8xf32, #tpu.memory_space<vmem>>, %arg5: memref<2x1xi32, #tpu.memory_space<vmem>>, %arg6: memref<32x32xf32, #tpu.memory_space<vmem>>, %arg7: memref<32x32xf32, #tpu.memory_space<vmem>>, %arg8: memref<32x32xf32, #tpu.memory_space<vmem>>, %arg9: memref<1x32xf32, #tpu.memory_space<vmem>>, %arg10: memref<32x32xf32, #tpu.memory_space<vmem>>, %arg11: memref<32x32xf32, #tpu.memory_space<vmem>>, %arg12: memref<1x32xf32, #tpu.memory_space<vmem>>, %arg13: memref<32x16xf32, #tpu.memory_space<vmem>>, %arg14: memref<1x16xf32, #tpu.memory_space<vmem>>, %arg15: memref<2x8x16xf32, #tpu.memory_space<vmem>>, %arg16: memref<2x32xf32, #tpu.memory_space<vmem>>, %arg17: memref<2x8x32xf32, #tpu.memory_space<vmem>>) attributes {dimension_semantics = [#tpu.dimension_semantics<arbitrary>], iteration_bounds = array<i64: 1>, scalar_prefetch = 0 : i64, scratch_operands = 2 : i64, tpu.core_type = #tpu.core_type<tc>, window_params = [{transform_indices = @transform_0, window_bounds = array<i64: 8, 3, 2, 32>}, {pipeline_mode = #tpu.pipeline_mode<synchronous>, transform_indices = @transform_1, window_bounds = array<i64: 2, 32>}, {pipeline_mode = #tpu.pipeline_mode<synchronous>, transform_indices = @transform_2, window_bounds = array<i64: 2, 8, 32>}, {pipeline_mode = #tpu.pipeline_mode<synchronous>, transform_indices = @transform_3, window_bounds = array<i64: 2, 1, 8>}, {pipeline_mode = #tpu.pipeline_mode<synchronous>, transform_indices = @transform_4, window_bounds = array<i64: 2, 1>}, {pipeline_mode = #tpu.pipeline_mode<synchronous>, transform_indices = @transform_5, window_bounds = array<i64: 32, 32>}, {pipeline_mode = #tpu.pipeline_mode<synchronous>, transform_indices = @transform_6, window_bounds = array<i64: 32, 32>}, {pipeline_mode = #tpu.pipeline_mode<synchronous>, transform_indices = @transform_7, window_bounds = array<i64: 32, 32>}, {pipeline_mode = #tpu.pipeline_mode<synchronous>, transform_indices = @transform_8, window_bounds = array<i64: 1, 32>}, {pipeline_mode = #tpu.pipeline_mode<synchronous>, transform_indices = @transform_9, window_bounds = array<i64: 32, 32>}, {pipeline_mode = #tpu.pipeline_mode<synchronous>, transform_indices = @transform_10, window_bounds = array<i64: 32, 32>}, {pipeline_mode = #tpu.pipeline_mode<synchronous>, transform_indices = @transform_11, window_bounds = array<i64: 1, 32>}, {pipeline_mode = #tpu.pipeline_mode<synchronous>, transform_indices = @transform_12, window_bounds = array<i64: 32, 16>}, {pipeline_mode = #tpu.pipeline_mode<synchronous>, transform_indices = @transform_13, window_bounds = array<i64: 1, 16>}, {transform_indices = @transform_14, window_bounds = array<i64: 2, 8, 16>}]} {
    %c0_i32 = arith.constant 0 : i32
    %0 = arith.cmpi eq, %arg0, %c0_i32 : i32
    %1 = arith.extui %0 : i1 to i32
    %c0_i32_0 = arith.constant 0 : i32
    %2 = arith.cmpi ne, %1, %c0_i32_0 : i32
    scf.if %2 {
      %c0_142 = arith.constant 0 : index
      %c0_143 = arith.constant 0 : index
      %415 = vector.load %arg2[%c0_142, %c0_143] : memref<2x32xf32, #tpu.memory_space<vmem>>, vector<2x32xf32>
      %c0_144 = arith.constant 0 : index
      %c0_145 = arith.constant 0 : index
      %416 = vector.load %arg16[%c0_144, %c0_145] : memref<2x32xf32, #tpu.memory_space<vmem>>, vector<2x32xf32>
      tpu.vector_store %arg16[%c0_144, %c0_145], %415 {strides = array<i32>} : memref<2x32xf32, #tpu.memory_space<vmem>>, vector<2x32xf32>,
    } else {
    }
    %c0 = arith.constant 0 : index
    %c0_1 = arith.constant 0 : index
    %3 = vector.load %arg6[%c0, %c0_1] : memref<32x32xf32, #tpu.memory_space<vmem>>, vector<32x32xf32>
    %c0_2 = arith.constant 0 : index
    %c0_3 = arith.constant 0 : index
    %4 = vector.load %arg7[%c0_2, %c0_3] : memref<32x32xf32, #tpu.memory_space<vmem>>, vector<32x32xf32>
    %c0_4 = arith.constant 0 : index
    %c0_5 = arith.constant 0 : index
    %5 = vector.load %arg8[%c0_4, %c0_5] : memref<32x32xf32, #tpu.memory_space<vmem>>, vector<32x32xf32>
    %c0_6 = arith.constant 0 : index
    %c0_7 = arith.constant 0 : index
    %6 = vector.load %arg9[%c0_6, %c0_7] : memref<1x32xf32, #tpu.memory_space<vmem>>, vector<1x32xf32>
    %c0_8 = arith.constant 0 : index
    %c0_9 = arith.constant 0 : index
    %7 = vector.load %arg5[%c0_8, %c0_9] : memref<2x1xi32, #tpu.memory_space<vmem>>, vector<2x1xi32>
    %c8_i32 = arith.constant 8 : i32
    %8 = arith.muli %arg0, %c8_i32 : i32
    %c0_10 = arith.constant 0 : index
    %c0_11 = arith.constant 0 : index
    %9 = vector.load %arg16[%c0_10, %c0_11] : memref<2x32xf32, #tpu.memory_space<vmem>>, vector<2x32xf32>
    %c0_12 = arith.constant 0 : index
    %c0_13 = arith.constant 0 : index
    %c0_14 = arith.constant 0 : index
    %c0_15 = arith.constant 0 : index
    %10 = vector.load %arg1[%c0_12, %c0_13, %c0_14, %c0_15] : memref<8x3x2x32xf32, #tpu.memory_space<vmem>>, vector<1x3x2x32xf32>
    %11 = vector.shape_cast %10 : vector<1x3x2x32xf32> to vector<3x2x32xf32>
    %cst = arith.constant dense<0.000000e+00> : vector<2x32xf32>
    %12 = tpu.matmul %9, %3, %cst {dimension_numbers = #tpu.dot_dimension_numbers<[1], [0], [0], [1], [0, 0, 1, 1], [], []>} : vector<2x32xf32>, vector<32x32xf32>, vector<2x32xf32> -> vector<2x32xf32>
    %cst_16 = arith.constant dense<0.000000e+00> : vector<2x32xf32>
    %13 = tpu.matmul %9, %4, %cst_16 {dimension_numbers = #tpu.dot_dimension_numbers<[1], [0], [0], [1], [0, 0, 1, 1], [], []>} : vector<2x32xf32>, vector<32x32xf32>, vector<2x32xf32> -> vector<2x32xf32>
    %cst_17 = arith.constant dense<0.000000e+00> : vector<2x32xf32>
    %14 = tpu.matmul %9, %5, %cst_17 {dimension_numbers = #tpu.dot_dimension_numbers<[1], [0], [0], [1], [0, 0, 1, 1], [], []>} : vector<2x32xf32>, vector<32x32xf32>, vector<2x32xf32> -> vector<2x32xf32>
    %15 = vector.broadcast %6 : vector<1x32xf32> to vector<2x32xf32>
    %16 = arith.addf %14, %15 : vector<2x32xf32>
    %17 = vector.extract_strided_slice %11 {offsets = [0, 0, 0], sizes = [1, 2, 32], strides = [1, 1, 1]} : vector<3x2x32xf32> to vector<1x2x32xf32>
    %18 = vector.shape_cast %17 : vector<1x2x32xf32> to vector<2x32xf32>
    %19 = arith.addf %18, %12 : vector<2x32xf32>
    %20 = arith.negf %19 : vector<2x32xf32>
    %21 = math.exp %20 : vector<2x32xf32>
    %cst_18 = arith.constant 1.000000e+00 : f32
    %22 = vector.broadcast %cst_18 : f32 to vector<2x32xf32>
    %23 = arith.addf %22, %21 : vector<2x32xf32>
    %24 = arith.divf %22, %23 : vector<2x32xf32>
    %25 = vector.extract_strided_slice %11 {offsets = [1, 0, 0], sizes = [1, 2, 32], strides = [1, 1, 1]} : vector<3x2x32xf32> to vector<1x2x32xf32>
    %26 = vector.shape_cast %25 : vector<1x2x32xf32> to vector<2x32xf32>
    %27 = arith.addf %26, %13 : vector<2x32xf32>
    %28 = arith.negf %27 : vector<2x32xf32>
    %29 = math.exp %28 : vector<2x32xf32>
    %cst_19 = arith.constant 1.000000e+00 : f32
    %30 = vector.broadcast %cst_19 : f32 to vector<2x32xf32>
    %31 = arith.addf %30, %29 : vector<2x32xf32>
    %32 = arith.divf %30, %31 : vector<2x32xf32>
    %33 = vector.extract_strided_slice %11 {offsets = [2, 0, 0], sizes = [1, 2, 32], strides = [1, 1, 1]} : vector<3x2x32xf32> to vector<1x2x32xf32>
    %34 = vector.shape_cast %33 : vector<1x2x32xf32> to vector<2x32xf32>
    %35 = arith.mulf %24, %16 : vector<2x32xf32>
    %36 = arith.addf %34, %35 : vector<2x32xf32>
    %37 = math.tanh %36 : vector<2x32xf32>
    %cst_20 = arith.constant 1.000000e+00 : f32
    %38 = vector.broadcast %cst_20 : f32 to vector<2x32xf32>
    %39 = arith.subf %38, %32 : vector<2x32xf32>
    %40 = arith.mulf %39, %37 : vector<2x32xf32>
    %41 = arith.mulf %32, %9 : vector<2x32xf32>
    %42 = arith.addf %40, %41 : vector<2x32xf32>
    %c0_21 = arith.constant 0 : index
    %c0_22 = arith.constant 0 : index
    %c0_23 = arith.constant 0 : index
    %43 = vector.load %arg17[%c0_21, %c0_22, %c0_23] : memref<2x8x32xf32, #tpu.memory_space<vmem>>, vector<2x1x32xf32>
    %44 = vector.shape_cast %43 : vector<2x1x32xf32> to vector<2x32xf32>
    %45 = vector.shape_cast %42 : vector<2x32xf32> to vector<2x1x32xf32>
    tpu.vector_store %arg17[%c0_21, %c0_22, %c0_23], %45 {strides = array<i32>} : memref<2x8x32xf32, #tpu.memory_space<vmem>>, vector<2x1x32xf32>,
    %c0_i32_24 = arith.constant 0 : i32
    %46 = arith.addi %8, %c0_i32_24 : i32
    %47 = vector.broadcast %46 : i32 to vector<2x1xi32>
    %48 = arith.cmpi slt, %47, %7 : vector<2x1xi32>
    %49 = arith.extui %48 : vector<2x1xi1> to vector<2x1xi32>
    %50 = arith.sitofp %49 : vector<2x1xi32> to vector<2x1xf32>
    %51 = arith.subf %42, %9 : vector<2x32xf32>
    %52 = vector.broadcast %50 : vector<2x1xf32> to vector<2x32xf32>
    %53 = arith.mulf %52, %51 : vector<2x32xf32>
    %54 = arith.addf %9, %53 : vector<2x32xf32>
    %c1 = arith.constant 1 : index
    %c0_25 = arith.constant 0 : index
    %c0_26 = arith.constant 0 : index
    %c0_27 = arith.constant 0 : index
    %55 = vector.load %arg1[%c1, %c0_25, %c0_26, %c0_27] : memref<8x3x2x32xf32, #tpu.memory_space<vmem>>, vector<1x3x2x32xf32>
    %56 = vector.shape_cast %55 : vector<1x3x2x32xf32> to vector<3x2x32xf32>
    %cst_28 = arith.constant dense<0.000000e+00> : vector<2x32xf32>
    %57 = tpu.matmul %54, %3, %cst_28 {dimension_numbers = #tpu.dot_dimension_numbers<[1], [0], [0], [1], [0, 0, 1, 1], [], []>} : vector<2x32xf32>, vector<32x32xf32>, vector<2x32xf32> -> vector<2x32xf32>
    %cst_29 = arith.constant dense<0.000000e+00> : vector<2x32xf32>
    %58 = tpu.matmul %54, %4, %cst_29 {dimension_numbers = #tpu.dot_dimension_numbers<[1], [0], [0], [1], [0, 0, 1, 1], [], []>} : vector<2x32xf32>, vector<32x32xf32>, vector<2x32xf32> -> vector<2x32xf32>
    %cst_30 = arith.constant dense<0.000000e+00> : vector<2x32xf32>
    %59 = tpu.matmul %54, %5, %cst_30 {dimension_numbers = #tpu.dot_dimension_numbers<[1], [0], [0], [1], [0, 0, 1, 1], [], []>} : vector<2x32xf32>, vector<32x32xf32>, vector<2x32xf32> -> vector<2x32xf32>
    %60 = vector.broadcast %6 : vector<1x32xf32> to vector<2x32xf32>
    %61 = arith.addf %59, %60 : vector<2x32xf32>
    %62 = vector.extract_strided_slice %56 {offsets = [0, 0, 0], sizes = [1, 2, 32], strides = [1, 1, 1]} : vector<3x2x32xf32> to vector<1x2x32xf32>
    %63 = vector.shape_cast %62 : vector<1x2x32xf32> to vector<2x32xf32>
    %64 = arith.addf %63, %57 : vector<2x32xf32>
    %65 = arith.negf %64 : vector<2x32xf32>
    %66 = math.exp %65 : vector<2x32xf32>
    %cst_31 = arith.constant 1.000000e+00 : f32
    %67 = vector.broadcast %cst_31 : f32 to vector<2x32xf32>
    %68 = arith.addf %67, %66 : vector<2x32xf32>
    %69 = arith.divf %67, %68 : vector<2x32xf32>
    %70 = vector.extract_strided_slice %56 {offsets = [1, 0, 0], sizes = [1, 2, 32], strides = [1, 1, 1]} : vector<3x2x32xf32> to vector<1x2x32xf32>
    %71 = vector.shape_cast %70 : vector<1x2x32xf32> to vector<2x32xf32>
    %72 = arith.addf %71, %58 : vector<2x32xf32>
    %73 = arith.negf %72 : vector<2x32xf32>
    %74 = math.exp %73 : vector<2x32xf32>
    %cst_32 = arith.constant 1.000000e+00 : f32
    %75 = vector.broadcast %cst_32 : f32 to vector<2x32xf32>
    %76 = arith.addf %75, %74 : vector<2x32xf32>
    %77 = arith.divf %75, %76 : vector<2x32xf32>
    %78 = vector.extract_strided_slice %56 {offsets = [2, 0, 0], sizes = [1, 2, 32], strides = [1, 1, 1]} : vector<3x2x32xf32> to vector<1x2x32xf32>
    %79 = vector.shape_cast %78 : vector<1x2x32xf32> to vector<2x32xf32>
    %80 = arith.mulf %69, %61 : vector<2x32xf32>
    %81 = arith.addf %79, %80 : vector<2x32xf32>
    %82 = math.tanh %81 : vector<2x32xf32>
    %cst_33 = arith.constant 1.000000e+00 : f32
    %83 = vector.broadcast %cst_33 : f32 to vector<2x32xf32>
    %84 = arith.subf %83, %77 : vector<2x32xf32>
    %85 = arith.mulf %84, %82 : vector<2x32xf32>
    %86 = arith.mulf %77, %54 : vector<2x32xf32>
    %87 = arith.addf %85, %86 : vector<2x32xf32>
    %c0_34 = arith.constant 0 : index
    %c1_35 = arith.constant 1 : index
    %c0_36 = arith.constant 0 : index
    %88 = vector.load %arg17[%c0_34, %c1_35, %c0_36] : memref<2x8x32xf32, #tpu.memory_space<vmem>>, vector<2x1x32xf32>
    %89 = vector.shape_cast %88 : vector<2x1x32xf32> to vector<2x32xf32>
    %90 = vector.shape_cast %87 : vector<2x32xf32> to vector<2x1x32xf32>
    tpu.vector_store %arg17[%c0_34, %c1_35, %c0_36], %90 {strides = array<i32>} : memref<2x8x32xf32, #tpu.memory_space<vmem>>, vector<2x1x32xf32>,
    %c1_i32 = arith.constant 1 : i32
    %91 = arith.addi %8, %c1_i32 : i32
    %92 = vector.broadcast %91 : i32 to vector<2x1xi32>
    %93 = arith.cmpi slt, %92, %7 : vector<2x1xi32>
    %94 = arith.extui %93 : vector<2x1xi1> to vector<2x1xi32>
    %95 = arith.sitofp %94 : vector<2x1xi32> to vector<2x1xf32>
    %96 = arith.subf %87, %54 : vector<2x32xf32>
    %97 = vector.broadcast %95 : vector<2x1xf32> to vector<2x32xf32>
    %98 = arith.mulf %97, %96 : vector<2x32xf32>
    %99 = arith.addf %54, %98 : vector<2x32xf32>
    %c2 = arith.constant 2 : index
    %c0_37 = arith.constant 0 : index
    %c0_38 = arith.constant 0 : index
    %c0_39 = arith.constant 0 : index
    %100 = vector.load %arg1[%c2, %c0_37, %c0_38, %c0_39] : memref<8x3x2x32xf32, #tpu.memory_space<vmem>>, vector<1x3x2x32xf32>
    %101 = vector.shape_cast %100 : vector<1x3x2x32xf32> to vector<3x2x32xf32>
    %cst_40 = arith.constant dense<0.000000e+00> : vector<2x32xf32>
    %102 = tpu.matmul %99, %3, %cst_40 {dimension_numbers = #tpu.dot_dimension_numbers<[1], [0], [0], [1], [0, 0, 1, 1], [], []>} : vector<2x32xf32>, vector<32x32xf32>, vector<2x32xf32> -> vector<2x32xf32>
    %cst_41 = arith.constant dense<0.000000e+00> : vector<2x32xf32>
    %103 = tpu.matmul %99, %4, %cst_41 {dimension_numbers = #tpu.dot_dimension_numbers<[1], [0], [0], [1], [0, 0, 1, 1], [], []>} : vector<2x32xf32>, vector<32x32xf32>, vector<2x32xf32> -> vector<2x32xf32>
    %cst_42 = arith.constant dense<0.000000e+00> : vector<2x32xf32>
    %104 = tpu.matmul %99, %5, %cst_42 {dimension_numbers = #tpu.dot_dimension_numbers<[1], [0], [0], [1], [0, 0, 1, 1], [], []>} : vector<2x32xf32>, vector<32x32xf32>, vector<2x32xf32> -> vector<2x32xf32>
    %105 = vector.broadcast %6 : vector<1x32xf32> to vector<2x32xf32>
    %106 = arith.addf %104, %105 : vector<2x32xf32>
    %107 = vector.extract_strided_slice %101 {offsets = [0, 0, 0], sizes = [1, 2, 32], strides = [1, 1, 1]} : vector<3x2x32xf32> to vector<1x2x32xf32>
    %108 = vector.shape_cast %107 : vector<1x2x32xf32> to vector<2x32xf32>
    %109 = arith.addf %108, %102 : vector<2x32xf32>
    %110 = arith.negf %109 : vector<2x32xf32>
    %111 = math.exp %110 : vector<2x32xf32>
    %cst_43 = arith.constant 1.000000e+00 : f32
    %112 = vector.broadcast %cst_43 : f32 to vector<2x32xf32>
    %113 = arith.addf %112, %111 : vector<2x32xf32>
    %114 = arith.divf %112, %113 : vector<2x32xf32>
    %115 = vector.extract_strided_slice %101 {offsets = [1, 0, 0], sizes = [1, 2, 32], strides = [1, 1, 1]} : vector<3x2x32xf32> to vector<1x2x32xf32>
    %116 = vector.shape_cast %115 : vector<1x2x32xf32> to vector<2x32xf32>
    %117 = arith.addf %116, %103 : vector<2x32xf32>
    %118 = arith.negf %117 : vector<2x32xf32>
    %119 = math.exp %118 : vector<2x32xf32>
    %cst_44 = arith.constant 1.000000e+00 : f32
    %120 = vector.broadcast %cst_44 : f32 to vector<2x32xf32>
    %121 = arith.addf %120, %119 : vector<2x32xf32>
    %122 = arith.divf %120, %121 : vector<2x32xf32>
    %123 = vector.extract_strided_slice %101 {offsets = [2, 0, 0], sizes = [1, 2, 32], strides = [1, 1, 1]} : vector<3x2x32xf32> to vector<1x2x32xf32>
    %124 = vector.shape_cast %123 : vector<1x2x32xf32> to vector<2x32xf32>
    %125 = arith.mulf %114, %106 : vector<2x32xf32>
    %126 = arith.addf %124, %125 : vector<2x32xf32>
    %127 = math.tanh %126 : vector<2x32xf32>
    %cst_45 = arith.constant 1.000000e+00 : f32
    %128 = vector.broadcast %cst_45 : f32 to vector<2x32xf32>
    %129 = arith.subf %128, %122 : vector<2x32xf32>
    %130 = arith.mulf %129, %127 : vector<2x32xf32>
    %131 = arith.mulf %122, %99 : vector<2x32xf32>
    %132 = arith.addf %130, %131 : vector<2x32xf32>
    %c0_46 = arith.constant 0 : index
    %c2_47 = arith.constant 2 : index
    %c0_48 = arith.constant 0 : index
    %133 = vector.load %arg17[%c0_46, %c2_47, %c0_48] : memref<2x8x32xf32, #tpu.memory_space<vmem>>, vector<2x1x32xf32>
    %134 = vector.shape_cast %133 : vector<2x1x32xf32> to vector<2x32xf32>
    %135 = vector.shape_cast %132 : vector<2x32xf32> to vector<2x1x32xf32>
    tpu.vector_store %arg17[%c0_46, %c2_47, %c0_48], %135 {strides = array<i32>} : memref<2x8x32xf32, #tpu.memory_space<vmem>>, vector<2x1x32xf32>,
    %c2_i32 = arith.constant 2 : i32
    %136 = arith.addi %8, %c2_i32 : i32
    %137 = vector.broadcast %136 : i32 to vector<2x1xi32>
    %138 = arith.cmpi slt, %137, %7 : vector<2x1xi32>
    %139 = arith.extui %138 : vector<2x1xi1> to vector<2x1xi32>
    %140 = arith.sitofp %139 : vector<2x1xi32> to vector<2x1xf32>
    %141 = arith.subf %132, %99 : vector<2x32xf32>
    %142 = vector.broadcast %140 : vector<2x1xf32> to vector<2x32xf32>
    %143 = arith.mulf %142, %141 : vector<2x32xf32>
    %144 = arith.addf %99, %143 : vector<2x32xf32>
    %c3 = arith.constant 3 : index
    %c0_49 = arith.constant 0 : index
    %c0_50 = arith.constant 0 : index
    %c0_51 = arith.constant 0 : index
    %145 = vector.load %arg1[%c3, %c0_49, %c0_50, %c0_51] : memref<8x3x2x32xf32, #tpu.memory_space<vmem>>, vector<1x3x2x32xf32>
    %146 = vector.shape_cast %145 : vector<1x3x2x32xf32> to vector<3x2x32xf32>
    %cst_52 = arith.constant dense<0.000000e+00> : vector<2x32xf32>
    %147 = tpu.matmul %144, %3, %cst_52 {dimension_numbers = #tpu.dot_dimension_numbers<[1], [0], [0], [1], [0, 0, 1, 1], [], []>} : vector<2x32xf32>, vector<32x32xf32>, vector<2x32xf32> -> vector<2x32xf32>
    %cst_53 = arith.constant dense<0.000000e+00> : vector<2x32xf32>
    %148 = tpu.matmul %144, %4, %cst_53 {dimension_numbers = #tpu.dot_dimension_numbers<[1], [0], [0], [1], [0, 0, 1, 1], [], []>} : vector<2x32xf32>, vector<32x32xf32>, vector<2x32xf32> -> vector<2x32xf32>
    %cst_54 = arith.constant dense<0.000000e+00> : vector<2x32xf32>
    %149 = tpu.matmul %144, %5, %cst_54 {dimension_numbers = #tpu.dot_dimension_numbers<[1], [0], [0], [1], [0, 0, 1, 1], [], []>} : vector<2x32xf32>, vector<32x32xf32>, vector<2x32xf32> -> vector<2x32xf32>
    %150 = vector.broadcast %6 : vector<1x32xf32> to vector<2x32xf32>
    %151 = arith.addf %149, %150 : vector<2x32xf32>
    %152 = vector.extract_strided_slice %146 {offsets = [0, 0, 0], sizes = [1, 2, 32], strides = [1, 1, 1]} : vector<3x2x32xf32> to vector<1x2x32xf32>
    %153 = vector.shape_cast %152 : vector<1x2x32xf32> to vector<2x32xf32>
    %154 = arith.addf %153, %147 : vector<2x32xf32>
    %155 = arith.negf %154 : vector<2x32xf32>
    %156 = math.exp %155 : vector<2x32xf32>
    %cst_55 = arith.constant 1.000000e+00 : f32
    %157 = vector.broadcast %cst_55 : f32 to vector<2x32xf32>
    %158 = arith.addf %157, %156 : vector<2x32xf32>
    %159 = arith.divf %157, %158 : vector<2x32xf32>
    %160 = vector.extract_strided_slice %146 {offsets = [1, 0, 0], sizes = [1, 2, 32], strides = [1, 1, 1]} : vector<3x2x32xf32> to vector<1x2x32xf32>
    %161 = vector.shape_cast %160 : vector<1x2x32xf32> to vector<2x32xf32>
    %162 = arith.addf %161, %148 : vector<2x32xf32>
    %163 = arith.negf %162 : vector<2x32xf32>
    %164 = math.exp %163 : vector<2x32xf32>
    %cst_56 = arith.constant 1.000000e+00 : f32
    %165 = vector.broadcast %cst_56 : f32 to vector<2x32xf32>
    %166 = arith.addf %165, %164 : vector<2x32xf32>
    %167 = arith.divf %165, %166 : vector<2x32xf32>
    %168 = vector.extract_strided_slice %146 {offsets = [2, 0, 0], sizes = [1, 2, 32], strides = [1, 1, 1]} : vector<3x2x32xf32> to vector<1x2x32xf32>
    %169 = vector.shape_cast %168 : vector<1x2x32xf32> to vector<2x32xf32>
    %170 = arith.mulf %159, %151 : vector<2x32xf32>
    %171 = arith.addf %169, %170 : vector<2x32xf32>
    %172 = math.tanh %171 : vector<2x32xf32>
    %cst_57 = arith.constant 1.000000e+00 : f32
    %173 = vector.broadcast %cst_57 : f32 to vector<2x32xf32>
    %174 = arith.subf %173, %167 : vector<2x32xf32>
    %175 = arith.mulf %174, %172 : vector<2x32xf32>
    %176 = arith.mulf %167, %144 : vector<2x32xf32>
    %177 = arith.addf %175, %176 : vector<2x32xf32>
    %c0_58 = arith.constant 0 : index
    %c3_59 = arith.constant 3 : index
    %c0_60 = arith.constant 0 : index
    %178 = vector.load %arg17[%c0_58, %c3_59, %c0_60] : memref<2x8x32xf32, #tpu.memory_space<vmem>>, vector<2x1x32xf32>
    %179 = vector.shape_cast %178 : vector<2x1x32xf32> to vector<2x32xf32>
    %180 = vector.shape_cast %177 : vector<2x32xf32> to vector<2x1x32xf32>
    tpu.vector_store %arg17[%c0_58, %c3_59, %c0_60], %180 {strides = array<i32>} : memref<2x8x32xf32, #tpu.memory_space<vmem>>, vector<2x1x32xf32>,
    %c3_i32 = arith.constant 3 : i32
    %181 = arith.addi %8, %c3_i32 : i32
    %182 = vector.broadcast %181 : i32 to vector<2x1xi32>
    %183 = arith.cmpi slt, %182, %7 : vector<2x1xi32>
    %184 = arith.extui %183 : vector<2x1xi1> to vector<2x1xi32>
    %185 = arith.sitofp %184 : vector<2x1xi32> to vector<2x1xf32>
    %186 = arith.subf %177, %144 : vector<2x32xf32>
    %187 = vector.broadcast %185 : vector<2x1xf32> to vector<2x32xf32>
    %188 = arith.mulf %187, %186 : vector<2x32xf32>
    %189 = arith.addf %144, %188 : vector<2x32xf32>
    %c4 = arith.constant 4 : index
    %c0_61 = arith.constant 0 : index
    %c0_62 = arith.constant 0 : index
    %c0_63 = arith.constant 0 : index
    %190 = vector.load %arg1[%c4, %c0_61, %c0_62, %c0_63] : memref<8x3x2x32xf32, #tpu.memory_space<vmem>>, vector<1x3x2x32xf32>
    %191 = vector.shape_cast %190 : vector<1x3x2x32xf32> to vector<3x2x32xf32>
    %cst_64 = arith.constant dense<0.000000e+00> : vector<2x32xf32>
    %192 = tpu.matmul %189, %3, %cst_64 {dimension_numbers = #tpu.dot_dimension_numbers<[1], [0], [0], [1], [0, 0, 1, 1], [], []>} : vector<2x32xf32>, vector<32x32xf32>, vector<2x32xf32> -> vector<2x32xf32>
    %cst_65 = arith.constant dense<0.000000e+00> : vector<2x32xf32>
    %193 = tpu.matmul %189, %4, %cst_65 {dimension_numbers = #tpu.dot_dimension_numbers<[1], [0], [0], [1], [0, 0, 1, 1], [], []>} : vector<2x32xf32>, vector<32x32xf32>, vector<2x32xf32> -> vector<2x32xf32>
    %cst_66 = arith.constant dense<0.000000e+00> : vector<2x32xf32>
    %194 = tpu.matmul %189, %5, %cst_66 {dimension_numbers = #tpu.dot_dimension_numbers<[1], [0], [0], [1], [0, 0, 1, 1], [], []>} : vector<2x32xf32>, vector<32x32xf32>, vector<2x32xf32> -> vector<2x32xf32>
    %195 = vector.broadcast %6 : vector<1x32xf32> to vector<2x32xf32>
    %196 = arith.addf %194, %195 : vector<2x32xf32>
    %197 = vector.extract_strided_slice %191 {offsets = [0, 0, 0], sizes = [1, 2, 32], strides = [1, 1, 1]} : vector<3x2x32xf32> to vector<1x2x32xf32>
    %198 = vector.shape_cast %197 : vector<1x2x32xf32> to vector<2x32xf32>
    %199 = arith.addf %198, %192 : vector<2x32xf32>
    %200 = arith.negf %199 : vector<2x32xf32>
    %201 = math.exp %200 : vector<2x32xf32>
    %cst_67 = arith.constant 1.000000e+00 : f32
    %202 = vector.broadcast %cst_67 : f32 to vector<2x32xf32>
    %203 = arith.addf %202, %201 : vector<2x32xf32>
    %204 = arith.divf %202, %203 : vector<2x32xf32>
    %205 = vector.extract_strided_slice %191 {offsets = [1, 0, 0], sizes = [1, 2, 32], strides = [1, 1, 1]} : vector<3x2x32xf32> to vector<1x2x32xf32>
    %206 = vector.shape_cast %205 : vector<1x2x32xf32> to vector<2x32xf32>
    %207 = arith.addf %206, %193 : vector<2x32xf32>
    %208 = arith.negf %207 : vector<2x32xf32>
    %209 = math.exp %208 : vector<2x32xf32>
    %cst_68 = arith.constant 1.000000e+00 : f32
    %210 = vector.broadcast %cst_68 : f32 to vector<2x32xf32>
    %211 = arith.addf %210, %209 : vector<2x32xf32>
    %212 = arith.divf %210, %211 : vector<2x32xf32>
    %213 = vector.extract_strided_slice %191 {offsets = [2, 0, 0], sizes = [1, 2, 32], strides = [1, 1, 1]} : vector<3x2x32xf32> to vector<1x2x32xf32>
    %214 = vector.shape_cast %213 : vector<1x2x32xf32> to vector<2x32xf32>
    %215 = arith.mulf %204, %196 : vector<2x32xf32>
    %216 = arith.addf %214, %215 : vector<2x32xf32>
    %217 = math.tanh %216 : vector<2x32xf32>
    %cst_69 = arith.constant 1.000000e+00 : f32
    %218 = vector.broadcast %cst_69 : f32 to vector<2x32xf32>
    %219 = arith.subf %218, %212 : vector<2x32xf32>
    %220 = arith.mulf %219, %217 : vector<2x32xf32>
    %221 = arith.mulf %212, %189 : vector<2x32xf32>
    %222 = arith.addf %220, %221 : vector<2x32xf32>
    %c0_70 = arith.constant 0 : index
    %c4_71 = arith.constant 4 : index
    %c0_72 = arith.constant 0 : index
    %223 = vector.load %arg17[%c0_70, %c4_71, %c0_72] : memref<2x8x32xf32, #tpu.memory_space<vmem>>, vector<2x1x32xf32>
    %224 = vector.shape_cast %223 : vector<2x1x32xf32> to vector<2x32xf32>
    %225 = vector.shape_cast %222 : vector<2x32xf32> to vector<2x1x32xf32>
    tpu.vector_store %arg17[%c0_70, %c4_71, %c0_72], %225 {strides = array<i32>} : memref<2x8x32xf32, #tpu.memory_space<vmem>>, vector<2x1x32xf32>,
    %c4_i32 = arith.constant 4 : i32
    %226 = arith.addi %8, %c4_i32 : i32
    %227 = vector.broadcast %226 : i32 to vector<2x1xi32>
    %228 = arith.cmpi slt, %227, %7 : vector<2x1xi32>
    %229 = arith.extui %228 : vector<2x1xi1> to vector<2x1xi32>
    %230 = arith.sitofp %229 : vector<2x1xi32> to vector<2x1xf32>
    %231 = arith.subf %222, %189 : vector<2x32xf32>
    %232 = vector.broadcast %230 : vector<2x1xf32> to vector<2x32xf32>
    %233 = arith.mulf %232, %231 : vector<2x32xf32>
    %234 = arith.addf %189, %233 : vector<2x32xf32>
    %c5 = arith.constant 5 : index
    %c0_73 = arith.constant 0 : index
    %c0_74 = arith.constant 0 : index
    %c0_75 = arith.constant 0 : index
    %235 = vector.load %arg1[%c5, %c0_73, %c0_74, %c0_75] : memref<8x3x2x32xf32, #tpu.memory_space<vmem>>, vector<1x3x2x32xf32>
    %236 = vector.shape_cast %235 : vector<1x3x2x32xf32> to vector<3x2x32xf32>
    %cst_76 = arith.constant dense<0.000000e+00> : vector<2x32xf32>
    %237 = tpu.matmul %234, %3, %cst_76 {dimension_numbers = #tpu.dot_dimension_numbers<[1], [0], [0], [1], [0, 0, 1, 1], [], []>} : vector<2x32xf32>, vector<32x32xf32>, vector<2x32xf32> -> vector<2x32xf32>
    %cst_77 = arith.constant dense<0.000000e+00> : vector<2x32xf32>
    %238 = tpu.matmul %234, %4, %cst_77 {dimension_numbers = #tpu.dot_dimension_numbers<[1], [0], [0], [1], [0, 0, 1, 1], [], []>} : vector<2x32xf32>, vector<32x32xf32>, vector<2x32xf32> -> vector<2x32xf32>
    %cst_78 = arith.constant dense<0.000000e+00> : vector<2x32xf32>
    %239 = tpu.matmul %234, %5, %cst_78 {dimension_numbers = #tpu.dot_dimension_numbers<[1], [0], [0], [1], [0, 0, 1, 1], [], []>} : vector<2x32xf32>, vector<32x32xf32>, vector<2x32xf32> -> vector<2x32xf32>
    %240 = vector.broadcast %6 : vector<1x32xf32> to vector<2x32xf32>
    %241 = arith.addf %239, %240 : vector<2x32xf32>
    %242 = vector.extract_strided_slice %236 {offsets = [0, 0, 0], sizes = [1, 2, 32], strides = [1, 1, 1]} : vector<3x2x32xf32> to vector<1x2x32xf32>
    %243 = vector.shape_cast %242 : vector<1x2x32xf32> to vector<2x32xf32>
    %244 = arith.addf %243, %237 : vector<2x32xf32>
    %245 = arith.negf %244 : vector<2x32xf32>
    %246 = math.exp %245 : vector<2x32xf32>
    %cst_79 = arith.constant 1.000000e+00 : f32
    %247 = vector.broadcast %cst_79 : f32 to vector<2x32xf32>
    %248 = arith.addf %247, %246 : vector<2x32xf32>
    %249 = arith.divf %247, %248 : vector<2x32xf32>
    %250 = vector.extract_strided_slice %236 {offsets = [1, 0, 0], sizes = [1, 2, 32], strides = [1, 1, 1]} : vector<3x2x32xf32> to vector<1x2x32xf32>
    %251 = vector.shape_cast %250 : vector<1x2x32xf32> to vector<2x32xf32>
    %252 = arith.addf %251, %238 : vector<2x32xf32>
    %253 = arith.negf %252 : vector<2x32xf32>
    %254 = math.exp %253 : vector<2x32xf32>
    %cst_80 = arith.constant 1.000000e+00 : f32
    %255 = vector.broadcast %cst_80 : f32 to vector<2x32xf32>
    %256 = arith.addf %255, %254 : vector<2x32xf32>
    %257 = arith.divf %255, %256 : vector<2x32xf32>
    %258 = vector.extract_strided_slice %236 {offsets = [2, 0, 0], sizes = [1, 2, 32], strides = [1, 1, 1]} : vector<3x2x32xf32> to vector<1x2x32xf32>
    %259 = vector.shape_cast %258 : vector<1x2x32xf32> to vector<2x32xf32>
    %260 = arith.mulf %249, %241 : vector<2x32xf32>
    %261 = arith.addf %259, %260 : vector<2x32xf32>
    %262 = math.tanh %261 : vector<2x32xf32>
    %cst_81 = arith.constant 1.000000e+00 : f32
    %263 = vector.broadcast %cst_81 : f32 to vector<2x32xf32>
    %264 = arith.subf %263, %257 : vector<2x32xf32>
    %265 = arith.mulf %264, %262 : vector<2x32xf32>
    %266 = arith.mulf %257, %234 : vector<2x32xf32>
    %267 = arith.addf %265, %266 : vector<2x32xf32>
    %c0_82 = arith.constant 0 : index
    %c5_83 = arith.constant 5 : index
    %c0_84 = arith.constant 0 : index
    %268 = vector.load %arg17[%c0_82, %c5_83, %c0_84] : memref<2x8x32xf32, #tpu.memory_space<vmem>>, vector<2x1x32xf32>
    %269 = vector.shape_cast %268 : vector<2x1x32xf32> to vector<2x32xf32>
    %270 = vector.shape_cast %267 : vector<2x32xf32> to vector<2x1x32xf32>
    tpu.vector_store %arg17[%c0_82, %c5_83, %c0_84], %270 {strides = array<i32>} : memref<2x8x32xf32, #tpu.memory_space<vmem>>, vector<2x1x32xf32>,
    %c5_i32 = arith.constant 5 : i32
    %271 = arith.addi %8, %c5_i32 : i32
    %272 = vector.broadcast %271 : i32 to vector<2x1xi32>
    %273 = arith.cmpi slt, %272, %7 : vector<2x1xi32>
    %274 = arith.extui %273 : vector<2x1xi1> to vector<2x1xi32>
    %275 = arith.sitofp %274 : vector<2x1xi32> to vector<2x1xf32>
    %276 = arith.subf %267, %234 : vector<2x32xf32>
    %277 = vector.broadcast %275 : vector<2x1xf32> to vector<2x32xf32>
    %278 = arith.mulf %277, %276 : vector<2x32xf32>
    %279 = arith.addf %234, %278 : vector<2x32xf32>
    %c6 = arith.constant 6 : index
    %c0_85 = arith.constant 0 : index
    %c0_86 = arith.constant 0 : index
    %c0_87 = arith.constant 0 : index
    %280 = vector.load %arg1[%c6, %c0_85, %c0_86, %c0_87] : memref<8x3x2x32xf32, #tpu.memory_space<vmem>>, vector<1x3x2x32xf32>
    %281 = vector.shape_cast %280 : vector<1x3x2x32xf32> to vector<3x2x32xf32>
    %cst_88 = arith.constant dense<0.000000e+00> : vector<2x32xf32>
    %282 = tpu.matmul %279, %3, %cst_88 {dimension_numbers = #tpu.dot_dimension_numbers<[1], [0], [0], [1], [0, 0, 1, 1], [], []>} : vector<2x32xf32>, vector<32x32xf32>, vector<2x32xf32> -> vector<2x32xf32>
    %cst_89 = arith.constant dense<0.000000e+00> : vector<2x32xf32>
    %283 = tpu.matmul %279, %4, %cst_89 {dimension_numbers = #tpu.dot_dimension_numbers<[1], [0], [0], [1], [0, 0, 1, 1], [], []>} : vector<2x32xf32>, vector<32x32xf32>, vector<2x32xf32> -> vector<2x32xf32>
    %cst_90 = arith.constant dense<0.000000e+00> : vector<2x32xf32>
    %284 = tpu.matmul %279, %5, %cst_90 {dimension_numbers = #tpu.dot_dimension_numbers<[1], [0], [0], [1], [0, 0, 1, 1], [], []>} : vector<2x32xf32>, vector<32x32xf32>, vector<2x32xf32> -> vector<2x32xf32>
    %285 = vector.broadcast %6 : vector<1x32xf32> to vector<2x32xf32>
    %286 = arith.addf %284, %285 : vector<2x32xf32>
    %287 = vector.extract_strided_slice %281 {offsets = [0, 0, 0], sizes = [1, 2, 32], strides = [1, 1, 1]} : vector<3x2x32xf32> to vector<1x2x32xf32>
    %288 = vector.shape_cast %287 : vector<1x2x32xf32> to vector<2x32xf32>
    %289 = arith.addf %288, %282 : vector<2x32xf32>
    %290 = arith.negf %289 : vector<2x32xf32>
    %291 = math.exp %290 : vector<2x32xf32>
    %cst_91 = arith.constant 1.000000e+00 : f32
    %292 = vector.broadcast %cst_91 : f32 to vector<2x32xf32>
    %293 = arith.addf %292, %291 : vector<2x32xf32>
    %294 = arith.divf %292, %293 : vector<2x32xf32>
    %295 = vector.extract_strided_slice %281 {offsets = [1, 0, 0], sizes = [1, 2, 32], strides = [1, 1, 1]} : vector<3x2x32xf32> to vector<1x2x32xf32>
    %296 = vector.shape_cast %295 : vector<1x2x32xf32> to vector<2x32xf32>
    %297 = arith.addf %296, %283 : vector<2x32xf32>
    %298 = arith.negf %297 : vector<2x32xf32>
    %299 = math.exp %298 : vector<2x32xf32>
    %cst_92 = arith.constant 1.000000e+00 : f32
    %300 = vector.broadcast %cst_92 : f32 to vector<2x32xf32>
    %301 = arith.addf %300, %299 : vector<2x32xf32>
    %302 = arith.divf %300, %301 : vector<2x32xf32>
    %303 = vector.extract_strided_slice %281 {offsets = [2, 0, 0], sizes = [1, 2, 32], strides = [1, 1, 1]} : vector<3x2x32xf32> to vector<1x2x32xf32>
    %304 = vector.shape_cast %303 : vector<1x2x32xf32> to vector<2x32xf32>
    %305 = arith.mulf %294, %286 : vector<2x32xf32>
    %306 = arith.addf %304, %305 : vector<2x32xf32>
    %307 = math.tanh %306 : vector<2x32xf32>
    %cst_93 = arith.constant 1.000000e+00 : f32
    %308 = vector.broadcast %cst_93 : f32 to vector<2x32xf32>
    %309 = arith.subf %308, %302 : vector<2x32xf32>
    %310 = arith.mulf %309, %307 : vector<2x32xf32>
    %311 = arith.mulf %302, %279 : vector<2x32xf32>
    %312 = arith.addf %310, %311 : vector<2x32xf32>
    %c0_94 = arith.constant 0 : index
    %c6_95 = arith.constant 6 : index
    %c0_96 = arith.constant 0 : index
    %313 = vector.load %arg17[%c0_94, %c6_95, %c0_96] : memref<2x8x32xf32, #tpu.memory_space<vmem>>, vector<2x1x32xf32>
    %314 = vector.shape_cast %313 : vector<2x1x32xf32> to vector<2x32xf32>
    %315 = vector.shape_cast %312 : vector<2x32xf32> to vector<2x1x32xf32>
    tpu.vector_store %arg17[%c0_94, %c6_95, %c0_96], %315 {strides = array<i32>} : memref<2x8x32xf32, #tpu.memory_space<vmem>>, vector<2x1x32xf32>,
    %c6_i32 = arith.constant 6 : i32
    %316 = arith.addi %8, %c6_i32 : i32
    %317 = vector.broadcast %316 : i32 to vector<2x1xi32>
    %318 = arith.cmpi slt, %317, %7 : vector<2x1xi32>
    %319 = arith.extui %318 : vector<2x1xi1> to vector<2x1xi32>
    %320 = arith.sitofp %319 : vector<2x1xi32> to vector<2x1xf32>
    %321 = arith.subf %312, %279 : vector<2x32xf32>
    %322 = vector.broadcast %320 : vector<2x1xf32> to vector<2x32xf32>
    %323 = arith.mulf %322, %321 : vector<2x32xf32>
    %324 = arith.addf %279, %323 : vector<2x32xf32>
    %c7 = arith.constant 7 : index
    %c0_97 = arith.constant 0 : index
    %c0_98 = arith.constant 0 : index
    %c0_99 = arith.constant 0 : index
    %325 = vector.load %arg1[%c7, %c0_97, %c0_98, %c0_99] : memref<8x3x2x32xf32, #tpu.memory_space<vmem>>, vector<1x3x2x32xf32>
    %326 = vector.shape_cast %325 : vector<1x3x2x32xf32> to vector<3x2x32xf32>
    %cst_100 = arith.constant dense<0.000000e+00> : vector<2x32xf32>
    %327 = tpu.matmul %324, %3, %cst_100 {dimension_numbers = #tpu.dot_dimension_numbers<[1], [0], [0], [1], [0, 0, 1, 1], [], []>} : vector<2x32xf32>, vector<32x32xf32>, vector<2x32xf32> -> vector<2x32xf32>
    %cst_101 = arith.constant dense<0.000000e+00> : vector<2x32xf32>
    %328 = tpu.matmul %324, %4, %cst_101 {dimension_numbers = #tpu.dot_dimension_numbers<[1], [0], [0], [1], [0, 0, 1, 1], [], []>} : vector<2x32xf32>, vector<32x32xf32>, vector<2x32xf32> -> vector<2x32xf32>
    %cst_102 = arith.constant dense<0.000000e+00> : vector<2x32xf32>
    %329 = tpu.matmul %324, %5, %cst_102 {dimension_numbers = #tpu.dot_dimension_numbers<[1], [0], [0], [1], [0, 0, 1, 1], [], []>} : vector<2x32xf32>, vector<32x32xf32>, vector<2x32xf32> -> vector<2x32xf32>
    %330 = vector.broadcast %6 : vector<1x32xf32> to vector<2x32xf32>
    %331 = arith.addf %329, %330 : vector<2x32xf32>
    %332 = vector.extract_strided_slice %326 {offsets = [0, 0, 0], sizes = [1, 2, 32], strides = [1, 1, 1]} : vector<3x2x32xf32> to vector<1x2x32xf32>
    %333 = vector.shape_cast %332 : vector<1x2x32xf32> to vector<2x32xf32>
    %334 = arith.addf %333, %327 : vector<2x32xf32>
    %335 = arith.negf %334 : vector<2x32xf32>
    %336 = math.exp %335 : vector<2x32xf32>
    %cst_103 = arith.constant 1.000000e+00 : f32
    %337 = vector.broadcast %cst_103 : f32 to vector<2x32xf32>
    %338 = arith.addf %337, %336 : vector<2x32xf32>
    %339 = arith.divf %337, %338 : vector<2x32xf32>
    %340 = vector.extract_strided_slice %326 {offsets = [1, 0, 0], sizes = [1, 2, 32], strides = [1, 1, 1]} : vector<3x2x32xf32> to vector<1x2x32xf32>
    %341 = vector.shape_cast %340 : vector<1x2x32xf32> to vector<2x32xf32>
    %342 = arith.addf %341, %328 : vector<2x32xf32>
    %343 = arith.negf %342 : vector<2x32xf32>
    %344 = math.exp %343 : vector<2x32xf32>
    %cst_104 = arith.constant 1.000000e+00 : f32
    %345 = vector.broadcast %cst_104 : f32 to vector<2x32xf32>
    %346 = arith.addf %345, %344 : vector<2x32xf32>
    %347 = arith.divf %345, %346 : vector<2x32xf32>
    %348 = vector.extract_strided_slice %326 {offsets = [2, 0, 0], sizes = [1, 2, 32], strides = [1, 1, 1]} : vector<3x2x32xf32> to vector<1x2x32xf32>
    %349 = vector.shape_cast %348 : vector<1x2x32xf32> to vector<2x32xf32>
    %350 = arith.mulf %339, %331 : vector<2x32xf32>
    %351 = arith.addf %349, %350 : vector<2x32xf32>
    %352 = math.tanh %351 : vector<2x32xf32>
    %cst_105 = arith.constant 1.000000e+00 : f32
    %353 = vector.broadcast %cst_105 : f32 to vector<2x32xf32>
    %354 = arith.subf %353, %347 : vector<2x32xf32>
    %355 = arith.mulf %354, %352 : vector<2x32xf32>
    %356 = arith.mulf %347, %324 : vector<2x32xf32>
    %357 = arith.addf %355, %356 : vector<2x32xf32>
    %c0_106 = arith.constant 0 : index
    %c7_107 = arith.constant 7 : index
    %c0_108 = arith.constant 0 : index
    %358 = vector.load %arg17[%c0_106, %c7_107, %c0_108] : memref<2x8x32xf32, #tpu.memory_space<vmem>>, vector<2x1x32xf32>
    %359 = vector.shape_cast %358 : vector<2x1x32xf32> to vector<2x32xf32>
    %360 = vector.shape_cast %357 : vector<2x32xf32> to vector<2x1x32xf32>
    tpu.vector_store %arg17[%c0_106, %c7_107, %c0_108], %360 {strides = array<i32>} : memref<2x8x32xf32, #tpu.memory_space<vmem>>, vector<2x1x32xf32>,
    %c7_i32 = arith.constant 7 : i32
    %361 = arith.addi %8, %c7_i32 : i32
    %362 = vector.broadcast %361 : i32 to vector<2x1xi32>
    %363 = arith.cmpi slt, %362, %7 : vector<2x1xi32>
    %364 = arith.extui %363 : vector<2x1xi1> to vector<2x1xi32>
    %365 = arith.sitofp %364 : vector<2x1xi32> to vector<2x1xf32>
    %366 = arith.subf %357, %324 : vector<2x32xf32>
    %367 = vector.broadcast %365 : vector<2x1xf32> to vector<2x32xf32>
    %368 = arith.mulf %367, %366 : vector<2x32xf32>
    %369 = arith.addf %324, %368 : vector<2x32xf32>
    %c0_109 = arith.constant 0 : index
    %c0_110 = arith.constant 0 : index
    %370 = vector.load %arg16[%c0_109, %c0_110] : memref<2x32xf32, #tpu.memory_space<vmem>>, vector<2x32xf32>
    tpu.vector_store %arg16[%c0_109, %c0_110], %369 {strides = array<i32>} : memref<2x32xf32, #tpu.memory_space<vmem>>, vector<2x32xf32>,
    %c0_111 = arith.constant 0 : index
    %c0_112 = arith.constant 0 : index
    %c0_113 = arith.constant 0 : index
    %371 = vector.load %arg3[%c0_111, %c0_112, %c0_113] : memref<2x8x32xf32, #tpu.memory_space<vmem>>, vector<2x8x32xf32>
    %c0_114 = arith.constant 0 : index
    %c0_115 = arith.constant 0 : index
    %c0_116 = arith.constant 0 : index
    %372 = vector.load %arg4[%c0_114, %c0_115, %c0_116] : memref<2x1x8xf32, #tpu.memory_space<vmem>>, vector<2x1x8xf32>
    %c0_117 = arith.constant 0 : index
    %c0_118 = arith.constant 0 : index
    %c0_119 = arith.constant 0 : index
    %373 = vector.load %arg17[%c0_117, %c0_118, %c0_119] : memref<2x8x32xf32, #tpu.memory_space<vmem>>, vector<2x8x32xf32>
    "tpu.trace_start"() <{level = 10 : i32, message = "bth,bsh->bts"}> : () -> ()
    %cst_120 = arith.constant dense<0.000000e+00> : vector<2x8x8xf32>
    %374 = tpu.matmul %373, %371, %cst_120 {dimension_numbers = #tpu.dot_dimension_numbers<[2], [2], [1], [1], [0, 0, 0, 1, 1, 1], [0], [0]>} : vector<2x8x32xf32>, vector<2x8x32xf32>, vector<2x8x8xf32> -> vector<2x8x8xf32>
    "tpu.trace_stop"() : () -> ()
    %375 = vector.broadcast %372 : vector<2x1x8xf32> to vector<2x8x8xf32>
    %376 = arith.addf %374, %375 : vector<2x8x8xf32>
    %cst_121 = arith.constant dense<0xFF800000> : vector<2x8xf32>
    %377 = vector.multi_reduction <maximumf>, %376, %cst_121 [2] : vector<2x8x8xf32> to vector<2x8xf32>
    %378 = vector.shape_cast %377 : vector<2x8xf32> to vector<2x8x1xf32>
    %379 = vector.broadcast %378 : vector<2x8x1xf32> to vector<2x8x8xf32>
    %380 = arith.subf %376, %379 : vector<2x8x8xf32>
    %381 = math.exp %380 : vector<2x8x8xf32>
    %cst_122 = arith.constant dense<0.000000e+00> : vector<2x8xf32>
    %382 = vector.multi_reduction <add>, %381, %cst_122 [2] : vector<2x8x8xf32> to vector<2x8xf32>
    %383 = vector.shape_cast %382 : vector<2x8xf32> to vector<2x8x1xf32>
    %384 = vector.broadcast %383 : vector<2x8x1xf32> to vector<2x8x8xf32>
    %385 = arith.divf %381, %384 : vector<2x8x8xf32>
    "tpu.trace_start"() <{level = 10 : i32, message = "bts,bsh->bth"}> : () -> ()
    %cst_123 = arith.constant dense<0.000000e+00> : vector<2x8x32xf32>
    %386 = tpu.matmul %385, %371, %cst_123 {dimension_numbers = #tpu.dot_dimension_numbers<[2], [1], [1], [2], [0, 0, 0, 1, 1, 2], [0], [0]>} : vector<2x8x8xf32>, vector<2x8x32xf32>, vector<2x8x32xf32> -> vector<2x8x32xf32>
    "tpu.trace_stop"() : () -> ()
    %387 = vector.shape_cast %373 : vector<2x8x32xf32> to vector<16x32xf32>
    %388 = vector.shape_cast %386 : vector<2x8x32xf32> to vector<16x32xf32>
    %c0_124 = arith.constant 0 : index
    %c0_125 = arith.constant 0 : index
    %389 = vector.load %arg10[%c0_124, %c0_125] : memref<32x32xf32, #tpu.memory_space<vmem>>, vector<32x32xf32>
    %cst_126 = arith.constant dense<0.000000e+00> : vector<16x32xf32>
    %390 = tpu.matmul %388, %389, %cst_126 {dimension_numbers = #tpu.dot_dimension_numbers<[1], [0], [0], [1], [0, 0, 1, 1], [], []>} : vector<16x32xf32>, vector<32x32xf32>, vector<16x32xf32> -> vector<16x32xf32>
    %c0_127 = arith.constant 0 : index
    %c0_128 = arith.constant 0 : index
    %391 = vector.load %arg11[%c0_127, %c0_128] : memref<32x32xf32, #tpu.memory_space<vmem>>, vector<32x32xf32>
    %cst_129 = arith.constant dense<0.000000e+00> : vector<16x32xf32>
    %392 = tpu.matmul %387, %391, %cst_129 {dimension_numbers = #tpu.dot_dimension_numbers<[1], [0], [0], [1], [0, 0, 1, 1], [], []>} : vector<16x32xf32>, vector<32x32xf32>, vector<16x32xf32> -> vector<16x32xf32>
    %393 = arith.addf %390, %392 : vector<16x32xf32>
    %c0_130 = arith.constant 0 : index
    %c0_131 = arith.constant 0 : index
    %394 = vector.load %arg12[%c0_130, %c0_131] : memref<1x32xf32, #tpu.memory_space<vmem>>, vector<1x32xf32>
    %395 = vector.broadcast %394 : vector<1x32xf32> to vector<16x32xf32>
    %396 = arith.addf %393, %395 : vector<16x32xf32>
    %397 = math.tanh %396 : vector<16x32xf32>
    %c0_132 = arith.constant 0 : index
    %c0_133 = arith.constant 0 : index
    %398 = vector.load %arg13[%c0_132, %c0_133] : memref<32x16xf32, #tpu.memory_space<vmem>>, vector<32x16xf32>
    %cst_134 = arith.constant dense<0.000000e+00> : vector<16x16xf32>
    %399 = tpu.matmul %397, %398, %cst_134 {dimension_numbers = #tpu.dot_dimension_numbers<[1], [0], [0], [1], [0, 0, 1, 1], [], []>} : vector<16x32xf32>, vector<32x16xf32>, vector<16x16xf32> -> vector<16x16xf32>
    %c0_135 = arith.constant 0 : index
    %c0_136 = arith.constant 0 : index
    %400 = vector.load %arg14[%c0_135, %c0_136] : memref<1x16xf32, #tpu.memory_space<vmem>>, vector<1x16xf32>
    %401 = vector.broadcast %400 : vector<1x16xf32> to vector<16x16xf32>
    %402 = arith.addf %399, %401 : vector<16x16xf32>
    %cst_137 = arith.constant dense<0xFF800000> : vector<16xf32>
    %403 = vector.multi_reduction <maximumf>, %402, %cst_137 [1] : vector<16x16xf32> to vector<16xf32>
    %404 = vector.shape_cast %403 : vector<16xf32> to vector<16x1xf32>
    %405 = vector.broadcast %404 : vector<16x1xf32> to vector<16x16xf32>
    %406 = arith.subf %402, %405 : vector<16x16xf32>
    %407 = math.exp %406 : vector<16x16xf32>
    %cst_138 = arith.constant dense<0.000000e+00> : vector<16xf32>
    %408 = vector.multi_reduction <add>, %407, %cst_138 [1] : vector<16x16xf32> to vector<16xf32>
    %409 = vector.shape_cast %408 : vector<16xf32> to vector<16x1xf32>
    %410 = math.log %409 : vector<16x1xf32>
    %411 = vector.broadcast %410 : vector<16x1xf32> to vector<16x16xf32>
    %412 = arith.subf %406, %411 : vector<16x16xf32>
    %413 = vector.shape_cast %412 : vector<16x16xf32> to vector<2x8x16xf32>
    %c0_139 = arith.constant 0 : index
    %c0_140 = arith.constant 0 : index
    %c0_141 = arith.constant 0 : index
    %414 = vector.load %arg15[%c0_139, %c0_140, %c0_141] : memref<2x8x16xf32, #tpu.memory_space<vmem>>, vector<2x8x16xf32>
    tpu.vector_store %arg15[%c0_139, %c0_140, %c0_141], %413 {strides = array<i32>} : memref<2x8x16xf32, #tpu.memory_space<vmem>>, vector<2x8x16xf32>,
    return
  }
  func.func @transform_0(%arg0: i32) -> (i32, i32, i32, i32) {
    %c0_i32 = arith.constant 0 : i32
    %c0_i32_0 = arith.constant 0 : i32
    %c0_i32_1 = arith.constant 0 : i32
    %c0_i32_2 = arith.constant 0 : i32
    return %arg0, %c0_i32, %c0_i32_0, %c0_i32_1 : i32, i32, i32, i32
  }
  func.func @transform_1(%arg0: i32) -> (i32, i32) {
    %c0_i32 = arith.constant 0 : i32
    %c0_i32_0 = arith.constant 0 : i32
    %c0_i32_1 = arith.constant 0 : i32
    return %c0_i32, %c0_i32_0 : i32, i32
  }
  func.func @transform_2(%arg0: i32) -> (i32, i32, i32) {
    %c0_i32 = arith.constant 0 : i32
    %c0_i32_0 = arith.constant 0 : i32
    %c0_i32_1 = arith.constant 0 : i32
    %c0_i32_2 = arith.constant 0 : i32
    return %c0_i32, %c0_i32_0, %c0_i32_1 : i32, i32, i32
  }
  func.func @transform_3(%arg0: i32) -> (i32, i32, i32) {
    %c0_i32 = arith.constant 0 : i32
    %c0_i32_0 = arith.constant 0 : i32
    %c0_i32_1 = arith.constant 0 : i32
    %c0_i32_2 = arith.constant 0 : i32
    return %c0_i32, %c0_i32_0, %c0_i32_1 : i32, i32, i32
  }
  func.func @transform_4(%arg0: i32) -> (i32, i32) {
    %c0_i32 = arith.constant 0 : i32
    %c0_i32_0 = arith.constant 0 : i32
    %c0_i32_1 = arith.constant 0 : i32
    return %c0_i32, %c0_i32_0 : i32, i32
  }
  func.func @transform_5(%arg0: i32) -> (i32, i32) {
    %c0_i32 = arith.constant 0 : i32
    %c0_i32_0 = arith.constant 0 : i32
    %c0_i32_1 = arith.constant 0 : i32
    return %c0_i32, %c0_i32_0 : i32, i32
  }
  func.func @transform_6(%arg0: i32) -> (i32, i32) {
    %c0_i32 = arith.constant 0 : i32
    %c0_i32_0 = arith.constant 0 : i32
    %c0_i32_1 = arith.constant 0 : i32
    return %c0_i32, %c0_i32_0 : i32, i32
  }
  func.func @transform_7(%arg0: i32) -> (i32, i32) {
    %c0_i32 = arith.constant 0 : i32
    %c0_i32_0 = arith.constant 0 : i32
    %c0_i32_1 = arith.constant 0 : i32
    return %c0_i32, %c0_i32_0 : i32, i32
  }
  func.func @transform_8(%arg0: i32) -> (i32, i32) {
    %c0_i32 = arith.constant 0 : i32
    %c0_i32_0 = arith.constant 0 : i32
    %c0_i32_1 = arith.constant 0 : i32
    return %c0_i32, %c0_i32_0 : i32, i32
  }
  func.func @transform_9(%arg0: i32) -> (i32, i32) {
    %c0_i32 = arith.constant 0 : i32
    %c0_i32_0 = arith.constant 0 : i32
    %c0_i32_1 = arith.constant 0 : i32
    return %c0_i32, %c0_i32_0 : i32, i32
  }
  func.func @transform_10(%arg0: i32) -> (i32, i32) {
    %c0_i32 = arith.constant 0 : i32
    %c0_i32_0 = arith.constant 0 : i32
    %c0_i32_1 = arith.constant 0 : i32
    return %c0_i32, %c0_i32_0 : i32, i32
  }
  func.func @transform_11(%arg0: i32) -> (i32, i32) {
    %c0_i32 = arith.constant 0 : i32
    %c0_i32_0 = arith.constant 0 : i32
    %c0_i32_1 = arith.constant 0 : i32
    return %c0_i32, %c0_i32_0 : i32, i32
  }
  func.func @transform_12(%arg0: i32) -> (i32, i32) {
    %c0_i32 = arith.constant 0 : i32
    %c0_i32_0 = arith.constant 0 : i32
    %c0_i32_1 = arith.constant 0 : i32
    return %c0_i32, %c0_i32_0 : i32, i32
  }
  func.func @transform_13(%arg0: i32) -> (i32, i32) {
    %c0_i32 = arith.constant 0 : i32
    %c0_i32_0 = arith.constant 0 : i32
    %c0_i32_1 = arith.constant 0 : i32
    return %c0_i32, %c0_i32_0 : i32, i32
  }
  func.func @transform_14(%arg0: i32) -> (i32, i32, i32) {
    %c0_i32 = arith.constant 0 : i32
    %c0_i32_0 = arith.constant 0 : i32
    %c0_i32_1 = arith.constant 0 : i32
    return %c0_i32, %arg0, %c0_i32_0 : i32, i32, i32
  }
}

</mosaic_0001>

<bundles_post_ra>
// kernel: tpu_custom_call.1
= control target key start
LH: loop header
LB: loop body
LE: loop exit
PB: predicated region body
PF: predicated region fallthrough
CT: control target
= control target key end

     0   :  { %19 = vsyncpa [#allocation5], 0  ;;  %s4760_s0 = inlined_call_operand.vmem [shape: f32[8,3,2,32], index: 0, kind: input, shape index: {}]   ;;  %s4761_s1 = inlined_call_operand.hbm [shape: f32[2,32], index: 1, kind: input, shape index: {}]   ;;  %s4762_s2 = inlined_call_operand.hbm [shape: f32[2,8,32], index: 2, kind: input, shape index: {}]   ;;  %s4763_s3 = inlined_call_operand.hbm [shape: f32[2,1,8], index: 3, kind: input, shape index: {}]   ;;  %s4764_s4 = inlined_call_operand.vmem [shape: s32[2,1], index: 4, kind: input, shape index: {}]   ;;  %s4765_s5 = inlined_call_operand.hbm [shape: f32[32,32], index: 5, kind: input, shape index: {}]   ;;  %s4766_s6 = inlined_call_operand.hbm [shape: f32[32,32], index: 6, kind: input, shape index: {}]   ;;  %s4767_s7 = inlined_call_operand.hbm [shape: f32[32,32], index: 7, kind: input, shape index: {}]   ;;  %s4768_s8 = inlined_call_operand.vmem [shape: f32[1,32], index: 8, kind: input, shape index: {}]   ;;  %s4769_s9 = inlined_call_operand.vmem [shape: f32[32,32], index: 9, kind: input, shape index: {}]   ;;  %s4770_s10 = inlined_call_operand.hbm [shape: f32[32,32], index: 10, kind: input, shape index: {}]   ;;  %s4771_s11 = inlined_call_operand.hbm [shape: f32[1,32], index: 11, kind: input, shape index: {}]   ;;  %s4772_s12 = inlined_call_operand.vmem [shape: f32[32,16], index: 12, kind: input, shape index: {}]   ;;  %s4773_s13 = inlined_call_operand.vmem [shape: f32[1,16], index: 13, kind: input, shape index: {}]   ;;  %s4774_s14 = inlined_call_operand.hbm [shape: f32[2,8,16], index: 14, kind: output, shape index: {}]  }
   0x1   :  { %20 = vsyncpa [#allocation8], 0 }
   0x2   :  { %21 = vsyncpa [#allocation11], 0 }
   0x3   :  { %22 = vsyncpa [#allocation14], 0 }
   0x4   :  { %23 = vsyncpa [#allocation17], 0 }
   0x5   :  { %24 = vsyncpa [#allocation6], 0  ;;  %s4120_s29 = smov [#allocation7]   ;;  %s3910_s17 = scalar_lea.hbm %s4762_s2, 256 }
   0x6   :  { %s42_s30 = sshll.u32 %s4120_s29, 4  ;;  %p3911_p0 = scmp.ne.s32.totalorder %s4762_s2, %s3910_s17  ;;  %s43_s30 = int_to_ptr.vmem [resolvable:$true] %s42_s30 }
   0x7   :  { %p3914_p1 = scmp.lt.u32.totalorder %s3910_s17, %s4762_s2 }
   0x9   :  { %p3916_p2 = pnand %p3914_p1, %p3911_p0 }
   0xb   :  { %3919 = shalt.err (!%p3916_p2)
}
   0xc   :  { %s3920_s22 = scalar_lea.vmem %s43_s30, 256  ;;  %p3925_p4 = scmp.lt.s32.totalorder %s43_s30, %s43_s30 }
   0xd   :  { %p3921_p3 = scmp.ne.s32.totalorder %s43_s30, %s3920_s22  ;;  %p3926_p5 = scmp.lt.s32.totalorder %s3920_s22, %s3920_s22 }
   0xf   :  { %p3927_p6 = por %p3926_p5, %p3925_p4 }
  0x11   :  { %p3928_p7 = pnand %p3927_p6, %p3921_p3 }
  0x13   :  { %3931 = shalt.err (!%p3928_p7)
}
  0x14   :  { %s4121_s23 = smov 128   ;;  %s4122_s24 = smov 8  }
  0x15   :  { %48 = dma.hbm_to_vmem [thread:$0]  %s4762_s2, 256, %s43_s30, [#allocation8], %s4121_s23, %s4121_s23, %s4122_s24  }
  0x16   :  { %s4123_s27 = smov [#allocation10]   ;;  %s4124_s29 = smov [#allocation13]  }
  0x17   :  { %s68_s28 = sshll.u32 %s4123_s27, 4  ;;  %s92_s15 = sshll.u32 %s4124_s29, 4  ;;  %s69_s28 = int_to_ptr.vmem [resolvable:$true] %s68_s28  ;;  %s93_s15 = int_to_ptr.vmem [resolvable:$true] %s92_s15 }
  0x18   :  { %s3932_s18 = scalar_lea.hbm %s4765_s5, 512 }
  0x19   :  { %p3933_p8 = scmp.ne.s32.totalorder %s4765_s5, %s3932_s18  ;;  %p3936_p9 = scmp.lt.u32.totalorder %s3932_s18, %s4765_s5 }
  0x1b   :  { %p3938_p10 = pnand %p3936_p9, %p3933_p8 }
  0x1d   :  { %3941 = shalt.err (!%p3938_p10)
}
  0x1e   :  { %s3942_s2 = scalar_lea.vmem %s69_s28, 512  ;;  %p3947_p12 = scmp.lt.s32.totalorder %s69_s28, %s69_s28 }
  0x1f   :  { %p3943_p11 = scmp.ne.s32.totalorder %s69_s28, %s3942_s2  ;;  %p3948_p13 = scmp.lt.s32.totalorder %s3942_s2, %s3942_s2 }
  0x21   :  { %p3949_p0 = por %p3948_p13, %p3947_p12 }
  0x23   :  { %p3950_p1 = pnand %p3949_p0, %p3943_p11 }
  0x25   :  { %3953 = shalt.err (!%p3950_p1)
}
  0x26   :  { %74 = dma.hbm_to_vmem [thread:$0]  %s4765_s5, 512, %s69_s28, [#allocation11], %s4121_s23, %s4121_s23, %s4122_s24  }
  0x27   :  { %s3954_s29 = scalar_lea.hbm %s4767_s7, 512 }
  0x28   :  { %p3955_p2 = scmp.ne.s32.totalorder %s4767_s7, %s3954_s29  ;;  %p3958_p3 = scmp.lt.u32.totalorder %s3954_s29, %s4767_s7 }
  0x2a   :  { %p3960_p4 = pnand %p3958_p3, %p3955_p2 }
  0x2c   :  { %3963 = shalt.err (!%p3960_p4)
}
  0x2d   :  { %s3964_s20 = scalar_lea.vmem %s93_s15, 512  ;;  %p3969_p6 = scmp.lt.s32.totalorder %s93_s15, %s93_s15 }
  0x2e   :  { %p3965_p5 = scmp.ne.s32.totalorder %s93_s15, %s3964_s20  ;;  %p3970_p7 = scmp.lt.s32.totalorder %s3964_s20, %s3964_s20 }
  0x30   :  { %p3971_p8 = por %p3970_p7, %p3969_p6 }
  0x32   :  { %p3972_p9 = pnand %p3971_p8, %p3965_p5 }
  0x34   :  { %3975 = shalt.err (!%p3972_p9)
}
  0x35   :  { %98 = dma.hbm_to_vmem [thread:$0]  %s4767_s7, 512, %s93_s15, [#allocation14], %s4121_s23, %s4121_s23, %s4122_s24  }
  0x36   :  { %s4125_s21 = smov [#allocation4]   ;;  %s4126_s2 = smov [#allocation9]  }
  0x37   :  { %s33_s22 = sshll.u32 %s4125_s21, 4  ;;  %s54_s30 = sshll.u32 %s4126_s2, 4  ;;  %s34_s22 = int_to_ptr.vmem [resolvable:$true] %s33_s22  ;;  %s55_s30 = int_to_ptr.vmem [resolvable:$true] %s54_s30 }
  0x38   :  { %s3976_s27 = scalar_lea.hbm %s4761_s1, 32 }
  0x39   :  { %p3977_p10 = scmp.ne.s32.totalorder %s4761_s1, %s3976_s27  ;;  %p3980_p11 = scmp.lt.u32.totalorder %s3976_s27, %s4761_s1 }
  0x3b   :  { %p3982_p12 = pnand %p3980_p11, %p3977_p10 }
  0x3d   :  { %3985 = shalt.err (!%p3982_p12)
}
  0x3e   :  { %s3986_s7 = scalar_lea.vmem %s34_s22, 32  ;;  %p3991_p0 = scmp.lt.s32.totalorder %s34_s22, %s34_s22 }
  0x3f   :  { %p3987_p13 = scmp.ne.s32.totalorder %s34_s22, %s3986_s7  ;;  %p3992_p1 = scmp.lt.s32.totalorder %s3986_s7, %s3986_s7 }
  0x41   :  { %p3993_p2 = por %p3992_p1, %p3991_p0 }
  0x43   :  { %p3994_p3 = pnand %p3993_p2, %p3987_p13 }
  0x45   :  { %3997 = shalt.err (!%p3994_p3)
}
  0x46   :  { %36 = dma.hbm_to_vmem [thread:$0]  %s4761_s1, 32, %s34_s22, [#allocation5]  }
  0x47   :  { %s3998_s28 = scalar_lea.hbm %s4763_s3, 32 }
  0x48   :  { %p3999_p4 = scmp.ne.s32.totalorder %s4763_s3, %s3998_s28  ;;  %p4002_p5 = scmp.lt.u32.totalorder %s3998_s28, %s4763_s3 }
  0x4a   :  { %p4004_p6 = pnand %p4002_p5, %p3999_p4 }
  0x4c   :  { %4007 = shalt.err (!%p4004_p6)
}
  0x4d   :  { %s4008_s27 = scalar_lea.vmem %s55_s30, 32  ;;  %p4013_p8 = scmp.lt.s32.totalorder %s55_s30, %s55_s30 }
  0x4e   :  { %p4009_p7 = scmp.ne.s32.totalorder %s55_s30, %s4008_s27  ;;  %p4014_p9 = scmp.lt.s32.totalorder %s4008_s27, %s4008_s27 }
  0x50   :  { %p4015_p10 = por %p4014_p9, %p4013_p8 }
  0x52   :  { %p4016_p11 = pnand %p4015_p10, %p4009_p7 }
  0x54   :  { %4019 = shalt.err (!%p4016_p11)
}
  0x55   :  { %s4127_s1 = smov 16   ;;  %s4128_s22 = smov 1  }
  0x56   :  { %60 = dma.hbm_to_vmem [thread:$0]  %s4763_s3, 32, %s55_s30, [#allocation8], %s4127_s1, %s4127_s1, %s4128_s22  }
  0x57   :  { %s4129_s17 = smov [#allocation12]   ;;  %s4130_s7 = smov [#allocation15]  }
  0x58   :  { %s80_s18 = sshll.u32 %s4129_s17, 4  ;;  %s108_s15 = sshll.u32 %s4130_s7, 4  ;;  %s81_s18 = int_to_ptr.vmem [resolvable:$true] %s80_s18  ;;  %s109_s15 = int_to_ptr.vmem [resolvable:$true] %s108_s15 }
  0x59   :  { %s4020_s5 = scalar_lea.hbm %s4766_s6, 512 }
  0x5a   :  { %p4021_p12 = scmp.ne.s32.totalorder %s4766_s6, %s4020_s5  ;;  %p4024_p13 = scmp.lt.u32.totalorder %s4020_s5, %s4766_s6 }
  0x5c   :  { %p4026_p0 = pnand %p4024_p13, %p4021_p12 }
  0x5e   :  { %4029 = shalt.err (!%p4026_p0)
}
  0x5f   :  { %s4030_s3 = scalar_lea.vmem %s81_s18, 512  ;;  %p4035_p2 = scmp.lt.s32.totalorder %s81_s18, %s81_s18 }
  0x60   :  { %p4031_p1 = scmp.ne.s32.totalorder %s81_s18, %s4030_s3  ;;  %p4036_p3 = scmp.lt.s32.totalorder %s4030_s3, %s4030_s3 }
  0x62   :  { %p4037_p4 = por %p4036_p3, %p4035_p2 }
  0x64   :  { %p4038_p5 = pnand %p4037_p4, %p4031_p1 }
  0x66   :  { %4041 = shalt.err (!%p4038_p5)
}
  0x67   :  { %86 = dma.hbm_to_vmem [thread:$0]  %s4766_s6, 512, %s81_s18, [#allocation11], %s4121_s23, %s4121_s23, %s4122_s24  }
  0x68   :  { %s4042_s22 = scalar_lea.hbm %s4770_s10, 512 }
  0x69   :  { %p4043_p6 = scmp.ne.s32.totalorder %s4770_s10, %s4042_s22  ;;  %p4046_p7 = scmp.lt.u32.totalorder %s4042_s22, %s4770_s10 }
  0x6b   :  { %p4048_p8 = pnand %p4046_p7, %p4043_p6 }
  0x6d   :  { %4051 = shalt.err (!%p4048_p8)
}
  0x6e   :  { %s4052_s19 = scalar_lea.vmem %s109_s15, 512  ;;  %p4057_p10 = scmp.lt.s32.totalorder %s109_s15, %s109_s15 }
  0x6f   :  { %p4053_p9 = scmp.ne.s32.totalorder %s109_s15, %s4052_s19  ;;  %p4058_p11 = scmp.lt.s32.totalorder %s4052_s19, %s4052_s19 }
  0x71   :  { %p4059_p12 = por %p4058_p11, %p4057_p10 }
  0x73   :  { %p4060_p13 = pnand %p4059_p12, %p4053_p9 }
  0x75   :  { %4063 = shalt.err (!%p4060_p13)
}
  0x76   :  { %114 = dma.hbm_to_vmem [thread:$0]  %s4770_s10, 512, %s109_s15, [#allocation14], %s4121_s23, %s4121_s23, %s4122_s24  }
  0x77   :  { %s4131_s20 = smov [#allocation16]   ;;  %s4064_s2 = scalar_lea.hbm %s4771_s11, 16 }
  0x78   :  { %s121_s5 = sshll.u32 %s4131_s20, 4  ;;  %p4065_p0 = scmp.ne.s32.totalorder %s4771_s11, %s4064_s2  ;;  %s122_s5 = int_to_ptr.vmem [resolvable:$true] %s121_s5 }
  0x79   :  { %p4068_p1 = scmp.lt.u32.totalorder %s4064_s2, %s4771_s11 }
  0x7b   :  { %p4070_p2 = pnand %p4068_p1, %p4065_p0 }
  0x7d   :  { %4073 = shalt.err (!%p4070_p2)
}
  0x7e   :  { %s4074_s27 = scalar_lea.vmem %s122_s5, 16  ;;  %s4078_s10 = scalar_lea.vmem %s122_s5, 32 }
  0x7f   :  { %p4075_p3 = scmp.ne.s32.totalorder %s122_s5, %s4074_s27  ;;  %p4079_p4 = scmp.lt.s32.totalorder %s122_s5, %s122_s5 }
  0x80   :  { %p4080_p5 = scmp.lt.s32.totalorder %s4078_s10, %s4074_s27 }
  0x82   :  { %p4081_p6 = por %p4080_p5, %p4079_p4 }
  0x84   :  { %p4082_p7 = pnand %p4081_p6, %p4075_p3 }
  0x86   :  { %4085 = shalt.err (!%p4082_p7)
}
  0x87   :  { %124 = dma.hbm_to_vmem [thread:$0]  %s4771_s11, 16, %s122_s5, [#allocation17]  }
  0x88   :  { %4108 = dma.done.wait [#allocation5], 32  }
  0x89   :  { %4109 = vsyncadd [#allocation5], 4294967264 }
  0x8a   :  { %4110 = dma.done.wait [#allocation8], 288  }
  0x8b   :  { %4111 = vsyncadd [#allocation8], 4294967008 }
  0x8c   :  { %4112 = dma.done.wait [#allocation11], 1024  }
  0x8d   :  { %4113 = vsyncadd [#allocation11], 4294966272 }
  0x8e   :  { %4114 = dma.done.wait [#allocation14], 1024  }
  0x8f   :  { %4115 = vsyncadd [#allocation14], 4294966272 }
  0x90   :  { %4116 = dma.done.wait [#allocation17], 16  }
  0x91   :  { %4117 = vsyncadd [#allocation17], 4294967280  ;;  %v4132_v0 = vmov 0.0|0.0   ;;  %vm4133_vm0 = vmmov 0   ;;  %v4134_v1 = vmov 0.0   ;;  %v4135_v2 = vmov 0  }
  0x92   :  { %3619 = vmatprep.subr.bf16.mxu0 %v4132_v0  ;;  %3310 = vmatprep.mubr.msk.f32.mxu0 %vm4133_vm0, %v4134_v1  ;;  %vm158_vm1 = vcmask 254976   ;;  %v160_v3 = vld [vmem:[#allocation10] sm:$0xff]  ;;  %v161_v4 = vld [vmem:[#allocation10 + $0x8] sm:$0xff]  ;;  %v162_v5 = vld [vmem:[#allocation10 + $0x10] sm:$0xff]  ;;  %vm179_vm3 = vcmask 261120   ;;  %v424_v52 = vlaneseq  ;;  %vm445_vm7 = vcmask 253952  }
  0x93   :  { %3625 = vmatprep.subr.bf16.mxu1 %v4132_v0  ;;  %3321 = vmatprep.mubr.msk.f32.mxu1 %vm4133_vm0, %v4134_v1  ;;  %v4330_v6 = vpack.c.bf16 %v161_v4, %v160_v3  ;;  %v163_v7 = vld [vmem:[#allocation10 + $0x18] sm:$0xff]  ;;  %v157_v8 = vld [vmem:[#allocation4] sm:$0x3]  ;;  %v164_v9 = vld [vmem:[#allocation12] sm:$0xff]  ;;  %v4136_v50 = vmov 1966171168  }
  0x94   :  { %3807 = vset.pattern.permute.xlu0 %v4135_v2  ;;  %3808 = vset.pattern.permute.xlu1 %v4135_v2  ;;  %159 = vst.msk [vmem:[#allocation2] sm:$0x3] %vm158_vm1, %v157_v8  ;;  %v165_v10 = vld [vmem:[#allocation12 + $0x8] sm:$0xff]  ;;  %v166_v11 = vld [vmem:[#allocation12 + $0x10] sm:$0xff]  ;;  %v167_v12 = vld [vmem:[#allocation12 + $0x18] sm:$0xff]  ;;  %v4334_v13 = vpack.c.bf16 %v163_v7, %v162_v5  ;;  %v422_v51 = vunpack.c.l.s4 %v4136_v50  ;;  %v425_v55 = vshrl.u32 %v424_v52, 7 }
  0x95   :  { %3621 = vmatpush3.bf16.msra.mxu0 %v4330_v6  ;;  %v4336_v14 = vpack.c.bf16 %v165_v10, %v164_v9  ;;  %v168_v15 = vld [vmem:[#allocation13] sm:$0xff]  ;;  %v169_v16 = vld [vmem:[#allocation13 + $0x8] sm:$0xff]  ;;  %v4342_v17 = vld [vmem:[%s4764_s4] sm:$0x3]  ;;  %v4345_v18 = vpack.c.bf16 %v167_v12, %v166_v11  ;;  %vm2578_vm11 = vcmask 64512   ;;  %vm3014_vm12 = vcmask 130048  }
  0x96   :  { %3622 = vmatprep.subr.bf16.mxu0 %v4132_v0  ;;  %vm3068_vm2 = vcmp.gt.s32.totalorder %v4342_v17, 0  ;;  %v4351_v20 = vpack.c.bf16 %v169_v16, %v168_v15  ;;  %vm3078_vm4 = vcmp.gt.s32.totalorder %v4342_v17, 1  ;;  %v170_v21 = vld [vmem:[#allocation13 + $0x10] sm:$0xff]  ;;  %v171_v22 = vld [vmem:[#allocation13 + $0x18] sm:$0xff]  ;;  %vm3108_vm5 = vcmp.gt.s32.totalorder %v4342_v17, 4  ;;  %s4137_s1 = smov [#allocation18]  }
  0x97   :  { %3627 = vmatpush3.bf16.msra.mxu1 %v4336_v14  ;;  %v3069_v19 = vsel %vm3068_vm2, 1.0, %v4134_v1  ;;  %v3079_v24 = vsel %vm3078_vm4, 1.0, %v4134_v1  ;;  %v4363_v25 = vpack.c.bf16 %v171_v22, %v170_v21  ;;  %v3109_v26 = vsel %vm3108_vm5, 1.0, %v4134_v1  ;;  %v176_v28 = vld [vmem:[%s4760_s0] sm:$0x3] }
  0x98   :  { %3628 = vmatprep.subr.bf16.mxu1 %v4132_v0  ;;  %455 = vperm.xlu0 %3807, %v3069_v19   ;;  %vm3128_vm6 = vcmp.gt.s32.totalorder %v4342_v17, 6  ;;  %v177_v30 = vld [vmem:[%s4760_s0 + $0x2] sm:$0x3]  ;;  %v4399_v43 = vld [vmem:[%s4768_s8] ss:$0 sm:$0xff]  ;;  %v423_v54 = vunpack.c.0.s8 %v422_v51  ;;  %vm3088_vm8 = vcmp.gt.s32.totalorder %v4342_v17, 2 }
  0x99   :  { %3624 = vmatpush3.bf16.msra.mxu0 %v4334_v13  ;;  %v3129_v27 = vsel %vm3128_vm6, 1.0, %v4134_v1  ;;  %v178_v47 = vld [vmem:[%s4760_s0 + $0x4] sm:$0x3]  ;;  %vm3098_vm9 = vcmp.gt.s32.totalorder %v4342_v17, 3  ;;  %v3089_v9 = vsel %vm3088_vm8, 1.0, %v4134_v1  ;;  %vm3118_vm10 = vcmp.gt.s32.totalorder %v4342_v17, 5 }
  0x9a   :  { %3631 = vmatprep.subr.bf16.mxu0 %v4132_v0  ;;  %v4405_v58 = vsub.s32 %v423_v54, %v425_v55  ;;  %1011 = vperm.xlu1 %3808, %v3089_v9   ;;  %v3099_v10 = vsel %vm3098_vm9, 1.0, %v4134_v1  ;;  %v3119_v11 = vsel %vm3118_vm10, 1.0, %v4134_v1  ;;  %v3070_v12 = vld [vmem:[%s4760_s0 + $0x6] sm:$0x3]  ;;  %v3071_v21 = vld [vmem:[%s4760_s0 + $0x8] sm:$0x3] }
  0x9b   :  { %v4355_v23 = vld [vmem:[#allocation2] sm:$0x3]  ;;  %3630 = vmatpush3.bf16.msra.mxu1 %v4345_v18 }
  0x9c   :  { %3311 = vmatmul.mubr.msk.f32.vlgmr.msra.gmra.mrb[0].mxu0 %vm179_vm3, %v4355_v23  ;;  %3637 = vmatprep.subr.bf16.mxu1 %v4132_v0 }
  0x9d   :  { %3633 = vmatpush3.bf16.msra.mxu0 %v4351_v20  ;;  %3332 = vmatprep.mubr.msk.f32.mxu0 %vm4133_vm0, %v4134_v1 }
  0x9e   :  { %3322 = vmatmul.mubr.msk.f32.vlgmr.msra.gmra.mrb[0].mxu1 %vm179_vm3, %v4355_v23  ;;  %3634 = vmatprep.subr.bf16.mxu0 %v4132_v0 }
  0x9f   :  { %733 = vperm.xlu0 %3807, %v3079_v24   ;;  %3639 = vmatpush3.bf16.msra.mxu1 %v4330_v6 }
  0xa0   :  { %3640 = vmatprep.subr.bf16.mxu1 %v4132_v0  ;;  %3343 = vmatprep.mubr.msk.f32.mxu1 %vm4133_vm0, %v4134_v1 }
  0xa1   :  { %3636 = vmatpush3.bf16.msra.mxu0 %v4363_v25  ;;  %1289 = vperm.xlu1 %3808, %v3099_v10  }
  0xa2   :  { %3643 = vmatprep.subr.bf16.mxu0 %v4132_v0 }
  0xa3   :  { %1567 = vperm.xlu0 %3807, %v3109_v26   ;;  %3642 = vmatpush3.bf16.msra.mxu1 %v4334_v13 }
  0xa4   :  { %3333 = vmatmul.mubr.msk.f32.vlgmr.msra.gmra.mrb[2].mxu0 %vm179_vm3, %v4355_v23  ;;  %3649 = vmatprep.subr.bf16.mxu1 %v4132_v0 }
  0xa5   :  { %3645 = vmatpush3.bf16.msra.mxu0 %v4336_v14  ;;  %3354 = vmatprep.mubr.msk.f32.mxu0 %vm4133_vm0, %v4134_v1 }
  0xa6   :  { %3646 = vmatprep.subr.bf16.mxu0 %v4132_v0  ;;  %1845 = vperm.xlu1 %3808, %v3119_v11   ;;  %v3082_v11 = vld [vmem:[%s4760_s0 + $0x10] sm:$0x3] }
  0xa7   :  { %2123 = vperm.xlu0 %3807, %v3129_v27  }
  0xa9   :  { %3648 = vmatpush3.bf16.msra.mxu0 %v4345_v18 }
  0xaa   :  { %3655 = vmatprep.subr.bf16.mxu0 %v4132_v0 }
 0x117   :  { %v456_v2 = vpop.permute.xlu0 %455 }
 0x16f   :  { %v249_v29 = vpop.f32.mrb[0].mxu0 }
 0x170   :  { %v399_v31 = vadd.f32 %v249_v29, %v176_v28  ;;  %v3312_v32 = vpop.f32.mrb[1].mxu0 }
 0x171   :  { %v319_v33 = vpop.f32.mrb[0].mxu1 }
 0x172   :  { %v3066_v34 = vmul.f32 -1.442695, %v399_v31  ;;  %v406_v35 = vadd.f32 %v319_v33, %v177_v30  ;;  %v3323_v36 = vpop.f32.mrb[1].mxu1 }
 0x174   :  { %3809 = vpow2.f32 %v3066_v34  ;;  %v3067_v37 = vmul.f32 -1.442695, %v406_v35  ;;  %v3072_v35 = vld [vmem:[%s4760_s0 + $0xa] sm:$0x3] }
 0x176   :  { %3811 = vpow2.f32 %v3067_v37 }
 0x177   :  { %v395_v38 = vpop.f32.mrb[2].mxu0 }
 0x178   :  { %v3334_v39 = vpop.f32.mrb[3].mxu0  ;;  %v396_v45 = vadd.f32 %v4399_v43, %v395_v38 }
 0x17e   :  { %v3810_v40 = vpop.eup %3809 }
 0x17f   :  { %v403_v41 = vadd.f32 1.0, %v3810_v40 }
 0x180   :  { %v3812_v42 = vpop.eup %3811 }
 0x181   :  { %3813 = vrcp.f32 %v403_v41  ;;  %v410_v44 = vadd.f32 1.0, %v3812_v42 }
 0x183   :  { %3815 = vrcp.f32 %v410_v44 }
 0x18b   :  { %v3814_v46 = vpop.eup %3813 }
 0x18c   :  { %v413_v48 = vmul.f32 %v3814_v46, %v396_v45 }
 0x18d   :  { %v3816_v53 = vpop.eup %3815 }
 0x18e   :  { %v414_v49 = vadd.f32 %v413_v48, %v178_v47  ;;  %v416_v56 = vsub.f32 1.0, %v3816_v53  ;;  %v418_v60 = vmul.f32 %v3816_v53, %v4355_v23  ;;  %v734_v47 = vpop.permute.xlu0 %733  ;;  %v3080_v53 = vld [vmem:[%s4760_s0 + $0xc] sm:$0x3] }
 0x190   :  { %3817 = vtanh.f32 %v414_v49 }
 0x19a   :  { %v3818_v57 = vpop.eup %3817 }
 0x19b   :  { %v417_v59 = vmul.f32 %v3818_v57, %v416_v56  ;;  %v3081_v57 = vld [vmem:[%s4760_s0 + $0xe] sm:$0x3] }
 0x19d   :  { %v419_v61 = vadd.f32 %v418_v60, %v417_v59 }
 0x19f   :  { %v427_v62 = vrot.slane %v419_v61, %v4405_v58  ;;  %v452_v63 = vsub.f32 %v419_v61, %v4355_v23 }
 0x1a1   :  { %v428_v3 = vcombine.high %v427_v62, %v427_v62  ;;  %v435_v4 = vrot.slane %v427_v62, %v4405_v58  ;;  %v458_v5 = vmul.f32 %v456_v2, %v452_v63 }
 0x1a3   :  { %v442_v7 = vrot.slane %v428_v3, %v4405_v58  ;;  %446 = vst.msk [vmem:[#allocation3] sm:$0x1] %vm445_vm7, %v435_v4  ;;  %v4414_v8 = vadd.f32 %v458_v5, %v4355_v23 }
 0x1a5   :  { %447 = vst.msk [vmem:[#allocation3 + $0x8] sm:$0x1] %vm445_vm7, %v442_v7  ;;  %3344 = vmatmul.mubr.msk.f32.vlgmr.msra.gmra.mrb[2].mxu1 %vm179_vm3, %v4414_v8  ;;  %3355 = vmatmul.mubr.msk.f32.vlgmr.msra.gmra.mrb[4].mxu0 %vm179_vm3, %v4414_v8 }
 0x1a6   :  { %3651 = vmatpush3.bf16.msra.mxu1 %v4351_v20  ;;  %3365 = vmatprep.mubr.msk.f32.mxu1 %vm4133_vm0, %v4134_v1 }
 0x1a7   :  { %3652 = vmatprep.subr.bf16.mxu1 %v4132_v0  ;;  %3657 = vmatpush3.bf16.msra.mxu0 %v4330_v6 }
 0x1a8   :  { %3658 = vmatprep.subr.bf16.mxu0 %v4132_v0  ;;  %3376 = vmatprep.mubr.msk.f32.mxu0 %vm4133_vm0, %v4134_v1 }
 0x1aa   :  { %3654 = vmatpush3.bf16.msra.mxu1 %v4363_v25 }
 0x1ab   :  { %3661 = vmatprep.subr.bf16.mxu1 %v4132_v0  ;;  %3660 = vmatpush3.bf16.msra.mxu0 %v4334_v13 }
 0x1ac   :  { %3667 = vmatprep.subr.bf16.mxu0 %v4132_v0 }
 0x1ad   :  { %3366 = vmatmul.mubr.msk.f32.vlgmr.msra.gmra.mrb[4].mxu1 %vm179_vm3, %v4414_v8 }
 0x1ae   :  { %3663 = vmatpush3.bf16.msra.mxu1 %v4336_v14  ;;  %3387 = vmatprep.mubr.msk.f32.mxu1 %vm4133_vm0, %v4134_v1 }
 0x1af   :  { %3664 = vmatprep.subr.bf16.mxu1 %v4132_v0 }
 0x1b2   :  { %3666 = vmatpush3.bf16.msra.mxu1 %v4345_v18 }
 0x1b3   :  { %3673 = vmatprep.subr.bf16.mxu1 %v4132_v0 }
 0x278   :  { %v533_v15 = vpop.f32.mrb[2].mxu1  ;;  %v603_v16 = vpop.f32.mrb[4].mxu0 }
 0x279   :  { %v677_v19 = vadd.f32 %v3070_v12, %v533_v15  ;;  %v3345_v22 = vpop.f32.mrb[3].mxu1  ;;  %v3356_v23 = vpop.f32.mrb[5].mxu0  ;;  %v684_v26 = vadd.f32 %v3071_v21, %v603_v16 }
 0x27b   :  { %v3076_v24 = vmul.f32 -1.442695, %v677_v19  ;;  %v3077_v17 = vmul.f32 -1.442695, %v684_v26 }
 0x27d   :  { %3819 = vpow2.f32 %v3076_v24 }
 0x27e   :  { %3821 = vpow2.f32 %v3077_v17 }
 0x280   :  { %v673_v27 = vpop.f32.mrb[4].mxu1 }
 0x281   :  { %v3367_v28 = vpop.f32.mrb[5].mxu1  ;;  %v674_v33 = vadd.f32 %v4399_v43, %v673_v27  ;;  %v1012_v27 = vpop.permute.xlu1 %1011 }
 0x287   :  { %v3820_v29 = vpop.eup %3819 }
 0x288   :  { %v681_v30 = vadd.f32 1.0, %v3820_v29  ;;  %v3822_v31 = vpop.eup %3821 }
 0x289   :  { %v688_v32 = vadd.f32 1.0, %v3822_v31 }
 0x28a   :  { %3823 = vrcp.f32 %v681_v30 }
 0x28b   :  { %3825 = vrcp.f32 %v688_v32 }
 0x294   :  { %v3824_v34 = vpop.eup %3823 }
 0x295   :  { %v691_v36 = vmul.f32 %v3824_v34, %v674_v33  ;;  %v3826_v38 = vpop.eup %3825  ;;  %v3090_v33 = vld [vmem:[%s4760_s0 + $0x12] sm:$0x3] }
 0x296   :  { %v694_v39 = vsub.f32 1.0, %v3826_v38  ;;  %v696_v41 = vmul.f32 %v3826_v38, %v4414_v8 }
 0x297   :  { %v692_v37 = vadd.f32 %v3072_v35, %v691_v36 }
 0x299   :  { %3827 = vtanh.f32 %v692_v37  ;;  %v3091_v37 = vld [vmem:[%s4760_s0 + $0x14] sm:$0x3] }
 0x2a3   :  { %v3828_v40 = vpop.eup %3827 }
 0x2a4   :  { %v695_v42 = vmul.f32 %v3828_v40, %v694_v39 }
 0x2a6   :  { %v697_v44 = vadd.f32 %v696_v41, %v695_v42 }
 0x2a8   :  { %v705_v45 = vrot.slane %v697_v44, %v4405_v58  ;;  %v730_v46 = vsub.f32 %v697_v44, %v4414_v8 }
 0x2aa   :  { %v706_v48 = vcombine.high %v705_v45, %v705_v45  ;;  %v713_v49 = vrot.slane %v705_v45, %v4405_v58  ;;  %v736_v50 = vmul.f32 %v734_v47, %v730_v46 }
 0x2ac   :  { %v720_v51 = vrot.slane %v706_v48, %v4405_v58  ;;  %723 = vst.msk [vmem:[#allocation3 + $0x1] sm:$0x1] %vm445_vm7, %v713_v49  ;;  %v737_v52 = vadd.f32 %v736_v50, %v4414_v8 }
 0x2ae   :  { %724 = vst.msk [vmem:[#allocation3 + $0x9] sm:$0x1] %vm445_vm7, %v720_v51  ;;  %3377 = vmatmul.mubr.msk.f32.vlgmr.msra.gmra.mrb[6].mxu0 %vm179_vm3, %v737_v52  ;;  %3388 = vmatmul.mubr.msk.f32.vlgmr.msra.gmra.mrb[6].mxu1 %vm179_vm3, %v737_v52 }
 0x2af   :  { %3669 = vmatpush3.bf16.msra.mxu0 %v4351_v20  ;;  %3398 = vmatprep.mubr.msk.f32.mxu0 %vm4133_vm0, %v4134_v1 }
 0x2b0   :  { %3670 = vmatprep.subr.bf16.mxu0 %v4132_v0  ;;  %3675 = vmatpush3.bf16.msra.mxu1 %v4330_v6 }
 0x2b1   :  { %3676 = vmatprep.subr.bf16.mxu1 %v4132_v0  ;;  %3409 = vmatprep.mubr.msk.f32.mxu1 %vm4133_vm0, %v4134_v1 }
 0x2b3   :  { %3672 = vmatpush3.bf16.msra.mxu0 %v4363_v25 }
 0x2b4   :  { %3679 = vmatprep.subr.bf16.mxu0 %v4132_v0  ;;  %3678 = vmatpush3.bf16.msra.mxu1 %v4334_v13 }
 0x2b5   :  { %3685 = vmatprep.subr.bf16.mxu1 %v4132_v0 }
 0x2b6   :  { %3399 = vmatmul.mubr.msk.f32.vlgmr.msra.gmra.mrb[8].mxu0 %vm179_vm3, %v737_v52 }
 0x2b7   :  { %3681 = vmatpush3.bf16.msra.mxu0 %v4336_v14  ;;  %3420 = vmatprep.mubr.msk.f32.mxu0 %vm4133_vm0, %v4134_v1 }
 0x2b8   :  { %3682 = vmatprep.subr.bf16.mxu0 %v4132_v0 }
 0x2bb   :  { %3684 = vmatpush3.bf16.msra.mxu0 %v4345_v18 }
 0x2bc   :  { %3691 = vmatprep.subr.bf16.mxu0 %v4132_v0 }
 0x381   :  { %v811_v54 = vpop.f32.mrb[6].mxu0  ;;  %v881_v55 = vpop.f32.mrb[6].mxu1 }
 0x382   :  { %v955_v56 = vadd.f32 %v3080_v53, %v811_v54  ;;  %v3378_v59 = vpop.f32.mrb[7].mxu0  ;;  %v3389_v60 = vpop.f32.mrb[7].mxu1  ;;  %v962_v62 = vadd.f32 %v3081_v57, %v881_v55 }
 0x384   :  { %v3086_v61 = vmul.f32 -1.442695, %v955_v56  ;;  %v3087_v63 = vmul.f32 -1.442695, %v962_v62 }
 0x386   :  { %3829 = vpow2.f32 %v3086_v61 }
 0x387   :  { %3831 = vpow2.f32 %v3087_v63 }
 0x389   :  { %v951_v2 = vpop.f32.mrb[8].mxu0 }
 0x38a   :  { %v3400_v3 = vpop.f32.mrb[9].mxu0  ;;  %v952_v9 = vadd.f32 %v4399_v43, %v951_v2  ;;  %v1290_v2 = vpop.permute.xlu1 %1289 }
 0x390   :  { %v3830_v4 = vpop.eup %3829 }
 0x391   :  { %v959_v5 = vadd.f32 1.0, %v3830_v4  ;;  %v3832_v7 = vpop.eup %3831 }
 0x392   :  { %v966_v8 = vadd.f32 1.0, %v3832_v7 }
 0x393   :  { %3833 = vrcp.f32 %v959_v5 }
 0x394   :  { %3835 = vrcp.f32 %v966_v8 }
 0x39d   :  { %v3834_v10 = vpop.eup %3833 }
 0x39e   :  { %v969_v12 = vmul.f32 %v3834_v10, %v952_v9  ;;  %v3836_v16 = vpop.eup %3835  ;;  %v3100_v9 = vld [vmem:[%s4760_s0 + $0x18] sm:$0x3] }
 0x39f   :  { %v972_v19 = vsub.f32 1.0, %v3836_v16  ;;  %v974_v23 = vmul.f32 %v3836_v16, %v737_v52 }
 0x3a0   :  { %v970_v15 = vadd.f32 %v3082_v11, %v969_v12 }
 0x3a2   :  { %3837 = vtanh.f32 %v970_v15  ;;  %v3101_v15 = vld [vmem:[%s4760_s0 + $0x1a] sm:$0x3] }
 0x3ac   :  { %v3838_v21 = vpop.eup %3837 }
 0x3ad   :  { %v973_v22 = vmul.f32 %v3838_v21, %v972_v19 }
 0x3af   :  { %v975_v24 = vadd.f32 %v974_v23, %v973_v22 }
 0x3b1   :  { %v983_v26 = vrot.slane %v975_v24, %v4405_v58  ;;  %v1008_v17 = vsub.f32 %v975_v24, %v737_v52 }
 0x3b3   :  { %v984_v28 = vcombine.high %v983_v26, %v983_v26  ;;  %v991_v29 = vrot.slane %v983_v26, %v4405_v58  ;;  %v1014_v30 = vmul.f32 %v1012_v27, %v1008_v17 }
 0x3b5   :  { %v998_v31 = vrot.slane %v984_v28, %v4405_v58  ;;  %1001 = vst.msk [vmem:[#allocation3 + $0x2] sm:$0x1] %vm445_vm7, %v991_v29  ;;  %v1015_v32 = vadd.f32 %v1014_v30, %v737_v52  ;;  %v3092_v52 = vld [vmem:[%s4760_s0 + $0x16] sm:$0x3] }
 0x3b7   :  { %1002 = vst.msk [vmem:[#allocation3 + $0xa] sm:$0x1] %vm445_vm7, %v998_v31  ;;  %3410 = vmatmul.mubr.msk.f32.vlgmr.msra.gmra.mrb[8].mxu1 %vm179_vm3, %v1015_v32  ;;  %3421 = vmatmul.mubr.msk.f32.vlgmr.msra.gmra.mrb[10].mxu0 %vm179_vm3, %v1015_v32 }
 0x3b8   :  { %3687 = vmatpush3.bf16.msra.mxu1 %v4351_v20  ;;  %3431 = vmatprep.mubr.msk.f32.mxu1 %vm4133_vm0, %v4134_v1 }
 0x3b9   :  { %3688 = vmatprep.subr.bf16.mxu1 %v4132_v0  ;;  %3693 = vmatpush3.bf16.msra.mxu0 %v4330_v6 }
 0x3ba   :  { %3694 = vmatprep.subr.bf16.mxu0 %v4132_v0  ;;  %3442 = vmatprep.mubr.msk.f32.mxu0 %vm4133_vm0, %v4134_v1 }
 0x3bc   :  { %3690 = vmatpush3.bf16.msra.mxu1 %v4363_v25 }
 0x3bd   :  { %3697 = vmatprep.subr.bf16.mxu1 %v4132_v0  ;;  %3696 = vmatpush3.bf16.msra.mxu0 %v4334_v13 }
 0x3be   :  { %3703 = vmatprep.subr.bf16.mxu0 %v4132_v0 }
 0x3bf   :  { %3432 = vmatmul.mubr.msk.f32.vlgmr.msra.gmra.mrb[10].mxu1 %vm179_vm3, %v1015_v32 }
 0x3c0   :  { %3699 = vmatpush3.bf16.msra.mxu1 %v4336_v14  ;;  %3453 = vmatprep.mubr.msk.f32.mxu1 %vm4133_vm0, %v4134_v1 }
 0x3c1   :  { %3700 = vmatprep.subr.bf16.mxu1 %v4132_v0 }
 0x3c4   :  { %3702 = vmatpush3.bf16.msra.mxu1 %v4345_v18 }
 0x3c5   :  { %3709 = vmatprep.subr.bf16.mxu1 %v4132_v0 }
 0x48a   :  { %v1089_v34 = vpop.f32.mrb[8].mxu1  ;;  %v1159_v35 = vpop.f32.mrb[10].mxu0 }
 0x48b   :  { %v1233_v36 = vadd.f32 %v3090_v33, %v1089_v34  ;;  %v3411_v38 = vpop.f32.mrb[9].mxu1  ;;  %v3422_v39 = vpop.f32.mrb[11].mxu0  ;;  %v1240_v41 = vadd.f32 %v3091_v37, %v1159_v35 }
 0x48d   :  { %v3096_v40 = vmul.f32 -1.442695, %v1233_v36  ;;  %v3097_v42 = vmul.f32 -1.442695, %v1240_v41 }
 0x48f   :  { %3839 = vpow2.f32 %v3096_v40 }
 0x490   :  { %3841 = vpow2.f32 %v3097_v42 }
 0x492   :  { %v1229_v44 = vpop.f32.mrb[10].mxu1 }
 0x493   :  { %v3433_v45 = vpop.f32.mrb[11].mxu1  ;;  %v1230_v50 = vadd.f32 %v4399_v43, %v1229_v44  ;;  %v1568_v44 = vpop.permute.xlu0 %1567 }
 0x499   :  { %v3840_v46 = vpop.eup %3839 }
 0x49a   :  { %v1237_v47 = vadd.f32 1.0, %v3840_v46  ;;  %v3842_v48 = vpop.eup %3841 }
 0x49b   :  { %v1244_v49 = vadd.f32 1.0, %v3842_v48 }
 0x49c   :  { %3843 = vrcp.f32 %v1237_v47 }
 0x49d   :  { %3845 = vrcp.f32 %v1244_v49 }
 0x4a6   :  { %v3844_v51 = vpop.eup %3843 }
 0x4a7   :  { %v1247_v53 = vmul.f32 %v3844_v51, %v1230_v50  ;;  %v3846_v55 = vpop.eup %3845  ;;  %v3110_v50 = vld [vmem:[%s4760_s0 + $0x1e] sm:$0x3] }
 0x4a8   :  { %v1250_v56 = vsub.f32 1.0, %v3846_v55  ;;  %v1252_v59 = vmul.f32 %v3846_v55, %v1015_v32 }
 0x4a9   :  { %v1248_v54 = vadd.f32 %v3092_v52, %v1247_v53 }
 0x4ab   :  { %3847 = vtanh.f32 %v1248_v54  ;;  %v3111_v54 = vld [vmem:[%s4760_s0 + $0x20] sm:$0x3] }
 0x4b5   :  { %v3848_v57 = vpop.eup %3847 }
 0x4b6   :  { %v1251_v60 = vmul.f32 %v3848_v57, %v1250_v56 }
 0x4b8   :  { %v1253_v61 = vadd.f32 %v1252_v59, %v1251_v60 }
 0x4ba   :  { %v1261_v62 = vrot.slane %v1253_v61, %v4405_v58  ;;  %v1286_v63 = vsub.f32 %v1253_v61, %v1015_v32 }
 0x4bc   :  { %v1262_v3 = vcombine.high %v1261_v62, %v1261_v62  ;;  %v1269_v4 = vrot.slane %v1261_v62, %v4405_v58  ;;  %v1292_v5 = vmul.f32 %v1290_v2, %v1286_v63 }
 0x4be   :  { %v1276_v7 = vrot.slane %v1262_v3, %v4405_v58  ;;  %1279 = vst.msk [vmem:[#allocation3 + $0x3] sm:$0x1] %vm445_vm7, %v1269_v4  ;;  %v1293_v8 = vadd.f32 %v1292_v5, %v1015_v32  ;;  %v3102_v32 = vld [vmem:[%s4760_s0 + $0x1c] sm:$0x3] }
 0x4c0   :  { %1280 = vst.msk [vmem:[#allocation3 + $0xb] sm:$0x1] %vm445_vm7, %v1276_v7  ;;  %3443 = vmatmul.mubr.msk.f32.vlgmr.msra.gmra.mrb[12].mxu0 %vm179_vm3, %v1293_v8  ;;  %3454 = vmatmul.mubr.msk.f32.vlgmr.msra.gmra.mrb[12].mxu1 %vm179_vm3, %v1293_v8 }
 0x4c1   :  { %3705 = vmatpush3.bf16.msra.mxu0 %v4351_v20  ;;  %3464 = vmatprep.mubr.msk.f32.mxu0 %vm4133_vm0, %v4134_v1 }
 0x4c2   :  { %3706 = vmatprep.subr.bf16.mxu0 %v4132_v0  ;;  %3711 = vmatpush3.bf16.msra.mxu1 %v4330_v6 }
 0x4c3   :  { %3712 = vmatprep.subr.bf16.mxu1 %v4132_v0  ;;  %3475 = vmatprep.mubr.msk.f32.mxu1 %vm4133_vm0, %v4134_v1 }
 0x4c5   :  { %3708 = vmatpush3.bf16.msra.mxu0 %v4363_v25 }
 0x4c6   :  { %3715 = vmatprep.subr.bf16.mxu0 %v4132_v0  ;;  %3714 = vmatpush3.bf16.msra.mxu1 %v4334_v13 }
 0x4c7   :  { %3721 = vmatprep.subr.bf16.mxu1 %v4132_v0 }
 0x4c8   :  { %3465 = vmatmul.mubr.msk.f32.vlgmr.msra.gmra.mrb[14].mxu0 %vm179_vm3, %v1293_v8 }
 0x4c9   :  { %3717 = vmatpush3.bf16.msra.mxu0 %v4336_v14  ;;  %3486 = vmatprep.mubr.msk.f32.mxu0 %vm4133_vm0, %v4134_v1 }
 0x4ca   :  { %3718 = vmatprep.subr.bf16.mxu0 %v4132_v0 }
 0x4cd   :  { %3720 = vmatpush3.bf16.msra.mxu0 %v4345_v18 }
 0x4ce   :  { %3727 = vmatprep.subr.bf16.mxu0 %v4132_v0 }
 0x593   :  { %v1367_v10 = vpop.f32.mrb[12].mxu0  ;;  %v1437_v11 = vpop.f32.mrb[12].mxu1 }
 0x594   :  { %v1511_v12 = vadd.f32 %v3100_v9, %v1367_v10  ;;  %v3444_v16 = vpop.f32.mrb[13].mxu0  ;;  %v3455_v19 = vpop.f32.mrb[13].mxu1  ;;  %v1518_v22 = vadd.f32 %v3101_v15, %v1437_v11 }
 0x596   :  { %v3106_v21 = vmul.f32 -1.442695, %v1511_v12  ;;  %v3107_v23 = vmul.f32 -1.442695, %v1518_v22 }
 0x598   :  { %3849 = vpow2.f32 %v3106_v21 }
 0x599   :  { %3851 = vpow2.f32 %v3107_v23 }
 0x59b   :  { %v1507_v24 = vpop.f32.mrb[14].mxu0 }
 0x59c   :  { %v3466_v26 = vpop.f32.mrb[15].mxu0  ;;  %v1508_v30 = vadd.f32 %v4399_v43, %v1507_v24  ;;  %v1846_v24 = vpop.permute.xlu1 %1845 }
 0x5a2   :  { %v3850_v17 = vpop.eup %3849 }
 0x5a3   :  { %v1515_v27 = vadd.f32 1.0, %v3850_v17  ;;  %v3852_v28 = vpop.eup %3851 }
 0x5a4   :  { %v1522_v29 = vadd.f32 1.0, %v3852_v28 }
 0x5a5   :  { %3853 = vrcp.f32 %v1515_v27 }
 0x5a6   :  { %3855 = vrcp.f32 %v1522_v29 }
 0x5af   :  { %v3854_v31 = vpop.eup %3853 }
 0x5b0   :  { %v1525_v33 = vmul.f32 %v3854_v31, %v1508_v30  ;;  %v3856_v35 = vpop.eup %3855 }
 0x5b1   :  { %v1528_v36 = vsub.f32 1.0, %v3856_v35  ;;  %v1530_v38 = vmul.f32 %v3856_v35, %v1293_v8 }
 0x5b2   :  { %v1526_v34 = vadd.f32 %v3102_v32, %v1525_v33 }
 0x5b4   :  { %3857 = vtanh.f32 %v1526_v34 }
 0x5be   :  { %v3858_v37 = vpop.eup %3857 }
 0x5bf   :  { %v1529_v39 = vmul.f32 %v3858_v37, %v1528_v36 }
 0x5c1   :  { %v1531_v40 = vadd.f32 %v1530_v38, %v1529_v39 }
 0x5c3   :  { %v1539_v41 = vrot.slane %v1531_v40, %v4405_v58  ;;  %v1564_v42 = vsub.f32 %v1531_v40, %v1293_v8 }
 0x5c5   :  { %v1540_v45 = vcombine.high %v1539_v41, %v1539_v41  ;;  %v1547_v46 = vrot.slane %v1539_v41, %v4405_v58  ;;  %v1570_v47 = vmul.f32 %v1568_v44, %v1564_v42 }
 0x5c7   :  { %v1554_v48 = vrot.slane %v1540_v45, %v4405_v58  ;;  %1557 = vst.msk [vmem:[#allocation3 + $0x4] sm:$0x1] %vm445_vm7, %v1547_v46  ;;  %v1571_v49 = vadd.f32 %v1570_v47, %v1293_v8  ;;  %v3112_v8 = vld [vmem:[%s4760_s0 + $0x22] sm:$0x3]  ;;  %v3122_v45 = vld [vmem:[%s4760_s0 + $0x28] sm:$0x3] }
 0x5c9   :  { %1558 = vst.msk [vmem:[#allocation3 + $0xc] sm:$0x1] %vm445_vm7, %v1554_v48  ;;  %3476 = vmatmul.mubr.msk.f32.vlgmr.msra.gmra.mrb[14].mxu1 %vm179_vm3, %v1571_v49  ;;  %3487 = vmatmul.mubr.msk.f32.vlgmr.msra.gmra.mrb[16].mxu0 %vm179_vm3, %v1571_v49 }
 0x5ca   :  { %3723 = vmatpush3.bf16.msra.mxu1 %v4351_v20  ;;  %3497 = vmatprep.mubr.msk.f32.mxu1 %vm4133_vm0, %v4134_v1 }
 0x5cb   :  { %3724 = vmatprep.subr.bf16.mxu1 %v4132_v0  ;;  %3729 = vmatpush3.bf16.msra.mxu0 %v4330_v6 }
 0x5cc   :  { %3730 = vmatprep.subr.bf16.mxu0 %v4132_v0  ;;  %3508 = vmatprep.mubr.msk.f32.mxu0 %vm4133_vm0, %v4134_v1 }
 0x5ce   :  { %3726 = vmatpush3.bf16.msra.mxu1 %v4363_v25 }
 0x5cf   :  { %3733 = vmatprep.subr.bf16.mxu1 %v4132_v0  ;;  %3732 = vmatpush3.bf16.msra.mxu0 %v4334_v13 }
 0x5d0   :  { %3739 = vmatprep.subr.bf16.mxu0 %v4132_v0 }
 0x5d1   :  { %3498 = vmatmul.mubr.msk.f32.vlgmr.msra.gmra.mrb[16].mxu1 %vm179_vm3, %v1571_v49 }
 0x5d2   :  { %3735 = vmatpush3.bf16.msra.mxu1 %v4336_v14  ;;  %3519 = vmatprep.mubr.msk.f32.mxu1 %vm4133_vm0, %v4134_v1 }
 0x5d3   :  { %3736 = vmatprep.subr.bf16.mxu1 %v4132_v0 }
 0x5d6   :  { %3738 = vmatpush3.bf16.msra.mxu1 %v4345_v18 }
 0x5d7   :  { %3745 = vmatprep.subr.bf16.mxu1 %v4132_v0 }
 0x69c   :  { %v1645_v51 = vpop.f32.mrb[14].mxu1  ;;  %v1715_v52 = vpop.f32.mrb[16].mxu0 }
 0x69d   :  { %v1789_v53 = vadd.f32 %v3110_v50, %v1645_v51  ;;  %v3477_v55 = vpop.f32.mrb[15].mxu1  ;;  %v3488_v56 = vpop.f32.mrb[17].mxu0  ;;  %v1796_v59 = vadd.f32 %v3111_v54, %v1715_v52 }
 0x69e   :  { %v2124_v56 = vpop.permute.xlu0 %2123 }
 0x69f   :  { %v3116_v57 = vmul.f32 -1.442695, %v1789_v53  ;;  %v3117_v60 = vmul.f32 -1.442695, %v1796_v59 }
 0x6a1   :  { %3859 = vpow2.f32 %v3116_v57 }
 0x6a2   :  { %3861 = vpow2.f32 %v3117_v60 }
 0x6a4   :  { %v1785_v61 = vpop.f32.mrb[16].mxu1 }
 0x6a5   :  { %v3499_v62 = vpop.f32.mrb[17].mxu1  ;;  %v1786_v5 = vadd.f32 %v4399_v43, %v1785_v61 }
 0x6ab   :  { %v3860_v63 = vpop.eup %3859 }
 0x6ac   :  { %v1793_v2 = vadd.f32 1.0, %v3860_v63  ;;  %v3862_v3 = vpop.eup %3861  ;;  %v2408_v63 = vld [vmem:[#allocation7] sm:$0xff] }
 0x6ad   :  { %v1800_v4 = vadd.f32 1.0, %v3862_v3  ;;  %v3131_v3 = vld [vmem:[%s4760_s0 + $0x2c] sm:$0x3] }
 0x6ae   :  { %3863 = vrcp.f32 %v1793_v2 }
 0x6af   :  { %3865 = vrcp.f32 %v1800_v4 }
 0x6b8   :  { %v3864_v7 = vpop.eup %3863 }
 0x6b9   :  { %v1803_v9 = vmul.f32 %v3864_v7, %v1786_v5  ;;  %v3866_v11 = vpop.eup %3865 }
 0x6ba   :  { %v1806_v12 = vsub.f32 1.0, %v3866_v11  ;;  %v1808_v16 = vmul.f32 %v3866_v11, %v1571_v49 }
 0x6bb   :  { %v1804_v10 = vadd.f32 %v3112_v8, %v1803_v9 }
 0x6bd   :  { %3867 = vtanh.f32 %v1804_v10 }
 0x6c7   :  { %v3868_v15 = vpop.eup %3867 }
 0x6c8   :  { %v1807_v19 = vmul.f32 %v3868_v15, %v1806_v12 }
 0x6ca   :  { %v1809_v21 = vadd.f32 %v1808_v16, %v1807_v19 }
 0x6cc   :  { %v1817_v22 = vrot.slane %v1809_v21, %v4405_v58  ;;  %v1842_v23 = vsub.f32 %v1809_v21, %v1571_v49 }
 0x6ce   :  { %v1818_v26 = vcombine.high %v1817_v22, %v1817_v22  ;;  %v1825_v17 = vrot.slane %v1817_v22, %v4405_v58  ;;  %v1848_v27 = vmul.f32 %v1846_v24, %v1842_v23  ;;  %v3132_v23 = vld [vmem:[%s4760_s0 + $0x2e] sm:$0x3] }
 0x6d0   :  { %v1832_v28 = vrot.slane %v1818_v26, %v4405_v58  ;;  %1835 = vst.msk [vmem:[#allocation3 + $0x5] sm:$0x1] %vm445_vm7, %v1825_v17  ;;  %v1849_v29 = vadd.f32 %v1848_v27, %v1571_v49 }
 0x6d2   :  { %1836 = vst.msk [vmem:[#allocation3 + $0xd] sm:$0x1] %vm445_vm7, %v1832_v28  ;;  %3509 = vmatmul.mubr.msk.f32.vlgmr.msra.gmra.mrb[18].mxu0 %vm179_vm3, %v1849_v29  ;;  %3520 = vmatmul.mubr.msk.f32.vlgmr.msra.gmra.mrb[18].mxu1 %vm179_vm3, %v1849_v29 }
 0x6d3   :  { %3741 = vmatpush3.bf16.msra.mxu0 %v4351_v20  ;;  %3530 = vmatprep.mubr.msk.f32.mxu0 %vm4133_vm0, %v4134_v1 }
 0x6d4   :  { %3742 = vmatprep.subr.bf16.mxu0 %v4132_v0  ;;  %3747 = vmatpush3.bf16.msra.mxu1 %v4330_v6  ;;  %v3120_v6 = vld [vmem:[%s4760_s0 + $0x24] sm:$0x3] }
 0x6d5   :  { %3748 = vmatprep.subr.bf16.mxu1 %v4132_v0  ;;  %3541 = vmatprep.mubr.msk.f32.mxu1 %vm4133_vm0, %v4134_v1 }
 0x6d7   :  { %3744 = vmatpush3.bf16.msra.mxu0 %v4363_v25 }
 0x6d8   :  { %3751 = vmatprep.subr.bf16.mxu0 %v4132_v0  ;;  %3750 = vmatpush3.bf16.msra.mxu1 %v4334_v13 }
 0x6d9   :  { %3757 = vmatprep.subr.bf16.mxu1 %v4132_v0 }
 0x6da   :  { %3531 = vmatmul.mubr.msk.f32.vlgmr.msra.gmra.mrb[20].mxu0 %vm179_vm3, %v1849_v29 }
 0x6db   :  { %3753 = vmatpush3.bf16.msra.mxu0 %v4336_v14  ;;  %3552 = vmatprep.mubr.msk.f32.mxu0 %vm4133_vm0, %v4134_v1  ;;  %v3121_v14 = vld [vmem:[%s4760_s0 + $0x26] sm:$0x3] }
 0x6dc   :  { %3754 = vmatprep.subr.bf16.mxu0 %v4132_v0 }
 0x6df   :  { %3756 = vmatpush3.bf16.msra.mxu0 %v4345_v18 }
 0x6e0   :  { %3576 = vmatprep.subr.mxu0 %v4134_v1 }
 0x7a5   :  { %v1923_v13 = vpop.f32.mrb[18].mxu0  ;;  %v1993_v30 = vpop.f32.mrb[18].mxu1 }
 0x7a6   :  { %v2067_v31 = vadd.f32 %v3120_v6, %v1923_v13  ;;  %v3510_v32 = vpop.f32.mrb[19].mxu0  ;;  %v3521_v33 = vpop.f32.mrb[19].mxu1  ;;  %v2074_v35 = vadd.f32 %v3121_v14, %v1993_v30 }
 0x7a7   :  { %v2409_v32 = vld [vmem:[#allocation7 + $0x8] sm:$0xff] }
 0x7a8   :  { %v3126_v34 = vmul.f32 -1.442695, %v2067_v31  ;;  %v3127_v36 = vmul.f32 -1.442695, %v2074_v35 }
 0x7aa   :  { %3869 = vpow2.f32 %v3126_v34 }
 0x7ab   :  { %3871 = vpow2.f32 %v3127_v36 }
 0x7ad   :  { %v2063_v18 = vpop.f32.mrb[20].mxu0 }
 0x7ae   :  { %v3532_v37 = vpop.f32.mrb[21].mxu0  ;;  %v2064_v42 = vadd.f32 %v4399_v43, %v2063_v18 }
 0x7af   :  { %v3141_v37 = vld [vmem:[#allocation9 + $0x1] ss:$0 sm:$0xff] }
 0x7b4   :  { %v3870_v38 = vpop.eup %3869 }
 0x7b5   :  { %v2071_v39 = vadd.f32 1.0, %v3870_v38  ;;  %v3872_v40 = vpop.eup %3871 }
 0x7b6   :  { %v2078_v41 = vadd.f32 1.0, %v3872_v40 }
 0x7b7   :  { %3873 = vrcp.f32 %v2071_v39 }
 0x7b8   :  { %3875 = vrcp.f32 %v2078_v41 }
 0x7c1   :  { %v3874_v44 = vpop.eup %3873 }
 0x7c2   :  { %v2081_v46 = vmul.f32 %v3874_v44, %v2064_v42  ;;  %v3876_v48 = vpop.eup %3875 }
 0x7c3   :  { %v2084_v49 = vsub.f32 1.0, %v3876_v48  ;;  %v2086_v51 = vmul.f32 %v3876_v48, %v1849_v29 }
 0x7c4   :  { %v2082_v47 = vadd.f32 %v3122_v45, %v2081_v46 }
 0x7c6   :  { %3877 = vtanh.f32 %v2082_v47 }
 0x7d0   :  { %v3878_v50 = vpop.eup %3877 }
 0x7d1   :  { %v2085_v52 = vmul.f32 %v3878_v50, %v2084_v49 }
 0x7d3   :  { %v2087_v53 = vadd.f32 %v2086_v51, %v2085_v52 }
 0x7d5   :  { %v2095_v54 = vrot.slane %v2087_v53, %v4405_v58  ;;  %v2120_v55 = vsub.f32 %v2087_v53, %v1849_v29 }
 0x7d7   :  { %v2096_v57 = vcombine.high %v2095_v54, %v2095_v54  ;;  %v2103_v59 = vrot.slane %v2095_v54, %v4405_v58  ;;  %v2126_v60 = vmul.f32 %v2124_v56, %v2120_v55  ;;  %v2751_v54 = vld [vmem:[#allocation15] sm:$0xff]  ;;  %v2752_v55 = vld [vmem:[#allocation15 + $0x8] sm:$0xff] }
 0x7d8   :  { %v3763_v56 = vpack.c.bf16 %v2752_v55, %v2751_v54 }
 0x7d9   :  { %v2110_v61 = vrot.slane %v2096_v57, %v4405_v58  ;;  %2113 = vst.msk [vmem:[#allocation3 + $0x6] sm:$0x1] %vm445_vm7, %v2103_v59  ;;  %v4644_v62 = vadd.f32 %v2126_v60, %v1849_v29  ;;  %v2753_v60 = vld [vmem:[#allocation15 + $0x10] sm:$0xff] }
 0x7db   :  { %2114 = vst.msk [vmem:[#allocation3 + $0xe] sm:$0x1] %vm445_vm7, %v2110_v61  ;;  %3542 = vmatmul.mubr.msk.f32.vlgmr.msra.gmra.mrb[20].mxu1 %vm179_vm3, %v4644_v62  ;;  %3553 = vmatmul.mubr.msk.f32.vlgmr.msra.gmra.mrb[22].mxu0 %vm179_vm3, %v4644_v62  ;;  %v2754_v61 = vld [vmem:[#allocation15 + $0x18] sm:$0xff] }
 0x7dc   :  { %3759 = vmatpush3.bf16.msra.mxu1 %v4351_v20  ;;  %3563 = vmatprep.mubr.msk.f32.mxu1 %vm4133_vm0, %v4134_v1 }
 0x7dd   :  { %3760 = vmatprep.subr.bf16.mxu1 %v4132_v0  ;;  %3578 = vmatprep.mubr.msk.f32.mxu0 %vm4133_vm0, %v4134_v1  ;;  %v3130_v0 = vld [vmem:[%s4760_s0 + $0x2a] sm:$0x3] }
 0x7de   :  { %3577 = vmatpush3.msra.mxu0 %v2408_v63 }
 0x7df   :  { %3764 = vmatprep.subr.bf16.mxu0 %v3763_v56 }
 0x7e0   :  { %3762 = vmatpush3.bf16.msra.mxu1 %v4363_v25 }
 0x7e1   :  { %3566 = vmatprep.subr.mxu1 %v4134_v1 }
 0x7e3   :  { %3564 = vmatmul.mubr.msk.f32.vlgmr.msra.gmra.mrb[22].mxu1 %vm179_vm3, %v4644_v62 }
 0x7e4   :  { %3568 = vmatprep.mubr.msk.f32.mxu1 %vm4133_vm0, %v4134_v1 }
 0x7e9   :  { %3567 = vmatpush3.xpose.msk.msra.mxu1 %vm179_vm3, %v2408_v63 }
 0x7ea   :  { %3571 = vmatprep.subr.mxu1 %v4134_v1 }
 0x8ae   :  { %v2201_v20 = vpop.f32.mrb[20].mxu1  ;;  %v2271_v25 = vpop.f32.mrb[22].mxu0 }
 0x8af   :  { %v2345_v2 = vadd.f32 %v3130_v0, %v2201_v20  ;;  %v3543_v4 = vpop.f32.mrb[21].mxu1  ;;  %v3554_v5 = vpop.f32.mrb[23].mxu0  ;;  %v2352_v8 = vadd.f32 %v3131_v3, %v2271_v25  ;;  %v3767_v20 = vpack.c.bf16 %v2754_v61, %v2753_v60  ;;  %v2747_v25 = vld [vmem:[%s4769_s9] sm:$0xff] }
 0x8b1   :  { %v3136_v7 = vmul.f32 -1.442695, %v2345_v2  ;;  %v3137_v9 = vmul.f32 -1.442695, %v2352_v8  ;;  %v2748_v2 = vld [vmem:[%s4769_s9 + $0x8] sm:$0xff]  ;;  %v2750_v8 = vld [vmem:[%s4769_s9 + $0x18] sm:$0xff] }
 0x8b2   :  { %v3771_v5 = vpack.c.bf16 %v2748_v2, %v2747_v25 }
 0x8b3   :  { %3879 = vpow2.f32 %v3136_v7  ;;  %v2749_v7 = vld [vmem:[%s4769_s9 + $0x10] sm:$0xff] }
 0x8b4   :  { %3881 = vpow2.f32 %v3137_v9  ;;  %v3775_v9 = vpack.c.bf16 %v2750_v8, %v2749_v7 }
 0x8b6   :  { %v2341_v10 = vpop.f32.mrb[22].mxu1 }
 0x8b7   :  { %v3565_v11 = vpop.f32.mrb[23].mxu1  ;;  %v2342_v21 = vadd.f32 %v4399_v43, %v2341_v10 }
 0x8bd   :  { %v3880_v12 = vpop.eup %3879 }
 0x8be   :  { %v2349_v15 = vadd.f32 1.0, %v3880_v12  ;;  %v3882_v16 = vpop.eup %3881 }
 0x8bf   :  { %v2356_v19 = vadd.f32 1.0, %v3882_v16  ;;  %v2922_v16 = vld [vmem:[%s4772_s12] sm:$0xff] }
 0x8c0   :  { %3883 = vrcp.f32 %v2349_v15 }
 0x8c1   :  { %3885 = vrcp.f32 %v2356_v19  ;;  %v2923_v19 = vld [vmem:[%s4772_s12 + $0x8] sm:$0xff] }
 0x8ca   :  { %v3884_v22 = vpop.eup %3883 }
 0x8cb   :  { %v2359_v24 = vmul.f32 %v3884_v22, %v2342_v21  ;;  %v3886_v17 = vpop.eup %3885  ;;  %v2924_v21 = vld [vmem:[%s4772_s12 + $0x10] sm:$0xff]  ;;  %v3779_v22 = vpack.c.bf16 %v2923_v19, %v2922_v16 }
 0x8cc   :  { %v2362_v27 = vsub.f32 1.0, %v3886_v17  ;;  %v2364_v29 = vmul.f32 %v3886_v17, %v4644_v62 }
 0x8cd   :  { %v2360_v26 = vadd.f32 %v3132_v23, %v2359_v24  ;;  %v2925_v23 = vld [vmem:[%s4772_s12 + $0x18] sm:$0xff] }
 0x8ce   :  { %v3783_v24 = vpack.c.bf16 %v2925_v23, %v2924_v21 }
 0x8cf   :  { %3887 = vtanh.f32 %v2360_v26  ;;  %v3152_v26 = vld [vmem:[#allocation16] ss:$0 sm:$0xff] }
 0x8d9   :  { %v3888_v28 = vpop.eup %3887 }
 0x8da   :  { %v2363_v6 = vmul.f32 %v3888_v28, %v2362_v27 }
 0x8dc   :  { %v4676_v13 = vadd.f32 %v2364_v29, %v2363_v6 }
 0x8de   :  { %v2373_v43 = vrot.slane %v4676_v13, %v4405_v58 }
 0x8e0   :  { %v2374_v30 = vcombine.high %v2373_v43, %v2373_v43  ;;  %v2381_v31 = vrot.slane %v2373_v43, %v4405_v58 }
 0x8e2   :  { %v2388_v14 = vrot.slane %v2374_v30, %v4405_v58  ;;  %2391 = vst.msk [vmem:[#allocation3 + $0x7] sm:$0x1] %vm445_vm7, %v2381_v31  ;;  %v3140_v58 = vld [vmem:[#allocation9] ss:$0 sm:$0xff]  ;;  %v3153_v30 = vld [vmem:[%s4773_s13] ss:$0 sm:$0xff] }
 0x8e4   :  { %2392 = vst.msk [vmem:[#allocation3 + $0xf] sm:$0x1] %vm445_vm7, %v2388_v14 }
 0x8e9   :  { %v2412_v33 = vld [vmem:[#allocation3] sm:$0xff] }
 0x8ea   :  { %3569 = vmatmul.mubr.msk.f32.vlgmr.msra.gmra.mrb[24].mxu1 %vm179_vm3, %v2412_v33 }
 0x8eb   :  { %3572 = vmatpush3.xpose.msk.msra.mxu1 %vm179_vm3, %v2409_v32  ;;  %3573 = vmatprep.mubr.msk.f32.mxu1 %vm4133_vm0, %v4134_v1  ;;  %v2413_v34 = vld [vmem:[#allocation3 + $0x8] sm:$0xff] }
 0x8ec   :  { %3581 = vmatprep.subr.mxu1 %v4134_v1 }
 0x8ee   :  { %3574 = vmatmul.mubr.msk.f32.vlgmr.msra.gmra.mrb[26].mxu1 %vm179_vm3, %v2413_v34 }
 0x8ef   :  { %3582 = vmatpush3.msra.mxu1 %v2409_v32  ;;  %3583 = vmatprep.mubr.msk.f32.mxu1 %vm4133_vm0, %v4134_v1 }
 0x8f0   :  { %3780 = vmatprep.subr.bf16.mxu1 %v3779_v22 }
 0x9bd   :  { %v2498_v35 = vpop.f32.mrb[24].mxu1 }
 0x9be   :  { %v2499_v36 = vadd.f32 %v3140_v58, %v2498_v35  ;;  %v3570_v18 = vpop.f32.mrb[25].mxu1 }
 0x9c0   :  { %v2579_v38 = vsel %vm2578_vm11, %v2499_v36, -inf }
 0x9c1   :  { %2580 = vmax.xlane.f32.xlu1 %v2579_v38  ;;  %v2574_v39 = vpop.f32.mrb[26].mxu1 }
 0x9c2   :  { %v2575_v40 = vadd.f32 %v3141_v37, %v2574_v39  ;;  %v3575_v41 = vpop.f32.mrb[27].mxu1 }
 0x9c4   :  { %v2582_v42 = vsel %vm2578_vm11, %v2575_v40, -inf }
 0x9c5   :  { %2583 = vmax.xlane.f32.xlu0 %v2582_v42 }
 0xa4e   :  { %v2581_v44 = vpop.xlane.xlu1 %2580 }
 0xa4f   :  { %v2585_v45 = vsub.f32 %v2499_v36, %v2581_v44 }
 0xa51   :  { %v2587_v46 = vmul.f32 1.442695, %v2585_v45  ;;  %v3909_v45 = vld [vmem:[%s4764_s4] sm:$0x3]  ;;  %s3046_s4 = sshll.u32 %s4137_s1, 4  ;;  %s3047_s4 = int_to_ptr.vmem [resolvable:$true] %s3046_s4 }
 0xa52   :  { %v2584_v47 = vpop.xlane.xlu0 %2583  ;;  %vm3138_vm13 = vcmp.gt.s32.totalorder %v3909_v45, 7  ;;  %s4086_s11 = scalar_lea.vmem %s3047_s4, 256  ;;  %p4091_p9 = scmp.lt.s32.totalorder %s3047_s4, %s3047_s4 }
 0xa53   :  { %3889 = vpow2.f32 %v2587_v46  ;;  %v2586_v48 = vsub.f32 %v2575_v40, %v2584_v47  ;;  %v3139_v46 = vsel %vm3138_vm13, 1.0, %v4134_v1  ;;  %p4087_p8 = scmp.ne.s32.totalorder %s3047_s4, %s4086_s11  ;;  %p4092_p10 = scmp.lt.s32.totalorder %s4086_s11, %s4086_s11 }
 0xa55   :  { %v2589_v49 = vmul.f32 1.442695, %v2586_v48  ;;  %p4093_p11 = por %p4092_p10, %p4091_p9 }
 0xa57   :  { %3891 = vpow2.f32 %v2589_v49  ;;  %v2398_v49 = vsub.f32 %v4676_v13, %v4644_v62  ;;  %p4094_p12 = pnand %p4093_p11, %p4087_p8 }
 0xa5d   :  { %v3890_v50 = vpop.eup %3889 }
 0xa5e   :  { %v2591_v51 = vsel %vm2578_vm11, %v3890_v50, 0.0 }
 0xa5f   :  { %2592 = vadd.xlane.f32.xlu0 %v2591_v51 }
 0xa61   :  { %v3892_v52 = vpop.eup %3891 }
 0xa62   :  { %v2594_v53 = vsel %vm2578_vm11, %v3892_v52, 0.0 }
 0xa63   :  { %2595 = vadd.xlane.f32.xlu1 %v2594_v53 }
 0xaec   :  { %v2593_v57 = vpop.xlane.xlu0 %2592 }
 0xaed   :  { %3893 = vrcp.f32 %v2593_v57 }
 0xaf0   :  { %v2596_v59 = vpop.xlane.xlu1 %2595 }
 0xaf1   :  { %3895 = vrcp.f32 %v2596_v59 }
 0xaf7   :  { %v3894_v63 = vpop.eup %3893 }
 0xaf8   :  { %v2598_v0 = vmul.f32 %v3894_v63, %v3890_v50 }
 0xafa   :  { %3579 = vmatmul.mubr.msk.f32.vlgmr.msra.gmra.mrb[24].mxu0 %vm2578_vm11, %v2598_v0 }
 0xafb   :  { %v3896_v3 = vpop.eup %3895  ;;  %3766 = vmatpush3.bf16.msra.mxu0 %v3763_v56  ;;  %3594 = vmatprep.mubr.msk.f32.mxu0 %vm179_vm3, %v2412_v33 }
 0xafc   :  { %v2600_v4 = vmul.f32 %v3896_v3, %v3892_v52  ;;  %3768 = vmatprep.subr.bf16.mxu0 %v3767_v20 }
 0xafe   :  { %3584 = vmatmul.mubr.msk.f32.vlgmr.msra.gmra.mrb[28].mxu1 %vm2578_vm11, %v2600_v4 }
 0xaff   :  { %3770 = vmatpush3.bf16.msra.mxu0 %v3767_v20  ;;  %3782 = vmatpush3.bf16.msra.mxu1 %v3779_v22 }
 0xb00   :  { %3772 = vmatprep.subr.bf16.mxu0 %v3771_v5  ;;  %3784 = vmatprep.subr.bf16.mxu1 %v3783_v24 }
 0xb02   :  { %3595 = vmatmul.mubr.msk.f32.vlgmr.msra.gmra.mrb[26].mxu0 %vm179_vm3, %v2413_v34 }
 0xb03   :  { %3774 = vmatpush3.bf16.msra.mxu0 %v3771_v5  ;;  %3786 = vmatpush3.bf16.msra.mxu1 %v3783_v24 }
 0xb04   :  { %3776 = vmatprep.subr.bf16.mxu0 %v3775_v9 }
 0xb07   :  { %3778 = vmatpush3.bf16.msra.mxu0 %v3775_v9 }
 0xbcd   :  { %v2670_v10 = vpop.f32.mrb[24].mxu0 }
 0xbce   :  { %v3580_v11 = vpop.f32.mrb[25].mxu0  ;;  %3605 = vmatprep.mubr.msk.f32.mxu0 %vm179_vm3, %v2670_v10 }
 0xbd1   :  { %v2743_v12 = vpop.f32.mrb[28].mxu1 }
 0xbd2   :  { %v3585_v15 = vpop.f32.mrb[29].mxu1  ;;  %3606 = vmatmul.mubr.msk.f32.vlgmr.msra.gmra.mrb[26].mxu0 %vm179_vm3, %v2743_v12 }
 0xca5   :  { %v3607_v17 = vpop.f32.mrb[26].mxu0 }
 0xca6   :  { %v2919_v27 = vadd.f32 %v3607_v17, %v3152_v26  ;;  %v2902_v28 = vpop.f32.mrb[27].mxu0 }
 0xca7   :  { %v2918_v29 = vadd.f32 %v3152_v26, %v2902_v28 }
 0xca9   :  { %3897 = vtanh.f32 %v2918_v29 }
 0xcaa   :  { %3899 = vtanh.f32 %v2919_v27 }
 0xcb3   :  { %v3898_v6 = vpop.eup %3897 }
 0xcb4   :  { %v3900_v43 = vpop.eup %3899  ;;  %3616 = vmatprep.mubr.msk.f32.mxu1 %vm179_vm3, %v3898_v6 }
 0xcb5   :  { %3617 = vmatmul.mubr.msk.f32.vlgmr.msra.gmra.mrb[30].mxu1 %vm179_vm3, %v3900_v43 }
 0xd88   :  { %v3618_v31 = vpop.f32.mrb[30].mxu1 }
 0xd89   :  { %v3011_v14 = vadd.f32 %v3618_v31, %v3153_v30  ;;  %v3005_v32 = vpop.f32.mrb[31].mxu1 }
 0xd8a   :  { %v3006_v33 = vadd.f32 %v3153_v30, %v3005_v32 }
 0xd8b   :  { %v3018_v34 = vsel %vm3014_vm12, %v3011_v14, -inf }
 0xd8c   :  { %3019 = vmax.xlane.f32.xlu1 %v3018_v34  ;;  %v3015_v58 = vsel %vm3014_vm12, %v3006_v33, -inf }
 0xd8d   :  { %3016 = vmax.xlane.f32.xlu0 %v3015_v58 }
 0xe19   :  { %v3020_v35 = vpop.xlane.xlu1 %3019 }
 0xe1a   :  { %v3022_v36 = vsub.f32 %v3011_v14, %v3020_v35  ;;  %v3017_v18 = vpop.xlane.xlu0 %3016 }
 0xe1b   :  { %v3021_v37 = vsub.f32 %v3006_v33, %v3017_v18 }
 0xe1c   :  { %v3025_v38 = vmul.f32 1.442695, %v3022_v36 }
 0xe1d   :  { %v3023_v39 = vmul.f32 1.442695, %v3021_v37 }
 0xe1e   :  { %3901 = vpow2.f32 %v3025_v38 }
 0xe1f   :  { %3903 = vpow2.f32 %v3023_v39 }
 0xe28   :  { %v3902_v40 = vpop.eup %3901 }
 0xe29   :  { %v3904_v41 = vpop.eup %3903  ;;  %v3030_v42 = vsel %vm3014_vm12, %v3902_v40, 0.0 }
 0xe2a   :  { %3031 = vadd.xlane.f32.xlu1 %v3030_v42  ;;  %v3027_v44 = vsel %vm3014_vm12, %v3904_v41, 0.0 }
 0xe2b   :  { %3028 = vadd.xlane.f32.xlu0 %v3027_v44 }
 0xe41   :  { %2401 = vperm.xlu0 %3807, %v3139_v46  }
 0xeb7   :  { %v3032_v47 = vpop.xlane.xlu1 %3031 }
 0xeb8   :  { %3905 = vlog2.f32 %v3032_v47  ;;  %v3029_v48 = vpop.xlane.xlu0 %3028 }
 0xeb9   :  { %3907 = vlog2.f32 %v3029_v48 }
 0xec0   :  { %v2402_v50 = vpop.permute.xlu0 %2401 }
 0xec1   :  { %v2404_v51 = vmul.f32 %v2402_v50, %v2398_v49 }
 0xec2   :  { %v3906_v52 = vpop.eup %3905 }
 0xec3   :  { %v3908_v53 = vpop.eup %3907  ;;  %v3036_v54 = vmul.f32 0.6931472, %v3906_v52  ;;  %v2405_v55 = vadd.f32 %v2404_v51, %v4644_v62 }
 0xec4   :  { %v3034_v56 = vmul.f32 0.6931472, %v3908_v53 }
 0xec5   :  { %v3038_v57 = vsub.f32 %v3022_v36, %v3036_v54  ;;  %2407 = vst.msk [vmem:[#allocation2] sm:$0x3] %vm158_vm1, %v2405_v55 }
 0xec6   :  { %v3037_v1 = vsub.f32 %v3021_v37, %v3034_v56 }
 0xec7   :  { %3040 = vst.msk [vmem:[#allocation18 + $0x8] sm:$0xff] %vm3014_vm12, %v3038_v57 }
 0xec8   :  { %3039 = vst.msk [vmem:[#allocation18] sm:$0xff] %vm3014_vm12, %v3037_v1 }
 0xec9   :  { %4097 = shalt.err (!%p4094_p12)
}
 0xeca   :  { %s4098_s16 = scalar_lea.hbm %s4774_s14, 256 }
 0xecb   :  { %p4099_p13 = scmp.ne.s32.totalorder %s4774_s14, %s4098_s16  ;;  %p4102_p0 = scmp.lt.u32.totalorder %s4098_s16, %s4774_s14 }
 0xecd   :  { %p4104_p1 = pnand %p4102_p0, %p4099_p13 }
 0xecf   :  { %4107 = shalt.err (!%p4104_p1)
}
 0xed0   :  { %3052 = dma.vmem_to_hbm [thread:$0]  %s3047_s4, 256, %s4774_s14, [#allocation6], %s4121_s23, %s4121_s23, %s4122_s24  }
 0xed1   :  { %4118 = dma.done.wait [#allocation6], 256  }
 0xed2   :  { %4119 = vsyncadd [#allocation6], 4294967040 }
 0xed3   :  { %3056 = vsyncpa [#allocation5], 1 }
 0xed4   :  { %3057 = vsyncpa [#allocation8], 1 }
 0xed5   :  { %3058 = vsyncpa [#allocation11], 1 }
 0xed6   :  { %3059 = vsyncpa [#allocation14], 1 }
 0xed7   :  { %3060 = vsyncpa [#allocation17], 1 }
 0xed8   :  { %3061 = vsyncpa [#allocation6], 1 }

// kernel: tpu_custom_call.1
= control target key start
LH: loop header
LB: loop body
LE: loop exit
PB: predicated region body
PF: predicated region fallthrough
CT: control target
= control target key end

     0   :  { %19 = vsyncpa [#allocation5], 0  ;;  %s4760_s0 = inlined_call_operand.vmem [shape: f32[8,3,2,32], index: 0, kind: input, shape index: {}]   ;;  %s4761_s1 = inlined_call_operand.hbm [shape: f32[2,32], index: 1, kind: input, shape index: {}]   ;;  %s4762_s2 = inlined_call_operand.hbm [shape: f32[2,8,32], index: 2, kind: input, shape index: {}]   ;;  %s4763_s3 = inlined_call_operand.hbm [shape: f32[2,1,8], index: 3, kind: input, shape index: {}]   ;;  %s4764_s4 = inlined_call_operand.vmem [shape: s32[2,1], index: 4, kind: input, shape index: {}]   ;;  %s4765_s5 = inlined_call_operand.hbm [shape: f32[32,32], index: 5, kind: input, shape index: {}]   ;;  %s4766_s6 = inlined_call_operand.hbm [shape: f32[32,32], index: 6, kind: input, shape index: {}]   ;;  %s4767_s7 = inlined_call_operand.hbm [shape: f32[32,32], index: 7, kind: input, shape index: {}]   ;;  %s4768_s8 = inlined_call_operand.vmem [shape: f32[1,32], index: 8, kind: input, shape index: {}]   ;;  %s4769_s9 = inlined_call_operand.vmem [shape: f32[32,32], index: 9, kind: input, shape index: {}]   ;;  %s4770_s10 = inlined_call_operand.hbm [shape: f32[32,32], index: 10, kind: input, shape index: {}]   ;;  %s4771_s11 = inlined_call_operand.hbm [shape: f32[1,32], index: 11, kind: input, shape index: {}]   ;;  %s4772_s12 = inlined_call_operand.vmem [shape: f32[32,16], index: 12, kind: input, shape index: {}]   ;;  %s4773_s13 = inlined_call_operand.vmem [shape: f32[1,16], index: 13, kind: input, shape index: {}]   ;;  %s4774_s14 = inlined_call_operand.hbm [shape: f32[2,8,16], index: 14, kind: output, shape index: {}]  }
   0x1   :  { %20 = vsyncpa [#allocation8], 0 }
   0x2   :  { %21 = vsyncpa [#allocation11], 0 }
   0x3   :  { %22 = vsyncpa [#allocation14], 0 }
   0x4   :  { %23 = vsyncpa [#allocation17], 0 }
   0x5   :  { %24 = vsyncpa [#allocation6], 0  ;;  %s4120_s29 = smov [#allocation7]   ;;  %s3910_s17 = scalar_lea.hbm %s4762_s2, 256 }
   0x6   :  { %s42_s30 = sshll.u32 %s4120_s29, 4  ;;  %p3911_p0 = scmp.ne.s32.totalorder %s4762_s2, %s3910_s17  ;;  %s43_s30 = int_to_ptr.vmem [resolvable:$true] %s42_s30 }
   0x7   :  { %p3914_p1 = scmp.lt.u32.totalorder %s3910_s17, %s4762_s2 }
   0x9   :  { %p3916_p2 = pnand %p3914_p1, %p3911_p0 }
   0xb   :  { %3919 = shalt.err (!%p3916_p2)
}
   0xc   :  { %s3920_s22 = scalar_lea.vmem %s43_s30, 256  ;;  %p3925_p4 = scmp.lt.s32.totalorder %s43_s30, %s43_s30 }
   0xd   :  { %p3921_p3 = scmp.ne.s32.totalorder %s43_s30, %s3920_s22  ;;  %p3926_p5 = scmp.lt.s32.totalorder %s3920_s22, %s3920_s22 }
   0xf   :  { %p3927_p6 = por %p3926_p5, %p3925_p4 }
  0x11   :  { %p3928_p7 = pnand %p3927_p6, %p3921_p3 }
  0x13   :  { %3931 = shalt.err (!%p3928_p7)
}
  0x14   :  { %s4121_s23 = smov 128   ;;  %s4122_s24 = smov 8  }
  0x15   :  { %48 = dma.hbm_to_vmem [thread:$0]  %s4762_s2, 256, %s43_s30, [#allocation8], %s4121_s23, %s4121_s23, %s4122_s24  }
  0x16   :  { %s4123_s27 = smov [#allocation10]   ;;  %s4124_s29 = smov [#allocation13]  }
  0x17   :  { %s68_s28 = sshll.u32 %s4123_s27, 4  ;;  %s92_s15 = sshll.u32 %s4124_s29, 4  ;;  %s69_s28 = int_to_ptr.vmem [resolvable:$true] %s68_s28  ;;  %s93_s15 = int_to_ptr.vmem [resolvable:$true] %s92_s15 }
  0x18   :  { %s3932_s18 = scalar_lea.hbm %s4765_s5, 512 }
  0x19   :  { %p3933_p8 = scmp.ne.s32.totalorder %s4765_s5, %s3932_s18  ;;  %p3936_p9 = scmp.lt.u32.totalorder %s3932_s18, %s4765_s5 }
  0x1b   :  { %p3938_p10 = pnand %p3936_p9, %p3933_p8 }
  0x1d   :  { %3941 = shalt.err (!%p3938_p10)
}
  0x1e   :  { %s3942_s2 = scalar_lea.vmem %s69_s28, 512  ;;  %p3947_p12 = scmp.lt.s32.totalorder %s69_s28, %s69_s28 }
  0x1f   :  { %p3943_p11 = scmp.ne.s32.totalorder %s69_s28, %s3942_s2  ;;  %p3948_p13 = scmp.lt.s32.totalorder %s3942_s2, %s3942_s2 }
  0x21   :  { %p3949_p0 = por %p3948_p13, %p3947_p12 }
  0x23   :  { %p3950_p1 = pnand %p3949_p0, %p3943_p11 }
  0x25   :  { %3953 = shalt.err (!%p3950_p1)
}
  0x26   :  { %74 = dma.hbm_to_vmem [thread:$0]  %s4765_s5, 512, %s69_s28, [#allocation11], %s4121_s23, %s4121_s23, %s4122_s24  }
  0x27   :  { %s3954_s29 = scalar_lea.hbm %s4767_s7, 512 }
  0x28   :  { %p3955_p2 = scmp.ne.s32.totalorder %s4767_s7, %s3954_s29  ;;  %p3958_p3 = scmp.lt.u32.totalorder %s3954_s29, %s4767_s7 }
  0x2a   :  { %p3960_p4 = pnand %p3958_p3, %p3955_p2 }
  0x2c   :  { %3963 = shalt.err (!%p3960_p4)
}
  0x2d   :  { %s3964_s20 = scalar_lea.vmem %s93_s15, 512  ;;  %p3969_p6 = scmp.lt.s32.totalorder %s93_s15, %s93_s15 }
  0x2e   :  { %p3965_p5 = scmp.ne.s32.totalorder %s93_s15, %s3964_s20  ;;  %p3970_p7 = scmp.lt.s32.totalorder %s3964_s20, %s3964_s20 }
  0x30   :  { %p3971_p8 = por %p3970_p7, %p3969_p6 }
  0x32   :  { %p3972_p9 = pnand %p3971_p8, %p3965_p5 }
  0x34   :  { %3975 = shalt.err (!%p3972_p9)
}
  0x35   :  { %98 = dma.hbm_to_vmem [thread:$0]  %s4767_s7, 512, %s93_s15, [#allocation14], %s4121_s23, %s4121_s23, %s4122_s24  }
  0x36   :  { %s4125_s21 = smov [#allocation4]   ;;  %s4126_s2 = smov [#allocation9]  }
  0x37   :  { %s33_s22 = sshll.u32 %s4125_s21, 4  ;;  %s54_s30 = sshll.u32 %s4126_s2, 4  ;;  %s34_s22 = int_to_ptr.vmem [resolvable:$true] %s33_s22  ;;  %s55_s30 = int_to_ptr.vmem [resolvable:$true] %s54_s30 }
  0x38   :  { %s3976_s27 = scalar_lea.hbm %s4761_s1, 32 }
  0x39   :  { %p3977_p10 = scmp.ne.s32.totalorder %s4761_s1, %s3976_s27  ;;  %p3980_p11 = scmp.lt.u32.totalorder %s3976_s27, %s4761_s1 }
  0x3b   :  { %p3982_p12 = pnand %p3980_p11, %p3977_p10 }
  0x3d   :  { %3985 = shalt.err (!%p3982_p12)
}
  0x3e   :  { %s3986_s7 = scalar_lea.vmem %s34_s22, 32  ;;  %p3991_p0 = scmp.lt.s32.totalorder %s34_s22, %s34_s22 }
  0x3f   :  { %p3987_p13 = scmp.ne.s32.totalorder %s34_s22, %s3986_s7  ;;  %p3992_p1 = scmp.lt.s32.totalorder %s3986_s7, %s3986_s7 }
  0x41   :  { %p3993_p2 = por %p3992_p1, %p3991_p0 }
  0x43   :  { %p3994_p3 = pnand %p3993_p2, %p3987_p13 }
  0x45   :  { %3997 = shalt.err (!%p3994_p3)
}
  0x46   :  { %36 = dma.hbm_to_vmem [thread:$0]  %s4761_s1, 32, %s34_s22, [#allocation5]  }
  0x47   :  { %s3998_s28 = scalar_lea.hbm %s4763_s3, 32 }
  0x48   :  { %p3999_p4 = scmp.ne.s32.totalorder %s4763_s3, %s3998_s28  ;;  %p4002_p5 = scmp.lt.u32.totalorder %s3998_s28, %s4763_s3 }
  0x4a   :  { %p4004_p6 = pnand %p4002_p5, %p3999_p4 }
  0x4c   :  { %4007 = shalt.err (!%p4004_p6)
}
  0x4d   :  { %s4008_s27 = scalar_lea.vmem %s55_s30, 32  ;;  %p4013_p8 = scmp.lt.s32.totalorder %s55_s30, %s55_s30 }
  0x4e   :  { %p4009_p7 = scmp.ne.s32.totalorder %s55_s30, %s4008_s27  ;;  %p4014_p9 = scmp.lt.s32.totalorder %s4008_s27, %s4008_s27 }
  0x50   :  { %p4015_p10 = por %p4014_p9, %p4013_p8 }
  0x52   :  { %p4016_p11 = pnand %p4015_p10, %p4009_p7 }
  0x54   :  { %4019 = shalt.err (!%p4016_p11)
}
  0x55   :  { %s4127_s1 = smov 16   ;;  %s4128_s22 = smov 1  }
  0x56   :  { %60 = dma.hbm_to_vmem [thread:$0]  %s4763_s3, 32, %s55_s30, [#allocation8], %s4127_s1, %s4127_s1, %s4128_s22  }
  0x57   :  { %s4129_s17 = smov [#allocation12]   ;;  %s4130_s7 = smov [#allocation15]  }
  0x58   :  { %s80_s18 = sshll.u32 %s4129_s17, 4  ;;  %s108_s15 = sshll.u32 %s4130_s7, 4  ;;  %s81_s18 = int_to_ptr.vmem [resolvable:$true] %s80_s18  ;;  %s109_s15 = int_to_ptr.vmem [resolvable:$true] %s108_s15 }
  0x59   :  { %s4020_s5 = scalar_lea.hbm %s4766_s6, 512 }
  0x5a   :  { %p4021_p12 = scmp.ne.s32.totalorder %s4766_s6, %s4020_s5  ;;  %p4024_p13 = scmp.lt.u32.totalorder %s4020_s5, %s4766_s6 }
  0x5c   :  { %p4026_p0 = pnand %p4024_p13, %p4021_p12 }
  0x5e   :  { %4029 = shalt.err (!%p4026_p0)
}
  0x5f   :  { %s4030_s3 = scalar_lea.vmem %s81_s18, 512  ;;  %p4035_p2 = scmp.lt.s32.totalorder %s81_s18, %s81_s18 }
  0x60   :  { %p4031_p1 = scmp.ne.s32.totalorder %s81_s18, %s4030_s3  ;;  %p4036_p3 = scmp.lt.s32.totalorder %s4030_s3, %s4030_s3 }
  0x62   :  { %p4037_p4 = por %p4036_p3, %p4035_p2 }
  0x64   :  { %p4038_p5 = pnand %p4037_p4, %p4031_p1 }
  0x66   :  { %4041 = shalt.err (!%p4038_p5)
}
  0x67   :  { %86 = dma.hbm_to_vmem [thread:$0]  %s4766_s6, 512, %s81_s18, [#allocation11], %s4121_s23, %s4121_s23, %s4122_s24  }
  0x68   :  { %s4042_s22 = scalar_lea.hbm %s4770_s10, 512 }
  0x69   :  { %p4043_p6 = scmp.ne.s32.totalorder %s4770_s10, %s4042_s22  ;;  %p4046_p7 = scmp.lt.u32.totalorder %s4042_s22, %s4770_s10 }
  0x6b   :  { %p4048_p8 = pnand %p4046_p7, %p4043_p6 }
  0x6d   :  { %4051 = shalt.err (!%p4048_p8)
}
  0x6e   :  { %s4052_s19 = scalar_lea.vmem %s109_s15, 512  ;;  %p4057_p10 = scmp.lt.s32.totalorder %s109_s15, %s109_s15 }
  0x6f   :  { %p4053_p9 = scmp.ne.s32.totalorder %s109_s15, %s4052_s19  ;;  %p4058_p11 = scmp.lt.s32.totalorder %s4052_s19, %s4052_s19 }
  0x71   :  { %p4059_p12 = por %p4058_p11, %p4057_p10 }
  0x73   :  { %p4060_p13 = pnand %p4059_p12, %p4053_p9 }
  0x75   :  { %4063 = shalt.err (!%p4060_p13)
}
  0x76   :  { %114 = dma.hbm_to_vmem [thread:$0]  %s4770_s10, 512, %s109_s15, [#allocation14], %s4121_s23, %s4121_s23, %s4122_s24  }
  0x77   :  { %s4131_s20 = smov [#allocation16]   ;;  %s4064_s2 = scalar_lea.hbm %s4771_s11, 16 }
  0x78   :  { %s121_s5 = sshll.u32 %s4131_s20, 4  ;;  %p4065_p0 = scmp.ne.s32.totalorder %s4771_s11, %s4064_s2  ;;  %s122_s5 = int_to_ptr.vmem [resolvable:$true] %s121_s5 }
  0x79   :  { %p4068_p1 = scmp.lt.u32.totalorder %s4064_s2, %s4771_s11 }
  0x7b   :  { %p4070_p2 = pnand %p4068_p1, %p4065_p0 }
  0x7d   :  { %4073 = shalt.err (!%p4070_p2)
}
  0x7e   :  { %s4074_s27 = scalar_lea.vmem %s122_s5, 16  ;;  %s4078_s10 = scalar_lea.vmem %s122_s5, 32 }
  0x7f   :  { %p4075_p3 = scmp.ne.s32.totalorder %s122_s5, %s4074_s27  ;;  %p4079_p4 = scmp.lt.s32.totalorder %s122_s5, %s122_s5 }
  0x80   :  { %p4080_p5 = scmp.lt.s32.totalorder %s4078_s10, %s4074_s27 }
  0x82   :  { %p4081_p6 = por %p4080_p5, %p4079_p4 }
  0x84   :  { %p4082_p7 = pnand %p4081_p6, %p4075_p3 }
  0x86   :  { %4085 = shalt.err (!%p4082_p7)
}
  0x87   :  { %124 = dma.hbm_to_vmem [thread:$0]  %s4771_s11, 16, %s122_s5, [#allocation17]  }
  0x88   :  { %4108 = dma.done.wait [#allocation5], 32  }
  0x89   :  { %4109 = vsyncadd [#allocation5], 4294967264 }
  0x8a   :  { %4110 = dma.done.wait [#allocation8], 288  }
  0x8b   :  { %4111 = vsyncadd [#allocation8], 4294967008 }
  0x8c   :  { %4112 = dma.done.wait [#allocation11], 1024  }
  0x8d   :  { %4113 = vsyncadd [#allocation11], 4294966272 }
  0x8e   :  { %4114 = dma.done.wait [#allocation14], 1024  }
  0x8f   :  { %4115 = vsyncadd [#allocation14], 4294966272 }
  0x90   :  { %4116 = dma.done.wait [#allocation17], 16  }
  0x91   :  { %4117 = vsyncadd [#allocation17], 4294967280  ;;  %v4132_v0 = vmov 0.0|0.0   ;;  %vm4133_vm0 = vmmov 0   ;;  %v4134_v1 = vmov 0.0   ;;  %v4135_v2 = vmov 0  }
  0x92   :  { %3619 = vmatprep.subr.bf16.mxu0 %v4132_v0  ;;  %3310 = vmatprep.mubr.msk.f32.mxu0 %vm4133_vm0, %v4134_v1  ;;  %vm158_vm1 = vcmask 254976   ;;  %v160_v3 = vld [vmem:[#allocation10] sm:$0xff]  ;;  %v161_v4 = vld [vmem:[#allocation10 + $0x8] sm:$0xff]  ;;  %v162_v5 = vld [vmem:[#allocation10 + $0x10] sm:$0xff]  ;;  %vm179_vm3 = vcmask 261120   ;;  %v424_v52 = vlaneseq  ;;  %vm445_vm7 = vcmask 253952  }
  0x93   :  { %3625 = vmatprep.subr.bf16.mxu1 %v4132_v0  ;;  %3321 = vmatprep.mubr.msk.f32.mxu1 %vm4133_vm0, %v4134_v1  ;;  %v4330_v6 = vpack.c.bf16 %v161_v4, %v160_v3  ;;  %v163_v7 = vld [vmem:[#allocation10 + $0x18] sm:$0xff]  ;;  %v157_v8 = vld [vmem:[#allocation4] sm:$0x3]  ;;  %v164_v9 = vld [vmem:[#allocation12] sm:$0xff]  ;;  %v4136_v50 = vmov 1966171168  }
  0x94   :  { %3807 = vset.pattern.permute.xlu0 %v4135_v2  ;;  %3808 = vset.pattern.permute.xlu1 %v4135_v2  ;;  %159 = vst.msk [vmem:[#allocation2] sm:$0x3] %vm158_vm1, %v157_v8  ;;  %v165_v10 = vld [vmem:[#allocation12 + $0x8] sm:$0xff]  ;;  %v166_v11 = vld [vmem:[#allocation12 + $0x10] sm:$0xff]  ;;  %v167_v12 = vld [vmem:[#allocation12 + $0x18] sm:$0xff]  ;;  %v4334_v13 = vpack.c.bf16 %v163_v7, %v162_v5  ;;  %v422_v51 = vunpack.c.l.s4 %v4136_v50  ;;  %v425_v55 = vshrl.u32 %v424_v52, 7 }
  0x95   :  { %3621 = vmatpush3.bf16.msra.mxu0 %v4330_v6  ;;  %v4336_v14 = vpack.c.bf16 %v165_v10, %v164_v9  ;;  %v168_v15 = vld [vmem:[#allocation13] sm:$0xff]  ;;  %v169_v16 = vld [vmem:[#allocation13 + $0x8] sm:$0xff]  ;;  %v4342_v17 = vld [vmem:[%s4764_s4] sm:$0x3]  ;;  %v4345_v18 = vpack.c.bf16 %v167_v12, %v166_v11  ;;  %vm2578_vm11 = vcmask 64512   ;;  %vm3014_vm12 = vcmask 130048  }
  0x96   :  { %3622 = vmatprep.subr.bf16.mxu0 %v4132_v0  ;;  %vm3068_vm2 = vcmp.gt.s32.totalorder %v4342_v17, 0  ;;  %v4351_v20 = vpack.c.bf16 %v169_v16, %v168_v15  ;;  %vm3078_vm4 = vcmp.gt.s32.totalorder %v4342_v17, 1  ;;  %v170_v21 = vld [vmem:[#allocation13 + $0x10] sm:$0xff]  ;;  %v171_v22 = vld [vmem:[#allocation13 + $0x18] sm:$0xff]  ;;  %vm3108_vm5 = vcmp.gt.s32.totalorder %v4342_v17, 4  ;;  %s4137_s1 = smov [#allocation18]  }
  0x97   :  { %3627 = vmatpush3.bf16.msra.mxu1 %v4336_v14  ;;  %v3069_v19 = vsel %vm3068_vm2, 1.0, %v4134_v1  ;;  %v3079_v24 = vsel %vm3078_vm4, 1.0, %v4134_v1  ;;  %v4363_v25 = vpack.c.bf16 %v171_v22, %v170_v21  ;;  %v3109_v26 = vsel %vm3108_vm5, 1.0, %v4134_v1  ;;  %v176_v28 = vld [vmem:[%s4760_s0] sm:$0x3] }
  0x98   :  { %3628 = vmatprep.subr.bf16.mxu1 %v4132_v0  ;;  %455 = vperm.xlu0 %3807, %v3069_v19   ;;  %vm3128_vm6 = vcmp.gt.s32.totalorder %v4342_v17, 6  ;;  %v177_v30 = vld [vmem:[%s4760_s0 + $0x2] sm:$0x3]  ;;  %v4399_v43 = vld [vmem:[%s4768_s8] ss:$0 sm:$0xff]  ;;  %v423_v54 = vunpack.c.0.s8 %v422_v51  ;;  %vm3088_vm8 = vcmp.gt.s32.totalorder %v4342_v17, 2 }
  0x99   :  { %3624 = vmatpush3.bf16.msra.mxu0 %v4334_v13  ;;  %v3129_v27 = vsel %vm3128_vm6, 1.0, %v4134_v1  ;;  %v178_v47 = vld [vmem:[%s4760_s0 + $0x4] sm:$0x3]  ;;  %vm3098_vm9 = vcmp.gt.s32.totalorder %v4342_v17, 3  ;;  %v3089_v9 = vsel %vm3088_vm8, 1.0, %v4134_v1  ;;  %vm3118_vm10 = vcmp.gt.s32.totalorder %v4342_v17, 5 }
  0x9a   :  { %3631 = vmatprep.subr.bf16.mxu0 %v4132_v0  ;;  %v4405_v58 = vsub.s32 %v423_v54, %v425_v55  ;;  %1011 = vperm.xlu1 %3808, %v3089_v9   ;;  %v3099_v10 = vsel %vm3098_vm9, 1.0, %v4134_v1  ;;  %v3119_v11 = vsel %vm3118_vm10, 1.0, %v4134_v1  ;;  %v3070_v12 = vld [vmem:[%s4760_s0 + $0x6] sm:$0x3]  ;;  %v3071_v21 = vld [vmem:[%s4760_s0 + $0x8] sm:$0x3] }
  0x9b   :  { %v4355_v23 = vld [vmem:[#allocation2] sm:$0x3]  ;;  %3630 = vmatpush3.bf16.msra.mxu1 %v4345_v18 }
  0x9c   :  { %3311 = vmatmul.mubr.msk.f32.vlgmr.msra.gmra.mrb[0].mxu0 %vm179_vm3, %v4355_v23  ;;  %3637 = vmatprep.subr.bf16.mxu1 %v4132_v0 }
  0x9d   :  { %3633 = vmatpush3.bf16.msra.mxu0 %v4351_v20  ;;  %3332 = vmatprep.mubr.msk.f32.mxu0 %vm4133_vm0, %v4134_v1 }
  0x9e   :  { %3322 = vmatmul.mubr.msk.f32.vlgmr.msra.gmra.mrb[0].mxu1 %vm179_vm3, %v4355_v23  ;;  %3634 = vmatprep.subr.bf16.mxu0 %v4132_v0 }
  0x9f   :  { %733 = vperm.xlu0 %3807, %v3079_v24   ;;  %3639 = vmatpush3.bf16.msra.mxu1 %v4330_v6 }
  0xa0   :  { %3640 = vmatprep.subr.bf16.mxu1 %v4132_v0  ;;  %3343 = vmatprep.mubr.msk.f32.mxu1 %vm4133_vm0, %v4134_v1 }
  0xa1   :  { %3636 = vmatpush3.bf16.msra.mxu0 %v4363_v25  ;;  %1289 = vperm.xlu1 %3808, %v3099_v10  }
  0xa2   :  { %3643 = vmatprep.subr.bf16.mxu0 %v4132_v0 }
  0xa3   :  { %1567 = vperm.xlu0 %3807, %v3109_v26   ;;  %3642 = vmatpush3.bf16.msra.mxu1 %v4334_v13 }
  0xa4   :  { %3333 = vmatmul.mubr.msk.f32.vlgmr.msra.gmra.mrb[2].mxu0 %vm179_vm3, %v4355_v23  ;;  %3649 = vmatprep.subr.bf16.mxu1 %v4132_v0 }
  0xa5   :  { %3645 = vmatpush3.bf16.msra.mxu0 %v4336_v14  ;;  %3354 = vmatprep.mubr.msk.f32.mxu0 %vm4133_vm0, %v4134_v1 }
  0xa6   :  { %3646 = vmatprep.subr.bf16.mxu0 %v4132_v0  ;;  %1845 = vperm.xlu1 %3808, %v3119_v11   ;;  %v3082_v11 = vld [vmem:[%s4760_s0 + $0x10] sm:$0x3] }
  0xa7   :  { %2123 = vperm.xlu0 %3807, %v3129_v27  }
  0xa9   :  { %3648 = vmatpush3.bf16.msra.mxu0 %v4345_v18 }
  0xaa   :  { %3655 = vmatprep.subr.bf16.mxu0 %v4132_v0 }
 0x117   :  { %v456_v2 = vpop.permute.xlu0 %455 }
 0x16f   :  { %v249_v29 = vpop.f32.mrb[0].mxu0 }
 0x170   :  { %v399_v31 = vadd.f32 %v249_v29, %v176_v28  ;;  %v3312_v32 = vpop.f32.mrb[1].mxu0 }
 0x171   :  { %v319_v33 = vpop.f32.mrb[0].mxu1 }
 0x172   :  { %v3066_v34 = vmul.f32 -1.442695, %v399_v31  ;;  %v406_v35 = vadd.f32 %v319_v33, %v177_v30  ;;  %v3323_v36 = vpop.f32.mrb[1].mxu1 }
 0x174   :  { %3809 = vpow2.f32 %v3066_v34  ;;  %v3067_v37 = vmul.f32 -1.442695, %v406_v35  ;;  %v3072_v35 = vld [vmem:[%s4760_s0 + $0xa] sm:$0x3] }
 0x176   :  { %3811 = vpow2.f32 %v3067_v37 }
 0x177   :  { %v395_v38 = vpop.f32.mrb[2].mxu0 }
 0x178   :  { %v3334_v39 = vpop.f32.mrb[3].mxu0  ;;  %v396_v45 = vadd.f32 %v4399_v43, %v395_v38 }
 0x17e   :  { %v3810_v40 = vpop.eup %3809 }
 0x17f   :  { %v403_v41 = vadd.f32 1.0, %v3810_v40 }
 0x180   :  { %v3812_v42 = vpop.eup %3811 }
 0x181   :  { %3813 = vrcp.f32 %v403_v41  ;;  %v410_v44 = vadd.f32 1.0, %v3812_v42 }
 0x183   :  { %3815 = vrcp.f32 %v410_v44 }
 0x18b   :  { %v3814_v46 = vpop.eup %3813 }
 0x18c   :  { %v413_v48 = vmul.f32 %v3814_v46, %v396_v45 }
 0x18d   :  { %v3816_v53 = vpop.eup %3815 }
 0x18e   :  { %v414_v49 = vadd.f32 %v413_v48, %v178_v47  ;;  %v416_v56 = vsub.f32 1.0, %v3816_v53  ;;  %v418_v60 = vmul.f32 %v3816_v53, %v4355_v23  ;;  %v734_v47 = vpop.permute.xlu0 %733  ;;  %v3080_v53 = vld [vmem:[%s4760_s0 + $0xc] sm:$0x3] }
 0x190   :  { %3817 = vtanh.f32 %v414_v49 }
 0x19a   :  { %v3818_v57 = vpop.eup %3817 }
 0x19b   :  { %v417_v59 = vmul.f32 %v3818_v57, %v416_v56  ;;  %v3081_v57 = vld [vmem:[%s4760_s0 + $0xe] sm:$0x3] }
 0x19d   :  { %v419_v61 = vadd.f32 %v418_v60, %v417_v59 }
 0x19f   :  { %v427_v62 = vrot.slane %v419_v61, %v4405_v58  ;;  %v452_v63 = vsub.f32 %v419_v61, %v4355_v23 }
 0x1a1   :  { %v428_v3 = vcombine.high %v427_v62, %v427_v62  ;;  %v435_v4 = vrot.slane %v427_v62, %v4405_v58  ;;  %v458_v5 = vmul.f32 %v456_v2, %v452_v63 }
 0x1a3   :  { %v442_v7 = vrot.slane %v428_v3, %v4405_v58  ;;  %446 = vst.msk [vmem:[#allocation3] sm:$0x1] %vm445_vm7, %v435_v4  ;;  %v4414_v8 = vadd.f32 %v458_v5, %v4355_v23 }
 0x1a5   :  { %447 = vst.msk [vmem:[#allocation3 + $0x8] sm:$0x1] %vm445_vm7, %v442_v7  ;;  %3344 = vmatmul.mubr.msk.f32.vlgmr.msra.gmra.mrb[2].mxu1 %vm179_vm3, %v4414_v8  ;;  %3355 = vmatmul.mubr.msk.f32.vlgmr.msra.gmra.mrb[4].mxu0 %vm179_vm3, %v4414_v8 }
 0x1a6   :  { %3651 = vmatpush3.bf16.msra.mxu1 %v4351_v20  ;;  %3365 = vmatprep.mubr.msk.f32.mxu1 %vm4133_vm0, %v4134_v1 }
 0x1a7   :  { %3652 = vmatprep.subr.bf16.mxu1 %v4132_v0  ;;  %3657 = vmatpush3.bf16.msra.mxu0 %v4330_v6 }
 0x1a8   :  { %3658 = vmatprep.subr.bf16.mxu0 %v4132_v0  ;;  %3376 = vmatprep.mubr.msk.f32.mxu0 %vm4133_vm0, %v4134_v1 }
 0x1aa   :  { %3654 = vmatpush3.bf16.msra.mxu1 %v4363_v25 }
 0x1ab   :  { %3661 = vmatprep.subr.bf16.mxu1 %v4132_v0  ;;  %3660 = vmatpush3.bf16.msra.mxu0 %v4334_v13 }
 0x1ac   :  { %3667 = vmatprep.subr.bf16.mxu0 %v4132_v0 }
 0x1ad   :  { %3366 = vmatmul.mubr.msk.f32.vlgmr.msra.gmra.mrb[4].mxu1 %vm179_vm3, %v4414_v8 }
 0x1ae   :  { %3663 = vmatpush3.bf16.msra.mxu1 %v4336_v14  ;;  %3387 = vmatprep.mubr.msk.f32.mxu1 %vm4133_vm0, %v4134_v1 }
 0x1af   :  { %3664 = vmatprep.subr.bf16.mxu1 %v4132_v0 }
 0x1b2   :  { %3666 = vmatpush3.bf16.msra.mxu1 %v4345_v18 }
 0x1b3   :  { %3673 = vmatprep.subr.bf16.mxu1 %v4132_v0 }
 0x278   :  { %v533_v15 = vpop.f32.mrb[2].mxu1  ;;  %v603_v16 = vpop.f32.mrb[4].mxu0 }
 0x279   :  { %v677_v19 = vadd.f32 %v3070_v12, %v533_v15  ;;  %v3345_v22 = vpop.f32.mrb[3].mxu1  ;;  %v3356_v23 = vpop.f32.mrb[5].mxu0  ;;  %v684_v26 = vadd.f32 %v3071_v21, %v603_v16 }
 0x27b   :  { %v3076_v24 = vmul.f32 -1.442695, %v677_v19  ;;  %v3077_v17 = vmul.f32 -1.442695, %v684_v26 }
 0x27d   :  { %3819 = vpow2.f32 %v3076_v24 }
 0x27e   :  { %3821 = vpow2.f32 %v3077_v17 }
 0x280   :  { %v673_v27 = vpop.f32.mrb[4].mxu1 }
 0x281   :  { %v3367_v28 = vpop.f32.mrb[5].mxu1  ;;  %v674_v33 = vadd.f32 %v4399_v43, %v673_v27  ;;  %v1012_v27 = vpop.permute.xlu1 %1011 }
 0x287   :  { %v3820_v29 = vpop.eup %3819 }
 0x288   :  { %v681_v30 = vadd.f32 1.0, %v3820_v29  ;;  %v3822_v31 = vpop.eup %3821 }
 0x289   :  { %v688_v32 = vadd.f32 1.0, %v3822_v31 }
 0x28a   :  { %3823 = vrcp.f32 %v681_v30 }
 0x28b   :  { %3825 = vrcp.f32 %v688_v32 }
 0x294   :  { %v3824_v34 = vpop.eup %3823 }
 0x295   :  { %v691_v36 = vmul.f32 %v3824_v34, %v674_v33  ;;  %v3826_v38 = vpop.eup %3825  ;;  %v3090_v33 = vld [vmem:[%s4760_s0 + $0x12] sm:$0x3] }
 0x296   :  { %v694_v39 = vsub.f32 1.0, %v3826_v38  ;;  %v696_v41 = vmul.f32 %v3826_v38, %v4414_v8 }
 0x297   :  { %v692_v37 = vadd.f32 %v3072_v35, %v691_v36 }
 0x299   :  { %3827 = vtanh.f32 %v692_v37  ;;  %v3091_v37 = vld [vmem:[%s4760_s0 + $0x14] sm:$0x3] }
 0x2a3   :  { %v3828_v40 = vpop.eup %3827 }
 0x2a4   :  { %v695_v42 = vmul.f32 %v3828_v40, %v694_v39 }
 0x2a6   :  { %v697_v44 = vadd.f32 %v696_v41, %v695_v42 }
 0x2a8   :  { %v705_v45 = vrot.slane %v697_v44, %v4405_v58  ;;  %v730_v46 = vsub.f32 %v697_v44, %v4414_v8 }
 0x2aa   :  { %v706_v48 = vcombine.high %v705_v45, %v705_v45  ;;  %v713_v49 = vrot.slane %v705_v45, %v4405_v58  ;;  %v736_v50 = vmul.f32 %v734_v47, %v730_v46 }
 0x2ac   :  { %v720_v51 = vrot.slane %v706_v48, %v4405_v58  ;;  %723 = vst.msk [vmem:[#allocation3 + $0x1] sm:$0x1] %vm445_vm7, %v713_v49  ;;  %v737_v52 = vadd.f32 %v736_v50, %v4414_v8 }
 0x2ae   :  { %724 = vst.msk [vmem:[#allocation3 + $0x9] sm:$0x1] %vm445_vm7, %v720_v51  ;;  %3377 = vmatmul.mubr.msk.f32.vlgmr.msra.gmra.mrb[6].mxu0 %vm179_vm3, %v737_v52  ;;  %3388 = vmatmul.mubr.msk.f32.vlgmr.msra.gmra.mrb[6].mxu1 %vm179_vm3, %v737_v52 }
 0x2af   :  { %3669 = vmatpush3.bf16.msra.mxu0 %v4351_v20  ;;  %3398 = vmatprep.mubr.msk.f32.mxu0 %vm4133_vm0, %v4134_v1 }
 0x2b0   :  { %3670 = vmatprep.subr.bf16.mxu0 %v4132_v0  ;;  %3675 = vmatpush3.bf16.msra.mxu1 %v4330_v6 }
 0x2b1   :  { %3676 = vmatprep.subr.bf16.mxu1 %v4132_v0  ;;  %3409 = vmatprep.mubr.msk.f32.mxu1 %vm4133_vm0, %v4134_v1 }
 0x2b3   :  { %3672 = vmatpush3.bf16.msra.mxu0 %v4363_v25 }
 0x2b4   :  { %3679 = vmatprep.subr.bf16.mxu0 %v4132_v0  ;;  %3678 = vmatpush3.bf16.msra.mxu1 %v4334_v13 }
 0x2b5   :  { %3685 = vmatprep.subr.bf16.mxu1 %v4132_v0 }
 0x2b6   :  { %3399 = vmatmul.mubr.msk.f32.vlgmr.msra.gmra.mrb[8].mxu0 %vm179_vm3, %v737_v52 }
 0x2b7   :  { %3681 = vmatpush3.bf16.msra.mxu0 %v4336_v14  ;;  %3420 = vmatprep.mubr.msk.f32.mxu0 %vm4133_vm0, %v4134_v1 }
 0x2b8   :  { %3682 = vmatprep.subr.bf16.mxu0 %v4132_v0 }
 0x2bb   :  { %3684 = vmatpush3.bf16.msra.mxu0 %v4345_v18 }
 0x2bc   :  { %3691 = vmatprep.subr.bf16.mxu0 %v4132_v0 }
 0x381   :  { %v811_v54 = vpop.f32.mrb[6].mxu0  ;;  %v881_v55 = vpop.f32.mrb[6].mxu1 }
 0x382   :  { %v955_v56 = vadd.f32 %v3080_v53, %v811_v54  ;;  %v3378_v59 = vpop.f32.mrb[7].mxu0  ;;  %v3389_v60 = vpop.f32.mrb[7].mxu1  ;;  %v962_v62 = vadd.f32 %v3081_v57, %v881_v55 }
 0x384   :  { %v3086_v61 = vmul.f32 -1.442695, %v955_v56  ;;  %v3087_v63 = vmul.f32 -1.442695, %v962_v62 }
 0x386   :  { %3829 = vpow2.f32 %v3086_v61 }
 0x387   :  { %3831 = vpow2.f32 %v3087_v63 }
 0x389   :  { %v951_v2 = vpop.f32.mrb[8].mxu0 }
 0x38a   :  { %v3400_v3 = vpop.f32.mrb[9].mxu0  ;;  %v952_v9 = vadd.f32 %v4399_v43, %v951_v2  ;;  %v1290_v2 = vpop.permute.xlu1 %1289 }
 0x390   :  { %v3830_v4 = vpop.eup %3829 }
 0x391   :  { %v959_v5 = vadd.f32 1.0, %v3830_v4  ;;  %v3832_v7 = vpop.eup %3831 }
 0x392   :  { %v966_v8 = vadd.f32 1.0, %v3832_v7 }
 0x393   :  { %3833 = vrcp.f32 %v959_v5 }
 0x394   :  { %3835 = vrcp.f32 %v966_v8 }
 0x39d   :  { %v3834_v10 = vpop.eup %3833 }
 0x39e   :  { %v969_v12 = vmul.f32 %v3834_v10, %v952_v9  ;;  %v3836_v16 = vpop.eup %3835  ;;  %v3100_v9 = vld [vmem:[%s4760_s0 + $0x18] sm:$0x3] }
 0x39f   :  { %v972_v19 = vsub.f32 1.0, %v3836_v16  ;;  %v974_v23 = vmul.f32 %v3836_v16, %v737_v52 }
 0x3a0   :  { %v970_v15 = vadd.f32 %v3082_v11, %v969_v12 }
 0x3a2   :  { %3837 = vtanh.f32 %v970_v15  ;;  %v3101_v15 = vld [vmem:[%s4760_s0 + $0x1a] sm:$0x3] }
 0x3ac   :  { %v3838_v21 = vpop.eup %3837 }
 0x3ad   :  { %v973_v22 = vmul.f32 %v3838_v21, %v972_v19 }
 0x3af   :  { %v975_v24 = vadd.f32 %v974_v23, %v973_v22 }
 0x3b1   :  { %v983_v26 = vrot.slane %v975_v24, %v4405_v58  ;;  %v1008_v17 = vsub.f32 %v975_v24, %v737_v52 }
 0x3b3   :  { %v984_v28 = vcombine.high %v983_v26, %v983_v26  ;;  %v991_v29 = vrot.slane %v983_v26, %v4405_v58  ;;  %v1014_v30 = vmul.f32 %v1012_v27, %v1008_v17 }
 0x3b5   :  { %v998_v31 = vrot.slane %v984_v28, %v4405_v58  ;;  %1001 = vst.msk [vmem:[#allocation3 + $0x2] sm:$0x1] %vm445_vm7, %v991_v29  ;;  %v1015_v32 = vadd.f32 %v1014_v30, %v737_v52  ;;  %v3092_v52 = vld [vmem:[%s4760_s0 + $0x16] sm:$0x3] }
 0x3b7   :  { %1002 = vst.msk [vmem:[#allocation3 + $0xa] sm:$0x1] %vm445_vm7, %v998_v31  ;;  %3410 = vmatmul.mubr.msk.f32.vlgmr.msra.gmra.mrb[8].mxu1 %vm179_vm3, %v1015_v32  ;;  %3421 = vmatmul.mubr.msk.f32.vlgmr.msra.gmra.mrb[10].mxu0 %vm179_vm3, %v1015_v32 }
 0x3b8   :  { %3687 = vmatpush3.bf16.msra.mxu1 %v4351_v20  ;;  %3431 = vmatprep.mubr.msk.f32.mxu1 %vm4133_vm0, %v4134_v1 }
 0x3b9   :  { %3688 = vmatprep.subr.bf16.mxu1 %v4132_v0  ;;  %3693 = vmatpush3.bf16.msra.mxu0 %v4330_v6 }
 0x3ba   :  { %3694 = vmatprep.subr.bf16.mxu0 %v4132_v0  ;;  %3442 = vmatprep.mubr.msk.f32.mxu0 %vm4133_vm0, %v4134_v1 }
 0x3bc   :  { %3690 = vmatpush3.bf16.msra.mxu1 %v4363_v25 }
 0x3bd   :  { %3697 = vmatprep.subr.bf16.mxu1 %v4132_v0  ;;  %3696 = vmatpush3.bf16.msra.mxu0 %v4334_v13 }
 0x3be   :  { %3703 = vmatprep.subr.bf16.mxu0 %v4132_v0 }
 0x3bf   :  { %3432 = vmatmul.mubr.msk.f32.vlgmr.msra.gmra.mrb[10].mxu1 %vm179_vm3, %v1015_v32 }
 0x3c0   :  { %3699 = vmatpush3.bf16.msra.mxu1 %v4336_v14  ;;  %3453 = vmatprep.mubr.msk.f32.mxu1 %vm4133_vm0, %v4134_v1 }
 0x3c1   :  { %3700 = vmatprep.subr.bf16.mxu1 %v4132_v0 }
 0x3c4   :  { %3702 = vmatpush3.bf16.msra.mxu1 %v4345_v18 }
 0x3c5   :  { %3709 = vmatprep.subr.bf16.mxu1 %v4132_v0 }
 0x48a   :  { %v1089_v34 = vpop.f32.mrb[8].mxu1  ;;  %v1159_v35 = vpop.f32.mrb[10].mxu0 }
 0x48b   :  { %v1233_v36 = vadd.f32 %v3090_v33, %v1089_v34  ;;  %v3411_v38 = vpop.f32.mrb[9].mxu1  ;;  %v3422_v39 = vpop.f32.mrb[11].mxu0  ;;  %v1240_v41 = vadd.f32 %v3091_v37, %v1159_v35 }
 0x48d   :  { %v3096_v40 = vmul.f32 -1.442695, %v1233_v36  ;;  %v3097_v42 = vmul.f32 -1.442695, %v1240_v41 }
 0x48f   :  { %3839 = vpow2.f32 %v3096_v40 }
 0x490   :  { %3841 = vpow2.f32 %v3097_v42 }
 0x492   :  { %v1229_v44 = vpop.f32.mrb[10].mxu1 }
 0x493   :  { %v3433_v45 = vpop.f32.mrb[11].mxu1  ;;  %v1230_v50 = vadd.f32 %v4399_v43, %v1229_v44  ;;  %v1568_v44 = vpop.permute.xlu0 %1567 }
 0x499   :  { %v3840_v46 = vpop.eup %3839 }
 0x49a   :  { %v1237_v47 = vadd.f32 1.0, %v3840_v46  ;;  %v3842_v48 = vpop.eup %3841 }
 0x49b   :  { %v1244_v49 = vadd.f32 1.0, %v3842_v48 }
 0x49c   :  { %3843 = vrcp.f32 %v1237_v47 }
 0x49d   :  { %3845 = vrcp.f32 %v1244_v49 }
 0x4a6   :  { %v3844_v51 = vpop.eup %3843 }
 0x4a7   :  { %v1247_v53 = vmul.f32 %v3844_v51, %v1230_v50  ;;  %v3846_v55 = vpop.eup %3845  ;;  %v3110_v50 = vld [vmem:[%s4760_s0 + $0x1e] sm:$0x3] }
 0x4a8   :  { %v1250_v56 = vsub.f32 1.0, %v3846_v55  ;;  %v1252_v59 = vmul.f32 %v3846_v55, %v1015_v32 }
 0x4a9   :  { %v1248_v54 = vadd.f32 %v3092_v52, %v1247_v53 }
 0x4ab   :  { %3847 = vtanh.f32 %v1248_v54  ;;  %v3111_v54 = vld [vmem:[%s4760_s0 + $0x20] sm:$0x3] }
 0x4b5   :  { %v3848_v57 = vpop.eup %3847 }
 0x4b6   :  { %v1251_v60 = vmul.f32 %v3848_v57, %v1250_v56 }
 0x4b8   :  { %v1253_v61 = vadd.f32 %v1252_v59, %v1251_v60 }
 0x4ba   :  { %v1261_v62 = vrot.slane %v1253_v61, %v4405_v58  ;;  %v1286_v63 = vsub.f32 %v1253_v61, %v1015_v32 }
 0x4bc   :  { %v1262_v3 = vcombine.high %v1261_v62, %v1261_v62  ;;  %v1269_v4 = vrot.slane %v1261_v62, %v4405_v58  ;;  %v1292_v5 = vmul.f32 %v1290_v2, %v1286_v63 }
 0x4be   :  { %v1276_v7 = vrot.slane %v1262_v3, %v4405_v58  ;;  %1279 = vst.msk [vmem:[#allocation3 + $0x3] sm:$0x1] %vm445_vm7, %v1269_v4  ;;  %v1293_v8 = vadd.f32 %v1292_v5, %v1015_v32  ;;  %v3102_v32 = vld [vmem:[%s4760_s0 + $0x1c] sm:$0x3] }
 0x4c0   :  { %1280 = vst.msk [vmem:[#allocation3 + $0xb] sm:$0x1] %vm445_vm7, %v1276_v7  ;;  %3443 = vmatmul.mubr.msk.f32.vlgmr.msra.gmra.mrb[12].mxu0 %vm179_vm3, %v1293_v8  ;;  %3454 = vmatmul.mubr.msk.f32.vlgmr.msra.gmra.mrb[12].mxu1 %vm179_vm3, %v1293_v8 }
 0x4c1   :  { %3705 = vmatpush3.bf16.msra.mxu0 %v4351_v20  ;;  %3464 = vmatprep.mubr.msk.f32.mxu0 %vm4133_vm0, %v4134_v1 }
 0x4c2   :  { %3706 = vmatprep.subr.bf16.mxu0 %v4132_v0  ;;  %3711 = vmatpush3.bf16.msra.mxu1 %v4330_v6 }
 0x4c3   :  { %3712 = vmatprep.subr.bf16.mxu1 %v4132_v0  ;;  %3475 = vmatprep.mubr.msk.f32.mxu1 %vm4133_vm0, %v4134_v1 }
 0x4c5   :  { %3708 = vmatpush3.bf16.msra.mxu0 %v4363_v25 }
 0x4c6   :  { %3715 = vmatprep.subr.bf16.mxu0 %v4132_v0  ;;  %3714 = vmatpush3.bf16.msra.mxu1 %v4334_v13 }
 0x4c7   :  { %3721 = vmatprep.subr.bf16.mxu1 %v4132_v0 }
 0x4c8   :  { %3465 = vmatmul.mubr.msk.f32.vlgmr.msra.gmra.mrb[14].mxu0 %vm179_vm3, %v1293_v8 }
 0x4c9   :  { %3717 = vmatpush3.bf16.msra.mxu0 %v4336_v14  ;;  %3486 = vmatprep.mubr.msk.f32.mxu0 %vm4133_vm0, %v4134_v1 }
 0x4ca   :  { %3718 = vmatprep.subr.bf16.mxu0 %v4132_v0 }
 0x4cd   :  { %3720 = vmatpush3.bf16.msra.mxu0 %v4345_v18 }
 0x4ce   :  { %3727 = vmatprep.subr.bf16.mxu0 %v4132_v0 }
 0x593   :  { %v1367_v10 = vpop.f32.mrb[12].mxu0  ;;  %v1437_v11 = vpop.f32.mrb[12].mxu1 }
 0x594   :  { %v1511_v12 = vadd.f32 %v3100_v9, %v1367_v10  ;;  %v3444_v16 = vpop.f32.mrb[13].mxu0  ;;  %v3455_v19 = vpop.f32.mrb[13].mxu1  ;;  %v1518_v22 = vadd.f32 %v3101_v15, %v1437_v11 }
 0x596   :  { %v3106_v21 = vmul.f32 -1.442695, %v1511_v12  ;;  %v3107_v23 = vmul.f32 -1.442695, %v1518_v22 }
 0x598   :  { %3849 = vpow2.f32 %v3106_v21 }
 0x599   :  { %3851 = vpow2.f32 %v3107_v23 }
 0x59b   :  { %v1507_v24 = vpop.f32.mrb[14].mxu0 }
 0x59c   :  { %v3466_v26 = vpop.f32.mrb[15].mxu0  ;;  %v1508_v30 = vadd.f32 %v4399_v43, %v1507_v24  ;;  %v1846_v24 = vpop.permute.xlu1 %1845 }
 0x5a2   :  { %v3850_v17 = vpop.eup %3849 }
 0x5a3   :  { %v1515_v27 = vadd.f32 1.0, %v3850_v17  ;;  %v3852_v28 = vpop.eup %3851 }
 0x5a4   :  { %v1522_v29 = vadd.f32 1.0, %v3852_v28 }
 0x5a5   :  { %3853 = vrcp.f32 %v1515_v27 }
 0x5a6   :  { %3855 = vrcp.f32 %v1522_v29 }
 0x5af   :  { %v3854_v31 = vpop.eup %3853 }
 0x5b0   :  { %v1525_v33 = vmul.f32 %v3854_v31, %v1508_v30  ;;  %v3856_v35 = vpop.eup %3855 }
 0x5b1   :  { %v1528_v36 = vsub.f32 1.0, %v3856_v35  ;;  %v1530_v38 = vmul.f32 %v3856_v35, %v1293_v8 }
 0x5b2   :  { %v1526_v34 = vadd.f32 %v3102_v32, %v1525_v33 }
 0x5b4   :  { %3857 = vtanh.f32 %v1526_v34 }
 0x5be   :  { %v3858_v37 = vpop.eup %3857 }
 0x5bf   :  { %v1529_v39 = vmul.f32 %v3858_v37, %v1528_v36 }
 0x5c1   :  { %v1531_v40 = vadd.f32 %v1530_v38, %v1529_v39 }
 0x5c3   :  { %v1539_v41 = vrot.slane %v1531_v40, %v4405_v58  ;;  %v1564_v42 = vsub.f32 %v1531_v40, %v1293_v8 }
 0x5c5   :  { %v1540_v45 = vcombine.high %v1539_v41, %v1539_v41  ;;  %v1547_v46 = vrot.slane %v1539_v41, %v4405_v58  ;;  %v1570_v47 = vmul.f32 %v1568_v44, %v1564_v42 }
 0x5c7   :  { %v1554_v48 = vrot.slane %v1540_v45, %v4405_v58  ;;  %1557 = vst.msk [vmem:[#allocation3 + $0x4] sm:$0x1] %vm445_vm7, %v1547_v46  ;;  %v1571_v49 = vadd.f32 %v1570_v47, %v1293_v8  ;;  %v3112_v8 = vld [vmem:[%s4760_s0 + $0x22] sm:$0x3]  ;;  %v3122_v45 = vld [vmem:[%s4760_s0 + $0x28] sm:$0x3] }
 0x5c9   :  { %1558 = vst.msk [vmem:[#allocation3 + $0xc] sm:$0x1] %vm445_vm7, %v1554_v48  ;;  %3476 = vmatmul.mubr.msk.f32.vlgmr.msra.gmra.mrb[14].mxu1 %vm179_vm3, %v1571_v49  ;;  %3487 = vmatmul.mubr.msk.f32.vlgmr.msra.gmra.mrb[16].mxu0 %vm179_vm3, %v1571_v49 }
 0x5ca   :  { %3723 = vmatpush3.bf16.msra.mxu1 %v4351_v20  ;;  %3497 = vmatprep.mubr.msk.f32.mxu1 %vm4133_vm0, %v4134_v1 }
 0x5cb   :  { %3724 = vmatprep.subr.bf16.mxu1 %v4132_v0  ;;  %3729 = vmatpush3.bf16.msra.mxu0 %v4330_v6 }
 0x5cc   :  { %3730 = vmatprep.subr.bf16.mxu0 %v4132_v0  ;;  %3508 = vmatprep.mubr.msk.f32.mxu0 %vm4133_vm0, %v4134_v1 }
 0x5ce   :  { %3726 = vmatpush3.bf16.msra.mxu1 %v4363_v25 }
 0x5cf   :  { %3733 = vmatprep.subr.bf16.mxu1 %v4132_v0  ;;  %3732 = vmatpush3.bf16.msra.mxu0 %v4334_v13 }
 0x5d0   :  { %3739 = vmatprep.subr.bf16.mxu0 %v4132_v0 }
 0x5d1   :  { %3498 = vmatmul.mubr.msk.f32.vlgmr.msra.gmra.mrb[16].mxu1 %vm179_vm3, %v1571_v49 }
 0x5d2   :  { %3735 = vmatpush3.bf16.msra.mxu1 %v4336_v14  ;;  %3519 = vmatprep.mubr.msk.f32.mxu1 %vm4133_vm0, %v4134_v1 }
 0x5d3   :  { %3736 = vmatprep.subr.bf16.mxu1 %v4132_v0 }
 0x5d6   :  { %3738 = vmatpush3.bf16.msra.mxu1 %v4345_v18 }
 0x5d7   :  { %3745 = vmatprep.subr.bf16.mxu1 %v4132_v0 }
 0x69c   :  { %v1645_v51 = vpop.f32.mrb[14].mxu1  ;;  %v1715_v52 = vpop.f32.mrb[16].mxu0 }
 0x69d   :  { %v1789_v53 = vadd.f32 %v3110_v50, %v1645_v51  ;;  %v3477_v55 = vpop.f32.mrb[15].mxu1  ;;  %v3488_v56 = vpop.f32.mrb[17].mxu0  ;;  %v1796_v59 = vadd.f32 %v3111_v54, %v1715_v52 }
 0x69e   :  { %v2124_v56 = vpop.permute.xlu0 %2123 }
 0x69f   :  { %v3116_v57 = vmul.f32 -1.442695, %v1789_v53  ;;  %v3117_v60 = vmul.f32 -1.442695, %v1796_v59 }
 0x6a1   :  { %3859 = vpow2.f32 %v3116_v57 }
 0x6a2   :  { %3861 = vpow2.f32 %v3117_v60 }
 0x6a4   :  { %v1785_v61 = vpop.f32.mrb[16].mxu1 }
 0x6a5   :  { %v3499_v62 = vpop.f32.mrb[17].mxu1  ;;  %v1786_v5 = vadd.f32 %v4399_v43, %v1785_v61 }
 0x6ab   :  { %v3860_v63 = vpop.eup %3859 }
 0x6ac   :  { %v1793_v2 = vadd.f32 1.0, %v3860_v63  ;;  %v3862_v3 = vpop.eup %3861  ;;  %v2408_v63 = vld [vmem:[#allocation7] sm:$0xff] }
 0x6ad   :  { %v1800_v4 = vadd.f32 1.0, %v3862_v3  ;;  %v3131_v3 = vld [vmem:[%s4760_s0 + $0x2c] sm:$0x3] }
 0x6ae   :  { %3863 = vrcp.f32 %v1793_v2 }
 0x6af   :  { %3865 = vrcp.f32 %v1800_v4 }
 0x6b8   :  { %v3864_v7 = vpop.eup %3863 }
 0x6b9   :  { %v1803_v9 = vmul.f32 %v3864_v7, %v1786_v5  ;;  %v3866_v11 = vpop.eup %3865 }
 0x6ba   :  { %v1806_v12 = vsub.f32 1.0, %v3866_v11  ;;  %v1808_v16 = vmul.f32 %v3866_v11, %v1571_v49 }
 0x6bb   :  { %v1804_v10 = vadd.f32 %v3112_v8, %v1803_v9 }
 0x6bd   :  { %3867 = vtanh.f32 %v1804_v10 }
 0x6c7   :  { %v3868_v15 = vpop.eup %3867 }
 0x6c8   :  { %v1807_v19 = vmul.f32 %v3868_v15, %v1806_v12 }
 0x6ca   :  { %v1809_v21 = vadd.f32 %v1808_v16, %v1807_v19 }
 0x6cc   :  { %v1817_v22 = vrot.slane %v1809_v21, %v4405_v58  ;;  %v1842_v23 = vsub.f32 %v1809_v21, %v1571_v49 }
 0x6ce   :  { %v1818_v26 = vcombine.high %v1817_v22, %v1817_v22  ;;  %v1825_v17 = vrot.slane %v1817_v22, %v4405_v58  ;;  %v1848_v27 = vmul.f32 %v1846_v24, %v1842_v23  ;;  %v3132_v23 = vld [vmem:[%s4760_s0 + $0x2e] sm:$0x3] }
 0x6d0   :  { %v1832_v28 = vrot.slane %v1818_v26, %v4405_v58  ;;  %1835 = vst.msk [vmem:[#allocation3 + $0x5] sm:$0x1] %vm445_vm7, %v1825_v17  ;;  %v1849_v29 = vadd.f32 %v1848_v27, %v1571_v49 }
 0x6d2   :  { %1836 = vst.msk [vmem:[#allocation3 + $0xd] sm:$0x1] %vm445_vm7, %v1832_v28  ;;  %3509 = vmatmul.mubr.msk.f32.vlgmr.msra.gmra.mrb[18].mxu0 %vm179_vm3, %v1849_v29  ;;  %3520 = vmatmul.mubr.msk.f32.vlgmr.msra.gmra.mrb[18].mxu1 %vm179_vm3, %v1849_v29 }
 0x6d3   :  { %3741 = vmatpush3.bf16.msra.mxu0 %v4351_v20  ;;  %3530 = vmatprep.mubr.msk.f32.mxu0 %vm4133_vm0, %v4134_v1 }
 0x6d4   :  { %3742 = vmatprep.subr.bf16.mxu0 %v4132_v0  ;;  %3747 = vmatpush3.bf16.msra.mxu1 %v4330_v6  ;;  %v3120_v6 = vld [vmem:[%s4760_s0 + $0x24] sm:$0x3] }
 0x6d5   :  { %3748 = vmatprep.subr.bf16.mxu1 %v4132_v0  ;;  %3541 = vmatprep.mubr.msk.f32.mxu1 %vm4133_vm0, %v4134_v1 }
 0x6d7   :  { %3744 = vmatpush3.bf16.msra.mxu0 %v4363_v25 }
 0x6d8   :  { %3751 = vmatprep.subr.bf16.mxu0 %v4132_v0  ;;  %3750 = vmatpush3.bf16.msra.mxu1 %v4334_v13 }
 0x6d9   :  { %3757 = vmatprep.subr.bf16.mxu1 %v4132_v0 }
 0x6da   :  { %3531 = vmatmul.mubr.msk.f32.vlgmr.msra.gmra.mrb[20].mxu0 %vm179_vm3, %v1849_v29 }
 0x6db   :  { %3753 = vmatpush3.bf16.msra.mxu0 %v4336_v14  ;;  %3552 = vmatprep.mubr.msk.f32.mxu0 %vm4133_vm0, %v4134_v1  ;;  %v3121_v14 = vld [vmem:[%s4760_s0 + $0x26] sm:$0x3] }
 0x6dc   :  { %3754 = vmatprep.subr.bf16.mxu0 %v4132_v0 }
 0x6df   :  { %3756 = vmatpush3.bf16.msra.mxu0 %v4345_v18 }
 0x6e0   :  { %3576 = vmatprep.subr.mxu0 %v4134_v1 }
 0x7a5   :  { %v1923_v13 = vpop.f32.mrb[18].mxu0  ;;  %v1993_v30 = vpop.f32.mrb[18].mxu1 }
 0x7a6   :  { %v2067_v31 = vadd.f32 %v3120_v6, %v1923_v13  ;;  %v3510_v32 = vpop.f32.mrb[19].mxu0  ;;  %v3521_v33 = vpop.f32.mrb[19].mxu1  ;;  %v2074_v35 = vadd.f32 %v3121_v14, %v1993_v30 }
 0x7a7   :  { %v2409_v32 = vld [vmem:[#allocation7 + $0x8] sm:$0xff] }
 0x7a8   :  { %v3126_v34 = vmul.f32 -1.442695, %v2067_v31  ;;  %v3127_v36 = vmul.f32 -1.442695, %v2074_v35 }
 0x7aa   :  { %3869 = vpow2.f32 %v3126_v34 }
 0x7ab   :  { %3871 = vpow2.f32 %v3127_v36 }
 0x7ad   :  { %v2063_v18 = vpop.f32.mrb[20].mxu0 }
 0x7ae   :  { %v3532_v37 = vpop.f32.mrb[21].mxu0  ;;  %v2064_v42 = vadd.f32 %v4399_v43, %v2063_v18 }
 0x7af   :  { %v3141_v37 = vld [vmem:[#allocation9 + $0x1] ss:$0 sm:$0xff] }
 0x7b4   :  { %v3870_v38 = vpop.eup %3869 }
 0x7b5   :  { %v2071_v39 = vadd.f32 1.0, %v3870_v38  ;;  %v3872_v40 = vpop.eup %3871 }
 0x7b6   :  { %v2078_v41 = vadd.f32 1.0, %v3872_v40 }
 0x7b7   :  { %3873 = vrcp.f32 %v2071_v39 }
 0x7b8   :  { %3875 = vrcp.f32 %v2078_v41 }
 0x7c1   :  { %v3874_v44 = vpop.eup %3873 }
 0x7c2   :  { %v2081_v46 = vmul.f32 %v3874_v44, %v2064_v42  ;;  %v3876_v48 = vpop.eup %3875 }
 0x7c3   :  { %v2084_v49 = vsub.f32 1.0, %v3876_v48  ;;  %v2086_v51 = vmul.f32 %v3876_v48, %v1849_v29 }
 0x7c4   :  { %v2082_v47 = vadd.f32 %v3122_v45, %v2081_v46 }
 0x7c6   :  { %3877 = vtanh.f32 %v2082_v47 }
 0x7d0   :  { %v3878_v50 = vpop.eup %3877 }
 0x7d1   :  { %v2085_v52 = vmul.f32 %v3878_v50, %v2084_v49 }
 0x7d3   :  { %v2087_v53 = vadd.f32 %v2086_v51, %v2085_v52 }
 0x7d5   :  { %v2095_v54 = vrot.slane %v2087_v53, %v4405_v58  ;;  %v2120_v55 = vsub.f32 %v2087_v53, %v1849_v29 }
 0x7d7   :  { %v2096_v57 = vcombine.high %v2095_v54, %v2095_v54  ;;  %v2103_v59 = vrot.slane %v2095_v54, %v4405_v58  ;;  %v2126_v60 = vmul.f32 %v2124_v56, %v2120_v55  ;;  %v2751_v54 = vld [vmem:[#allocation15] sm:$0xff]  ;;  %v2752_v55 = vld [vmem:[#allocation15 + $0x8] sm:$0xff] }
 0x7d8   :  { %v3763_v56 = vpack.c.bf16 %v2752_v55, %v2751_v54 }
 0x7d9   :  { %v2110_v61 = vrot.slane %v2096_v57, %v4405_v58  ;;  %2113 = vst.msk [vmem:[#allocation3 + $0x6] sm:$0x1] %vm445_vm7, %v2103_v59  ;;  %v4644_v62 = vadd.f32 %v2126_v60, %v1849_v29  ;;  %v2753_v60 = vld [vmem:[#allocation15 + $0x10] sm:$0xff] }
 0x7db   :  { %2114 = vst.msk [vmem:[#allocation3 + $0xe] sm:$0x1] %vm445_vm7, %v2110_v61  ;;  %3542 = vmatmul.mubr.msk.f32.vlgmr.msra.gmra.mrb[20].mxu1 %vm179_vm3, %v4644_v62  ;;  %3553 = vmatmul.mubr.msk.f32.vlgmr.msra.gmra.mrb[22].mxu0 %vm179_vm3, %v4644_v62  ;;  %v2754_v61 = vld [vmem:[#allocation15 + $0x18] sm:$0xff] }
 0x7dc   :  { %3759 = vmatpush3.bf16.msra.mxu1 %v4351_v20  ;;  %3563 = vmatprep.mubr.msk.f32.mxu1 %vm4133_vm0, %v4134_v1 }
 0x7dd   :  { %3760 = vmatprep.subr.bf16.mxu1 %v4132_v0  ;;  %3578 = vmatprep.mubr.msk.f32.mxu0 %vm4133_vm0, %v4134_v1  ;;  %v3130_v0 = vld [vmem:[%s4760_s0 + $0x2a] sm:$0x3] }
 0x7de   :  { %3577 = vmatpush3.msra.mxu0 %v2408_v63 }
 0x7df   :  { %3764 = vmatprep.subr.bf16.mxu0 %v3763_v56 }
 0x7e0   :  { %3762 = vmatpush3.bf16.msra.mxu1 %v4363_v25 }
 0x7e1   :  { %3566 = vmatprep.subr.mxu1 %v4134_v1 }
 0x7e3   :  { %3564 = vmatmul.mubr.msk.f32.vlgmr.msra.gmra.mrb[22].mxu1 %vm179_vm3, %v4644_v62 }
 0x7e4   :  { %3568 = vmatprep.mubr.msk.f32.mxu1 %vm4133_vm0, %v4134_v1 }
 0x7e9   :  { %3567 = vmatpush3.xpose.msk.msra.mxu1 %vm179_vm3, %v2408_v63 }
 0x7ea   :  { %3571 = vmatprep.subr.mxu1 %v4134_v1 }
 0x8ae   :  { %v2201_v20 = vpop.f32.mrb[20].mxu1  ;;  %v2271_v25 = vpop.f32.mrb[22].mxu0 }
 0x8af   :  { %v2345_v2 = vadd.f32 %v3130_v0, %v2201_v20  ;;  %v3543_v4 = vpop.f32.mrb[21].mxu1  ;;  %v3554_v5 = vpop.f32.mrb[23].mxu0  ;;  %v2352_v8 = vadd.f32 %v3131_v3, %v2271_v25  ;;  %v3767_v20 = vpack.c.bf16 %v2754_v61, %v2753_v60  ;;  %v2747_v25 = vld [vmem:[%s4769_s9] sm:$0xff] }
 0x8b1   :  { %v3136_v7 = vmul.f32 -1.442695, %v2345_v2  ;;  %v3137_v9 = vmul.f32 -1.442695, %v2352_v8  ;;  %v2748_v2 = vld [vmem:[%s4769_s9 + $0x8] sm:$0xff]  ;;  %v2750_v8 = vld [vmem:[%s4769_s9 + $0x18] sm:$0xff] }
 0x8b2   :  { %v3771_v5 = vpack.c.bf16 %v2748_v2, %v2747_v25 }
 0x8b3   :  { %3879 = vpow2.f32 %v3136_v7  ;;  %v2749_v7 = vld [vmem:[%s4769_s9 + $0x10] sm:$0xff] }
 0x8b4   :  { %3881 = vpow2.f32 %v3137_v9  ;;  %v3775_v9 = vpack.c.bf16 %v2750_v8, %v2749_v7 }
 0x8b6   :  { %v2341_v10 = vpop.f32.mrb[22].mxu1 }
 0x8b7   :  { %v3565_v11 = vpop.f32.mrb[23].mxu1  ;;  %v2342_v21 = vadd.f32 %v4399_v43, %v2341_v10 }
 0x8bd   :  { %v3880_v12 = vpop.eup %3879 }
 0x8be   :  { %v2349_v15 = vadd.f32 1.0, %v3880_v12  ;;  %v3882_v16 = vpop.eup %3881 }
 0x8bf   :  { %v2356_v19 = vadd.f32 1.0, %v3882_v16  ;;  %v2922_v16 = vld [vmem:[%s4772_s12] sm:$0xff] }
 0x8c0   :  { %3883 = vrcp.f32 %v2349_v15 }
 0x8c1   :  { %3885 = vrcp.f32 %v2356_v19  ;;  %v2923_v19 = vld [vmem:[%s4772_s12 + $0x8] sm:$0xff] }
 0x8ca   :  { %v3884_v22 = vpop.eup %3883 }
 0x8cb   :  { %v2359_v24 = vmul.f32 %v3884_v22, %v2342_v21  ;;  %v3886_v17 = vpop.eup %3885  ;;  %v2924_v21 = vld [vmem:[%s4772_s12 + $0x10] sm:$0xff]  ;;  %v3779_v22 = vpack.c.bf16 %v2923_v19, %v2922_v16 }
 0x8cc   :  { %v2362_v27 = vsub.f32 1.0, %v3886_v17  ;;  %v2364_v29 = vmul.f32 %v3886_v17, %v4644_v62 }
 0x8cd   :  { %v2360_v26 = vadd.f32 %v3132_v23, %v2359_v24  ;;  %v2925_v23 = vld [vmem:[%s4772_s12 + $0x18] sm:$0xff] }
 0x8ce   :  { %v3783_v24 = vpack.c.bf16 %v2925_v23, %v2924_v21 }
 0x8cf   :  { %3887 = vtanh.f32 %v2360_v26  ;;  %v3152_v26 = vld [vmem:[#allocation16] ss:$0 sm:$0xff] }
 0x8d9   :  { %v3888_v28 = vpop.eup %3887 }
 0x8da   :  { %v2363_v6 = vmul.f32 %v3888_v28, %v2362_v27 }
 0x8dc   :  { %v4676_v13 = vadd.f32 %v2364_v29, %v2363_v6 }
 0x8de   :  { %v2373_v43 = vrot.slane %v4676_v13, %v4405_v58 }
 0x8e0   :  { %v2374_v30 = vcombine.high %v2373_v43, %v2373_v43  ;;  %v2381_v31 = vrot.slane %v2373_v43, %v4405_v58 }
 0x8e2   :  { %v2388_v14 = vrot.slane %v2374_v30, %v4405_v58  ;;  %2391 = vst.msk [vmem:[#allocation3 + $0x7] sm:$0x1] %vm445_vm7, %v2381_v31  ;;  %v3140_v58 = vld [vmem:[#allocation9] ss:$0 sm:$0xff]  ;;  %v3153_v30 = vld [vmem:[%s4773_s13] ss:$0 sm:$0xff] }
 0x8e4   :  { %2392 = vst.msk [vmem:[#allocation3 + $0xf] sm:$0x1] %vm445_vm7, %v2388_v14 }
 0x8e9   :  { %v2412_v33 = vld [vmem:[#allocation3] sm:$0xff] }
 0x8ea   :  { %3569 = vmatmul.mubr.msk.f32.vlgmr.msra.gmra.mrb[24].mxu1 %vm179_vm3, %v2412_v33 }
 0x8eb   :  { %3572 = vmatpush3.xpose.msk.msra.mxu1 %vm179_vm3, %v2409_v32  ;;  %3573 = vmatprep.mubr.msk.f32.mxu1 %vm4133_vm0, %v4134_v1  ;;  %v2413_v34 = vld [vmem:[#allocation3 + $0x8] sm:$0xff] }
 0x8ec   :  { %3581 = vmatprep.subr.mxu1 %v4134_v1 }
 0x8ee   :  { %3574 = vmatmul.mubr.msk.f32.vlgmr.msra.gmra.mrb[26].mxu1 %vm179_vm3, %v2413_v34 }
 0x8ef   :  { %3582 = vmatpush3.msra.mxu1 %v2409_v32  ;;  %3583 = vmatprep.mubr.msk.f32.mxu1 %vm4133_vm0, %v4134_v1 }
 0x8f0   :  { %3780 = vmatprep.subr.bf16.mxu1 %v3779_v22 }
 0x9bd   :  { %v2498_v35 = vpop.f32.mrb[24].mxu1 }
 0x9be   :  { %v2499_v36 = vadd.f32 %v3140_v58, %v2498_v35  ;;  %v3570_v18 = vpop.f32.mrb[25].mxu1 }
 0x9c0   :  { %v2579_v38 = vsel %vm2578_vm11, %v2499_v36, -inf }
 0x9c1   :  { %2580 = vmax.xlane.f32.xlu1 %v2579_v38  ;;  %v2574_v39 = vpop.f32.mrb[26].mxu1 }
 0x9c2   :  { %v2575_v40 = vadd.f32 %v3141_v37, %v2574_v39  ;;  %v3575_v41 = vpop.f32.mrb[27].mxu1 }
 0x9c4   :  { %v2582_v42 = vsel %vm2578_vm11, %v2575_v40, -inf }
 0x9c5   :  { %2583 = vmax.xlane.f32.xlu0 %v2582_v42 }
 0xa4e   :  { %v2581_v44 = vpop.xlane.xlu1 %2580 }
 0xa4f   :  { %v2585_v45 = vsub.f32 %v2499_v36, %v2581_v44 }
 0xa51   :  { %v2587_v46 = vmul.f32 1.442695, %v2585_v45  ;;  %v3909_v45 = vld [vmem:[%s4764_s4] sm:$0x3]  ;;  %s3046_s4 = sshll.u32 %s4137_s1, 4  ;;  %s3047_s4 = int_to_ptr.vmem [resolvable:$true] %s3046_s4 }
 0xa52   :  { %v2584_v47 = vpop.xlane.xlu0 %2583  ;;  %vm3138_vm13 = vcmp.gt.s32.totalorder %v3909_v45, 7  ;;  %s4086_s11 = scalar_lea.vmem %s3047_s4, 256  ;;  %p4091_p9 = scmp.lt.s32.totalorder %s3047_s4, %s3047_s4 }
 0xa53   :  { %3889 = vpow2.f32 %v2587_v46  ;;  %v2586_v48 = vsub.f32 %v2575_v40, %v2584_v47  ;;  %v3139_v46 = vsel %vm3138_vm13, 1.0, %v4134_v1  ;;  %p4087_p8 = scmp.ne.s32.totalorder %s3047_s4, %s4086_s11  ;;  %p4092_p10 = scmp.lt.s32.totalorder %s4086_s11, %s4086_s11 }
 0xa55   :  { %v2589_v49 = vmul.f32 1.442695, %v2586_v48  ;;  %p4093_p11 = por %p4092_p10, %p4091_p9 }
 0xa57   :  { %3891 = vpow2.f32 %v2589_v49  ;;  %v2398_v49 = vsub.f32 %v4676_v13, %v4644_v62  ;;  %p4094_p12 = pnand %p4093_p11, %p4087_p8 }
 0xa5d   :  { %v3890_v50 = vpop.eup %3889 }
 0xa5e   :  { %v2591_v51 = vsel %vm2578_vm11, %v3890_v50, 0.0 }
 0xa5f   :  { %2592 = vadd.xlane.f32.xlu0 %v2591_v51 }
 0xa61   :  { %v3892_v52 = vpop.eup %3891 }
 0xa62   :  { %v2594_v53 = vsel %vm2578_vm11, %v3892_v52, 0.0 }
 0xa63   :  { %2595 = vadd.xlane.f32.xlu1 %v2594_v53 }
 0xaec   :  { %v2593_v57 = vpop.xlane.xlu0 %2592 }
 0xaed   :  { %3893 = vrcp.f32 %v2593_v57 }
 0xaf0   :  { %v2596_v59 = vpop.xlane.xlu1 %2595 }
 0xaf1   :  { %3895 = vrcp.f32 %v2596_v59 }
 0xaf7   :  { %v3894_v63 = vpop.eup %3893 }
 0xaf8   :  { %v2598_v0 = vmul.f32 %v3894_v63, %v3890_v50 }
 0xafa   :  { %3579 = vmatmul.mubr.msk.f32.vlgmr.msra.gmra.mrb[24].mxu0 %vm2578_vm11, %v2598_v0 }
 0xafb   :  { %v3896_v3 = vpop.eup %3895  ;;  %3766 = vmatpush3.bf16.msra.mxu0 %v3763_v56  ;;  %3594 = vmatprep.mubr.msk.f32.mxu0 %vm179_vm3, %v2412_v33 }
 0xafc   :  { %v2600_v4 = vmul.f32 %v3896_v3, %v3892_v52  ;;  %3768 = vmatprep.subr.bf16.mxu0 %v3767_v20 }
 0xafe   :  { %3584 = vmatmul.mubr.msk.f32.vlgmr.msra.gmra.mrb[28].mxu1 %vm2578_vm11, %v2600_v4 }
 0xaff   :  { %3770 = vmatpush3.bf16.msra.mxu0 %v3767_v20  ;;  %3782 = vmatpush3.bf16.msra.mxu1 %v3779_v22 }
 0xb00   :  { %3772 = vmatprep.subr.bf16.mxu0 %v3771_v5  ;;  %3784 = vmatprep.subr.bf16.mxu1 %v3783_v24 }
 0xb02   :  { %3595 = vmatmul.mubr.msk.f32.vlgmr.msra.gmra.mrb[26].mxu0 %vm179_vm3, %v2413_v34 }
 0xb03   :  { %3774 = vmatpush3.bf16.msra.mxu0 %v3771_v5  ;;  %3786 = vmatpush3.bf16.msra.mxu1 %v3783_v24 }
 0xb04   :  { %3776 = vmatprep.subr.bf16.mxu0 %v3775_v9 }
 0xb07   :  { %3778 = vmatpush3.bf16.msra.mxu0 %v3775_v9 }
 0xbcd   :  { %v2670_v10 = vpop.f32.mrb[24].mxu0 }
 0xbce   :  { %v3580_v11 = vpop.f32.mrb[25].mxu0  ;;  %3605 = vmatprep.mubr.msk.f32.mxu0 %vm179_vm3, %v2670_v10 }
 0xbd1   :  { %v2743_v12 = vpop.f32.mrb[28].mxu1 }
 0xbd2   :  { %v3585_v15 = vpop.f32.mrb[29].mxu1  ;;  %3606 = vmatmul.mubr.msk.f32.vlgmr.msra.gmra.mrb[26].mxu0 %vm179_vm3, %v2743_v12 }
 0xca5   :  { %v3607_v17 = vpop.f32.mrb[26].mxu0 }
 0xca6   :  { %v2919_v27 = vadd.f32 %v3607_v17, %v3152_v26  ;;  %v2902_v28 = vpop.f32.mrb[27].mxu0 }
 0xca7   :  { %v2918_v29 = vadd.f32 %v3152_v26, %v2902_v28 }
 0xca9   :  { %3897 = vtanh.f32 %v2918_v29 }
 0xcaa   :  { %3899 = vtanh.f32 %v2919_v27 }
 0xcb3   :  { %v3898_v6 = vpop.eup %3897 }
 0xcb4   :  { %v3900_v43 = vpop.eup %3899  ;;  %3616 = vmatprep.mubr.msk.f32.mxu1 %vm179_vm3, %v3898_v6 }
 0xcb5   :  { %3617 = vmatmul.mubr.msk.f32.vlgmr.msra.gmra.mrb[30].mxu1 %vm179_vm3, %v3900_v43 }
 0xd88   :  { %v3618_v31 = vpop.f32.mrb[30].mxu1 }
 0xd89   :  { %v3011_v14 = vadd.f32 %v3618_v31, %v3153_v30  ;;  %v3005_v32 = vpop.f32.mrb[31].mxu1 }
 0xd8a   :  { %v3006_v33 = vadd.f32 %v3153_v30, %v3005_v32 }
 0xd8b   :  { %v3018_v34 = vsel %vm3014_vm12, %v3011_v14, -inf }
 0xd8c   :  { %3019 = vmax.xlane.f32.xlu1 %v3018_v34  ;;  %v3015_v58 = vsel %vm3014_vm12, %v3006_v33, -inf }
 0xd8d   :  { %3016 = vmax.xlane.f32.xlu0 %v3015_v58 }
 0xe19   :  { %v3020_v35 = vpop.xlane.xlu1 %3019 }
 0xe1a   :  { %v3022_v36 = vsub.f32 %v3011_v14, %v3020_v35  ;;  %v3017_v18 = vpop.xlane.xlu0 %3016 }
 0xe1b   :  { %v3021_v37 = vsub.f32 %v3006_v33, %v3017_v18 }
 0xe1c   :  { %v3025_v38 = vmul.f32 1.442695, %v3022_v36 }
 0xe1d   :  { %v3023_v39 = vmul.f32 1.442695, %v3021_v37 }
 0xe1e   :  { %3901 = vpow2.f32 %v3025_v38 }
 0xe1f   :  { %3903 = vpow2.f32 %v3023_v39 }
 0xe28   :  { %v3902_v40 = vpop.eup %3901 }
 0xe29   :  { %v3904_v41 = vpop.eup %3903  ;;  %v3030_v42 = vsel %vm3014_vm12, %v3902_v40, 0.0 }
 0xe2a   :  { %3031 = vadd.xlane.f32.xlu1 %v3030_v42  ;;  %v3027_v44 = vsel %vm3014_vm12, %v3904_v41, 0.0 }
 0xe2b   :  { %3028 = vadd.xlane.f32.xlu0 %v3027_v44 }
 0xe41   :  { %2401 = vperm.xlu0 %3807, %v3139_v46  }
 0xeb7   :  { %v3032_v47 = vpop.xlane.xlu1 %3031 }
 0xeb8   :  { %3905 = vlog2.f32 %v3032_v47  ;;  %v3029_v48 = vpop.xlane.xlu0 %3028 }
 0xeb9   :  { %3907 = vlog2.f32 %v3029_v48 }
 0xec0   :  { %v2402_v50 = vpop.permute.xlu0 %2401 }
 0xec1   :  { %v2404_v51 = vmul.f32 %v2402_v50, %v2398_v49 }
 0xec2   :  { %v3906_v52 = vpop.eup %3905 }
 0xec3   :  { %v3908_v53 = vpop.eup %3907  ;;  %v3036_v54 = vmul.f32 0.6931472, %v3906_v52  ;;  %v2405_v55 = vadd.f32 %v2404_v51, %v4644_v62 }
 0xec4   :  { %v3034_v56 = vmul.f32 0.6931472, %v3908_v53 }
 0xec5   :  { %v3038_v57 = vsub.f32 %v3022_v36, %v3036_v54  ;;  %2407 = vst.msk [vmem:[#allocation2] sm:$0x3] %vm158_vm1, %v2405_v55 }
 0xec6   :  { %v3037_v1 = vsub.f32 %v3021_v37, %v3034_v56 }
 0xec7   :  { %3040 = vst.msk [vmem:[#allocation18 + $0x8] sm:$0xff] %vm3014_vm12, %v3038_v57 }
 0xec8   :  { %3039 = vst.msk [vmem:[#allocation18] sm:$0xff] %vm3014_vm12, %v3037_v1 }
 0xec9   :  { %4097 = shalt.err (!%p4094_p12)
}
 0xeca   :  { %s4098_s16 = scalar_lea.hbm %s4774_s14, 256 }
 0xecb   :  { %p4099_p13 = scmp.ne.s32.totalorder %s4774_s14, %s4098_s16  ;;  %p4102_p0 = scmp.lt.u32.totalorder %s4098_s16, %s4774_s14 }
 0xecd   :  { %p4104_p1 = pnand %p4102_p0, %p4099_p13 }
 0xecf   :  { %4107 = shalt.err (!%p4104_p1)
}
 0xed0   :  { %3052 = dma.vmem_to_hbm [thread:$0]  %s3047_s4, 256, %s4774_s14, [#allocation6], %s4121_s23, %s4121_s23, %s4122_s24  }
 0xed1   :  { %4118 = dma.done.wait [#allocation6], 256  }
 0xed2   :  { %4119 = vsyncadd [#allocation6], 4294967040 }
 0xed3   :  { %3056 = vsyncpa [#allocation5], 1 }
 0xed4   :  { %3057 = vsyncpa [#allocation8], 1 }
 0xed5   :  { %3058 = vsyncpa [#allocation11], 1 }
 0xed6   :  { %3059 = vsyncpa [#allocation14], 1 }
 0xed7   :  { %3060 = vsyncpa [#allocation17], 1 }
 0xed8   :  { %3061 = vsyncpa [#allocation6], 1 }

</bundles_post_ra>
